<compile_context>
chip_gen: v7x
topology: tpu7x:2x2x1
jax: 0.10.0
libtpu: 0.0.40
codegen_flags: <defaults>
</compile_context>

<pallas_src>
import numpy as np
import jax
import jax.numpy as jnp
from jax.experimental import pallas as pl
from jax.experimental.pallas import tpu as pltpu


def _round_up(x, m):
    return ((x + m - 1) // m) * m


def _tile_budget():
    """(target positions per row tile, vmem_limit_bytes) per TPU generation."""
    kind = ""
    try:
        kind = jax.devices()[0].device_kind.lower()
    except Exception:
        pass
    if "v5" in kind or "v6" in kind:
        return 4096, 64 * 1024 * 1024          # 128 MiB physical VMEM
    return 2048, 48 * 1024 * 1024              # v7x / unknown: 64 MiB VMEM, stay safe


def _choose_row_tile(H, W, N, target_positions):
    """Largest row tile TH dividing H with (TH*W) % 8 == 0 and TH*W <= target.
    Never falls back to an over-sized tile unless no legal divisor exists, and
    keeps N * (H // TH) >= 2 when possible so both v7x TensorCores get work."""
    cands = [th for th in range(1, H + 1) if H % th == 0 and (th * W) % 8 == 0]
    if not cands:
        # W % 8 != 0 with no fixable divisor: full-height tile (block == full dims
        # is always legal); slower in-kernel reshape but correct.
        return H
    fitting = [th for th in cands if th * W <= target_positions]
    th = max(fitting) if fitting else min(cands)
    if N * (H // th) < 2:
        smaller = [c for c in cands if c < th]
        if smaller:
            th = max(smaller)
    return th


# -----------------------------------------------------------------------------
# Pallas kernel: fused 3x3 conv (+ReLU) + fused 1x1 heads + box decode epilogue
# -----------------------------------------------------------------------------
def _make_rpn_kernel(A, COUT, img_h, img_w, min_size):
    neg_inf = float("-inf")

    def kernel(x_ref, anch_ref, wc_ref, bc_ref, wo_ref, bo_ref, out_ref, lhs_ref):
        # x_ref   : (TH+2, W+2, Cin) bf16  -- overlapping row slab (halo included)
        # anch_ref: (TH*W, AC)       f32   -- anchors, columns [x1(A)|y1(A)|x2(A)|y2(A)|0]
        # wc_ref  : (9*Cin, CH)      bf16  -- 3x3 conv as one im2col weight slab
        # wo_ref  : (CH, COUT)       bf16  -- fused heads [obj(A)|dx(A)|dy(A)|dw(A)|dh(A)|0]
        # out_ref : (TH*W, COUT)     f32   -- [x1(A)|y1(A)|x2(A)|y2(A)|score(A)|0]
        # lhs_ref : (TH*W, 9*Cin)    bf16  -- VMEM im2col scratch
        THp2, Wp, Cin = x_ref.shape
        TH, W = THp2 - 2, Wp - 2

        xbuf = x_ref[...]                                        # (TH+2, W+2, Cin)

        # ---- fused im2col: 3 column windows (kx), cheap outer-dim slices (ky) ----
        for kx in range(3):
            colw = xbuf[:, kx:kx + W, :]                         # (TH+2, W, Cin)
            for ky in range(3):
                tap = ky * 3 + kx
                lhs_ref[:, tap * Cin:(tap + 1) * Cin] = (
                    colw[ky:ky + TH].reshape(TH * W, Cin))

        # ---- 3x3 conv as ONE MXU matmul (K = 9*Cin), bias, ReLU ----
        hid = jnp.dot(lhs_ref[...], wc_ref[...], preferred_element_type=jnp.float32)
        hid = jnp.maximum(hid + bc_ref[...], 0.0).astype(jnp.bfloat16)

        # ---- fused objectness + bbox 1x1 heads: one lane-dense matmul ----
        heads = jnp.dot(hid, wo_ref[...], preferred_element_type=jnp.float32) + bo_ref[...]

        obj = heads[:, 0 * A:1 * A]
        dx = heads[:, 1 * A:2 * A]
        dy = heads[:, 2 * A:3 * A]
        dw = heads[:, 3 * A:4 * A]
        dh = heads[:, 4 * A:5 * A]

        anch = anch_ref[...]
        ax1 = anch[:, 0 * A:1 * A]
        ay1 = anch[:, 1 * A:2 * A]
        ax2 = anch[:, 2 * A:3 * A]
        ay2 = anch[:, 3 * A:4 * A]

        # ---- decode epilogue (apply_deltas_to_anchors + clip + remove_small) ----
        aw = ax2 - ax1
        ah = ay2 - ay1
        cx = ax1 + (0.5 + dx) * aw
        cy = ay1 + (0.5 + dy) * ah
        # NOTE: the reference applies exp() with no bbox_xform_clip clamp, so
        # none is applied here either.
        hw = 0.5 * aw * jnp.exp(dw)
        hh = 0.5 * ah * jnp.exp(dh)
        x1 = jnp.clip(cx - hw, 0.0, img_w)
        y1 = jnp.clip(cy - hh, 0.0, img_h)
        x2 = jnp.clip(cx + hw, 0.0, img_w)
        y2 = jnp.clip(cy + hh, 0.0, img_h)

        valid = (x2 - x1 >= min_size) & (y2 - y1 >= min_size)
        score = jnp.where(valid, obj, neg_inf)

        pieces = [x1, y1, x2, y2, score]
        pad = COUT - 5 * A
        if pad:
            pieces.append(jnp.zeros((TH * W, pad), jnp.float32))
        out_ref[...] = jnp.concatenate(pieces, axis=1)           # lane-dense store

    return kernel


def rpn_head_decode_pallas(feat_nchw, anchors_cols, params, img_h, img_w, min_size,
                           target_positions, vmem_limit_bytes):
    """Fused RPN head + box decode for one feature level.

    Returns (N, H*W, COUT) f32 with columns [x1(A)|y1(A)|x2(A)|y2(A)|score(A)|pad],
    positions in (h, w) order and anchors in the generator's per-location order."""
    N, Cin, H, W = map(int, feat_nchw.shape)
    A = int(params["num_anchors"])
    CH = int(params["w_conv"].shape[1])
    COUT = int(params["w_out"].shape[1])
    AC = int(anchors_cols.shape[1])

    TH = _choose_row_tile(H, W, N, target_positions)
    RT = H // TH
    Wp = W + 2

    # NHWC bf16, spatially zero-padded by 1, then pre-tiled into overlapping
    # (TH+2)-row slabs so one blocked DMA per step carries the halo.
    x = jnp.transpose(feat_nchw, (0, 2, 3, 1)).astype(jnp.bfloat16)
    xp = jnp.pad(x, ((0, 0), (1, 1), (1, 1), (0, 0)))            # (N, H+2, W+2, Cin)
    row_idx = np.arange(RT)[:, None] * TH + np.arange(TH + 2)[None, :]
    x_tiles = xp[:, row_idx]                                     # (N, RT, TH+2, W+2, Cin)

    kernel = _make_rpn_kernel(A, COUT, float(img_h), float(img_w), float(min_size))

    return pl.pallas_call(
        kernel,
        out_shape=jax.ShapeDtypeStruct((N, H * W, COUT), jnp.float32),
        grid=(N, RT),
        in_specs=[
            pl.BlockSpec((None, None, TH + 2, Wp, Cin), lambda n, r: (n, r, 0, 0, 0)),
            pl.BlockSpec((TH * W, AC), lambda n, r: (r, 0)),
            pl.BlockSpec((9 * Cin, CH), lambda n, r: (0, 0)),
            pl.BlockSpec((1, CH), lambda n, r: (0, 0)),
            pl.BlockSpec((CH, COUT), lambda n, r: (0, 0)),
            pl.BlockSpec((1, COUT), lambda n, r: (0, 0)),
        ],
        out_specs=pl.BlockSpec((None, TH * W, COUT), lambda n, r: (n, r, 0)),
        scratch_shapes=[pltpu.VMEM((TH * W, 9 * Cin), jnp.bfloat16)],
        compiler_params=pltpu.CompilerParams(
            dimension_semantics=("parallel", "parallel"),
            vmem_limit_bytes=vmem_limit_bytes),
    )(x_tiles, anchors_cols, params["w_conv"], params["b_conv"],
      params["w_out"], params["b_out"])


# -----------------------------------------------------------------------------
# Anchors, host NMS, parameter packing (plain JAX / NumPy glue)
# -----------------------------------------------------------------------------
def generate_anchors_np(sizes, ratios, feat_h, feat_w, stride_h, stride_w):
    """torchvision-style anchors for one level, (feat_h*feat_w*A, 4), (h, w, a) order."""
    scales = np.asarray(sizes, dtype=np.float32)
    aspect = np.asarray(ratios, dtype=np.float32)
    h_ratios = np.sqrt(aspect)
    w_ratios = 1.0 / h_ratios
    ws = (w_ratios[:, None] * scales[None, :]).reshape(-1)
    hs = (h_ratios[:, None] * scales[None, :]).reshape(-1)
    base = np.round(np.stack([-ws, -hs, ws, hs], axis=1) / 2.0)
    shifts_x = np.arange(feat_w, dtype=np.float32) * stride_w
    shifts_y = np.arange(feat_h, dtype=np.float32) * stride_h
    sy, sx = np.meshgrid(shifts_y, shifts_x, indexing="ij")
    shifts = np.stack([sx.reshape(-1), sy.reshape(-1),
                       sx.reshape(-1), sy.reshape(-1)], axis=1)
    anchors = (shifts[:, None, :] + base[None, :, :]).reshape(-1, 4)
    return anchors.astype(np.float32)


def pack_anchor_columns(anchors_np, A):
    """(H*W*A, 4) -> (H*W, AC) with columns [x1(A)|y1(A)|x2(A)|y2(A)|0-pad]."""
    P = anchors_np.shape[0] // A
    AC = _round_up(4 * A, 128)
    cols = anchors_np.reshape(P, A, 4).transpose(0, 2, 1).reshape(P, 4 * A)
    cols = np.pad(cols, ((0, 0), (0, AC - 4 * A)))
    return jnp.asarray(cols)


def nms_np(boxes, scores, iou_thresh):
    """Greedy NMS; returns kept indices sorted by descending score."""
    if boxes.shape[0] == 0:
        return np.zeros((0,), dtype=np.int64)
    x1, y1, x2, y2 = boxes[:, 0], boxes[:, 1], boxes[:, 2], boxes[:, 3]
    areas = (x2 - x1) * (y2 - y1)
    order = np.argsort(-scores, kind="stable")
    keep = []
    while order.size > 0:
        i = order[0]
        keep.append(int(i))
        rest = order[1:]
        xx1 = np.maximum(x1[i], x1[rest])
        yy1 = np.maximum(y1[i], y1[rest])
        xx2 = np.minimum(x2[i], x2[rest])
        yy2 = np.minimum(y2[i], y2[rest])
        inter = np.maximum(0.0, xx2 - xx1) * np.maximum(0.0, yy2 - yy1)
        iou = inter / (areas[i] + areas[rest] - inter + 1e-12)
        order = rest[iou <= iou_thresh]
    return np.asarray(keep, dtype=np.int64)


def init_params(key, in_channels, hidden_channels, num_anchors):
    """Synthetic PyTorch-layout parameters repacked for the fused Pallas kernel:
    one (9*Cin, CH) im2col conv slab and a (CH, COUT) fused-head slab whose box
    columns are coordinate-major ([obj | dx | dy | dw | dh])."""
    k = jax.random.split(key, 6)
    Cin, Chid, A = in_channels, hidden_channels, num_anchors
    w_conv_oihw = 0.1 * jax.random.normal(k[0], (Chid, Cin, 3, 3), jnp.float32)
    b_conv = 0.01 * jax.random.normal(k[1], (Chid,), jnp.float32)
    w_obj = 0.1 * jax.random.normal(k[2], (A, Chid), jnp.float32)
    b_obj = 0.01 * jax.random.normal(k[3], (A,), jnp.float32)
    w_box = 0.1 * jax.random.normal(k[4], (A * 4, Chid), jnp.float32)   # rows a*4 + c
    b_box = 0.01 * jax.random.normal(k[5], (A * 4,), jnp.float32)

    CH = _round_up(Chid, 128)
    COUT = _round_up(5 * A, 128)

    # 3x3 conv -> one (9*Cin, CH) slab: row (ky*3+kx)*Cin + ci = W_torch[:, ci, ky, kx].
    wc = jnp.transpose(w_conv_oihw, (2, 3, 1, 0)).reshape(9 * Cin, Chid)
    wc = jnp.pad(wc, ((0, 0), (0, CH - Chid))).astype(jnp.bfloat16)
    bc = jnp.pad(b_conv, (0, CH - Chid)).reshape(1, CH)

    # Fused heads, coordinate-major box columns: col A + c*A + a = bbox channel a*4 + c.
    w_box_cm = w_box.reshape(A, 4, Chid).transpose(1, 0, 2).reshape(4 * A, Chid)
    b_box_cm = b_box.reshape(A, 4).T.reshape(4 * A)
    wo = jnp.concatenate([w_obj, w_box_cm], axis=0).T
    wo = jnp.pad(wo, ((0, CH - Chid), (0, COUT - 5 * A))).astype(jnp.bfloat16)
    bo = jnp.pad(jnp.concatenate([b_obj, b_box_cm]), (0, COUT - 5 * A)).reshape(1, COUT)

    return {"w_conv": wc, "b_conv": bc, "w_out": wo, "b_out": bo, "num_anchors": A}


# -----------------------------------------------------------------------------
# Full forward (eval path): mirrors RegionProposalNetwork.forward
# -----------------------------------------------------------------------------
def region_proposal_network_forward(
        images, features, params, *, training=False,
        anchor_sizes=((32, 64, 128, 256, 512),), aspect_ratios=((0.5, 1.0, 2.0),),
        pre_nms_top_n=None, post_nms_top_n=None, nms_thresh=0.7, min_size=0.001):
    if pre_nms_top_n is None:
        pre_nms_top_n = {"training": 2000, "testing": 1000}
    if post_nms_top_n is None:
        post_nms_top_n = {"training": 2000, "testing": 1000}

    features_list = [features[f] for f in features.keys() if f != "fused"]
    img_h, img_w = int(images.shape[-2]), int(images.shape[-1])
    N = int(images.shape[0])
    A = int(params["num_anchors"])
    target_pos, vmem_limit = _tile_budget()

    coord_parts = [[], [], [], []]      # x1, y1, x2, y2 per level, flattened (h, w, a)
    score_parts = []
    for feat in features_list:
        Hf, Wf = int(feat.shape[-2]), int(feat.shape[-1])
        anchors_np = generate_anchors_np(anchor_sizes[0], aspect_ratios[0],
                                         Hf, Wf, img_h // Hf, img_w // Wf)
        anch_cols = pack_anchor_columns(anchors_np, A)
        out = rpn_head_decode_pallas(feat, anch_cols, params, img_h, img_w,
                                     min_size, target_pos, vmem_limit)
        for c in range(4):
            coord_parts[c].append(out[..., c * A:(c + 1) * A].reshape(N, -1))
        score_parts.append(out[..., 4 * A:5 * A].reshape(N, -1))

    scores = jnp.concatenate(score_parts, axis=1)                # (N, M), -inf = filtered
    coords = [jnp.concatenate(c, axis=1) for c in coord_parts]   # 4 x (N, M)
    M = int(scores.shape[1])

    mode = "training" if training else "testing"
    pre_n, post_n = pre_nms_top_n[mode], post_nms_top_n[mode]

    # pre-NMS top-k on device; only the top-k boxes/scores travel to the host.
    k = min(pre_n, M)
    top_scores, top_idx = jax.lax.top_k(scores, k)
    boxes_topk = jnp.stack(
        [jnp.take_along_axis(c, top_idx, axis=1) for c in coords], axis=-1)   # (N, k, 4)

    boxes_host = np.asarray(jax.block_until_ready(boxes_topk))
    scores_host = np.asarray(top_scores)

    # TODO(synk): greedy NMS + post-NMS variable-length gather are data-dependent
    # dynamic-shape ops with no clean Pallas equivalent; reproduced host-side.
    proposals = []
    for i in range(N):
        b, s = boxes_host[i], scores_host[i]
        ok = np.isfinite(s)                       # drop min-size-masked entries
        b, s = b[ok], s[ok]
        keep = nms_np(b, s, nms_thresh)[:post_n]
        proposals.append(jnp.asarray(b[keep]))

    # TODO(synk): training loss path (assign_targets_to_anchors / compute_loss)
    # relies on randperm sampling and dynamic boolean gather; eval path only.
    loss_dict = {}
    return proposals, loss_dict


# -----------------------------------------------------------------------------
if __name__ == "__main__":
    key = jax.random.PRNGKey(0)
    k_img, k_feat, k_fused, k_par = jax.random.split(key, 4)

    N, Cin, Hf, Wf = 2, 4, 16, 16
    Himg, Wimg = 64, 64
    hidden_channels = 32
    num_anchors = 5 * 3  # sizes x aspect_ratios = 15

    images = jax.random.normal(k_img, (N, 3, Himg, Wimg), jnp.float32)
    features = {
        "feat0": jax.random.normal(k_feat, (N, Cin, Hf, Wf), jnp.float32),
        "fused": jax.random.normal(k_fused, (N, Cin, Hf, Wf), jnp.float32),  # excluded
    }
    params = init_params(k_par, Cin, hidden_channels, num_anchors)

    proposals, loss_dict = region_proposal_network_forward(images, features, params)
    for p in proposals:
        jax.block_until_ready(p)
    assert len(proposals) == N and all(int(p.shape[-1]) == 4 for p in proposals)
    assert all(bool(np.isfinite(np.asarray(p)).all()) for p in proposals)
    print("KERNEL_OK")
</pallas_src>

<mosaic_0001>
module attributes {stable_mosaic.version = 11 : i64} {
  func.func @kernel(%arg0: i32, %arg1: i32, %arg2: memref<1x1x18x18x4xbf16, #tpu.memory_space<vmem>>, %arg3: memref<256x128xf32, #tpu.memory_space<vmem>>, %arg4: memref<36x128xbf16, #tpu.memory_space<vmem>>, %arg5: memref<1x128xf32, #tpu.memory_space<vmem>>, %arg6: memref<128x128xbf16, #tpu.memory_space<vmem>>, %arg7: memref<1x128xf32, #tpu.memory_space<vmem>>, %arg8: memref<1x256x128xf32, #tpu.memory_space<vmem>>, %arg9: memref<256x36xbf16, #tpu.memory_space<vmem>>) attributes {dimension_semantics = [#tpu.dimension_semantics<parallel>, #tpu.dimension_semantics<parallel>], iteration_bounds = array<i64: 2, 1>, scalar_prefetch = 0 : i64, scratch_operands = 1 : i64, tpu.core_type = #tpu.core_type<tc>, window_params = [{transform_indices = @transform_0, window_bounds = array<i64: 1, 1, 18, 18, 4>}, {transform_indices = @transform_1, window_bounds = array<i64: 256, 128>}, {pipeline_mode = #tpu.pipeline_mode<synchronous>, transform_indices = @transform_2, window_bounds = array<i64: 36, 128>}, {pipeline_mode = #tpu.pipeline_mode<synchronous>, transform_indices = @transform_3, window_bounds = array<i64: 1, 128>}, {pipeline_mode = #tpu.pipeline_mode<synchronous>, transform_indices = @transform_4, window_bounds = array<i64: 128, 128>}, {pipeline_mode = #tpu.pipeline_mode<synchronous>, transform_indices = @transform_5, window_bounds = array<i64: 1, 128>}, {transform_indices = @transform_6, window_bounds = array<i64: 1, 256, 128>}]} {
    %c0 = arith.constant 0 : index
    %c0_0 = arith.constant 0 : index
    %c0_1 = arith.constant 0 : index
    %c0_2 = arith.constant 0 : index
    %c0_3 = arith.constant 0 : index
    %0 = vector.load %arg2[%c0, %c0_0, %c0_1, %c0_2, %c0_3] : memref<1x1x18x18x4xbf16, #tpu.memory_space<vmem>>, vector<1x1x18x18x4xbf16>
    %1 = vector.shape_cast %0 : vector<1x1x18x18x4xbf16> to vector<18x18x4xbf16>
    %2 = vector.extract_strided_slice %1 {offsets = [0, 0, 0], sizes = [18, 16, 4], strides = [1, 1, 1]} : vector<18x18x4xbf16> to vector<18x16x4xbf16>
    %3 = vector.extract_strided_slice %2 {offsets = [0, 0, 0], sizes = [16, 16, 4], strides = [1, 1, 1]} : vector<18x16x4xbf16> to vector<16x16x4xbf16>
    %4 = vector.shape_cast %3 : vector<16x16x4xbf16> to vector<256x4xbf16>
    %c0_4 = arith.constant 0 : index
    %c0_5 = arith.constant 0 : index
    %5 = vector.load %arg9[%c0_4, %c0_5] : memref<256x36xbf16, #tpu.memory_space<vmem>>, vector<256x4xbf16>
    tpu.vector_store %arg9[%c0_4, %c0_5], %4 {strides = array<i32>} : memref<256x36xbf16, #tpu.memory_space<vmem>>, vector<256x4xbf16>,
    %6 = vector.extract_strided_slice %2 {offsets = [1, 0, 0], sizes = [16, 16, 4], strides = [1, 1, 1]} : vector<18x16x4xbf16> to vector<16x16x4xbf16>
    %7 = vector.shape_cast %6 : vector<16x16x4xbf16> to vector<256x4xbf16>
    %c0_6 = arith.constant 0 : index
    %c12 = arith.constant 12 : index
    %8 = vector.load %arg9[%c0_6, %c12] : memref<256x36xbf16, #tpu.memory_space<vmem>>, vector<256x4xbf16>
    tpu.vector_store %arg9[%c0_6, %c12], %7 {strides = array<i32>} : memref<256x36xbf16, #tpu.memory_space<vmem>>, vector<256x4xbf16>,
    %9 = vector.extract_strided_slice %2 {offsets = [2, 0, 0], sizes = [16, 16, 4], strides = [1, 1, 1]} : vector<18x16x4xbf16> to vector<16x16x4xbf16>
    %10 = vector.shape_cast %9 : vector<16x16x4xbf16> to vector<256x4xbf16>
    %c0_7 = arith.constant 0 : index
    %c24 = arith.constant 24 : index
    %11 = vector.load %arg9[%c0_7, %c24] : memref<256x36xbf16, #tpu.memory_space<vmem>>, vector<256x4xbf16>
    tpu.vector_store %arg9[%c0_7, %c24], %10 {strides = array<i32>} : memref<256x36xbf16, #tpu.memory_space<vmem>>, vector<256x4xbf16>,
    %12 = vector.extract_strided_slice %1 {offsets = [0, 1, 0], sizes = [18, 16, 4], strides = [1, 1, 1]} : vector<18x18x4xbf16> to vector<18x16x4xbf16>
    %13 = vector.extract_strided_slice %12 {offsets = [0, 0, 0], sizes = [16, 16, 4], strides = [1, 1, 1]} : vector<18x16x4xbf16> to vector<16x16x4xbf16>
    %14 = vector.shape_cast %13 : vector<16x16x4xbf16> to vector<256x4xbf16>
    %c0_8 = arith.constant 0 : index
    %c4 = arith.constant 4 : index
    %15 = vector.load %arg9[%c0_8, %c4] : memref<256x36xbf16, #tpu.memory_space<vmem>>, vector<256x4xbf16>
    tpu.vector_store %arg9[%c0_8, %c4], %14 {strides = array<i32>} : memref<256x36xbf16, #tpu.memory_space<vmem>>, vector<256x4xbf16>,
    %16 = vector.extract_strided_slice %12 {offsets = [1, 0, 0], sizes = [16, 16, 4], strides = [1, 1, 1]} : vector<18x16x4xbf16> to vector<16x16x4xbf16>
    %17 = vector.shape_cast %16 : vector<16x16x4xbf16> to vector<256x4xbf16>
    %c0_9 = arith.constant 0 : index
    %c16 = arith.constant 16 : index
    %18 = vector.load %arg9[%c0_9, %c16] : memref<256x36xbf16, #tpu.memory_space<vmem>>, vector<256x4xbf16>
    tpu.vector_store %arg9[%c0_9, %c16], %17 {strides = array<i32>} : memref<256x36xbf16, #tpu.memory_space<vmem>>, vector<256x4xbf16>,
    %19 = vector.extract_strided_slice %12 {offsets = [2, 0, 0], sizes = [16, 16, 4], strides = [1, 1, 1]} : vector<18x16x4xbf16> to vector<16x16x4xbf16>
    %20 = vector.shape_cast %19 : vector<16x16x4xbf16> to vector<256x4xbf16>
    %c0_10 = arith.constant 0 : index
    %c28 = arith.constant 28 : index
    %21 = vector.load %arg9[%c0_10, %c28] : memref<256x36xbf16, #tpu.memory_space<vmem>>, vector<256x4xbf16>
    tpu.vector_store %arg9[%c0_10, %c28], %20 {strides = array<i32>} : memref<256x36xbf16, #tpu.memory_space<vmem>>, vector<256x4xbf16>,
    %22 = vector.extract_strided_slice %1 {offsets = [0, 2, 0], sizes = [18, 16, 4], strides = [1, 1, 1]} : vector<18x18x4xbf16> to vector<18x16x4xbf16>
    %23 = vector.extract_strided_slice %22 {offsets = [0, 0, 0], sizes = [16, 16, 4], strides = [1, 1, 1]} : vector<18x16x4xbf16> to vector<16x16x4xbf16>
    %24 = vector.shape_cast %23 : vector<16x16x4xbf16> to vector<256x4xbf16>
    %c0_11 = arith.constant 0 : index
    %c8 = arith.constant 8 : index
    %25 = vector.load %arg9[%c0_11, %c8] : memref<256x36xbf16, #tpu.memory_space<vmem>>, vector<256x4xbf16>
    tpu.vector_store %arg9[%c0_11, %c8], %24 {strides = array<i32>} : memref<256x36xbf16, #tpu.memory_space<vmem>>, vector<256x4xbf16>,
    %26 = vector.extract_strided_slice %22 {offsets = [1, 0, 0], sizes = [16, 16, 4], strides = [1, 1, 1]} : vector<18x16x4xbf16> to vector<16x16x4xbf16>
    %27 = vector.shape_cast %26 : vector<16x16x4xbf16> to vector<256x4xbf16>
    %c0_12 = arith.constant 0 : index
    %c20 = arith.constant 20 : index
    %28 = vector.load %arg9[%c0_12, %c20] : memref<256x36xbf16, #tpu.memory_space<vmem>>, vector<256x4xbf16>
    tpu.vector_store %arg9[%c0_12, %c20], %27 {strides = array<i32>} : memref<256x36xbf16, #tpu.memory_space<vmem>>, vector<256x4xbf16>,
    %29 = vector.extract_strided_slice %22 {offsets = [2, 0, 0], sizes = [16, 16, 4], strides = [1, 1, 1]} : vector<18x16x4xbf16> to vector<16x16x4xbf16>
    %30 = vector.shape_cast %29 : vector<16x16x4xbf16> to vector<256x4xbf16>
    %c0_13 = arith.constant 0 : index
    %c32 = arith.constant 32 : index
    %31 = vector.load %arg9[%c0_13, %c32] : memref<256x36xbf16, #tpu.memory_space<vmem>>, vector<256x4xbf16>
    tpu.vector_store %arg9[%c0_13, %c32], %30 {strides = array<i32>} : memref<256x36xbf16, #tpu.memory_space<vmem>>, vector<256x4xbf16>,
    %c0_14 = arith.constant 0 : index
    %c0_15 = arith.constant 0 : index
    %32 = vector.load %arg9[%c0_14, %c0_15] : memref<256x36xbf16, #tpu.memory_space<vmem>>, vector<256x36xbf16>
    %c0_16 = arith.constant 0 : index
    %c0_17 = arith.constant 0 : index
    %33 = vector.load %arg4[%c0_16, %c0_17] : memref<36x128xbf16, #tpu.memory_space<vmem>>, vector<36x128xbf16>
    %cst = arith.constant dense<0.000000e+00> : vector<256x128xf32>
    %34 = tpu.matmul %32, %33, %cst {dimension_numbers = #tpu.dot_dimension_numbers<[1], [0], [0], [1], [0, 0, 1, 1], [], []>} : vector<256x36xbf16>, vector<36x128xbf16>, vector<256x128xf32> -> vector<256x128xf32>
    %c0_18 = arith.constant 0 : index
    %c0_19 = arith.constant 0 : index
    %35 = vector.load %arg5[%c0_18, %c0_19] : memref<1x128xf32, #tpu.memory_space<vmem>>, vector<1x128xf32>
    %36 = vector.broadcast %35 : vector<1x128xf32> to vector<256x128xf32>
    %37 = arith.addf %34, %36 : vector<256x128xf32>
    %cst_20 = arith.constant 0.000000e+00 : f32
    %38 = vector.broadcast %cst_20 : f32 to vector<256x128xf32>
    %39 = arith.maximumf %37, %38 : vector<256x128xf32>
    %40 = arith.truncf %39 : vector<256x128xf32> to vector<256x128xbf16>
    %c0_21 = arith.constant 0 : index
    %c0_22 = arith.constant 0 : index
    %41 = vector.load %arg6[%c0_21, %c0_22] : memref<128x128xbf16, #tpu.memory_space<vmem>>, vector<128x128xbf16>
    %cst_23 = arith.constant dense<0.000000e+00> : vector<256x128xf32>
    %42 = tpu.matmul %40, %41, %cst_23 {dimension_numbers = #tpu.dot_dimension_numbers<[1], [0], [0], [1], [0, 0, 1, 1], [], []>} : vector<256x128xbf16>, vector<128x128xbf16>, vector<256x128xf32> -> vector<256x128xf32>
    %c0_24 = arith.constant 0 : index
    %c0_25 = arith.constant 0 : index
    %43 = vector.load %arg7[%c0_24, %c0_25] : memref<1x128xf32, #tpu.memory_space<vmem>>, vector<1x128xf32>
    %44 = vector.broadcast %43 : vector<1x128xf32> to vector<256x128xf32>
    %45 = arith.addf %42, %44 : vector<256x128xf32>
    %46 = vector.extract_strided_slice %45 {offsets = [0, 0], sizes = [256, 15], strides = [1, 1]} : vector<256x128xf32> to vector<256x15xf32>
    %47 = vector.extract_strided_slice %45 {offsets = [0, 15], sizes = [256, 15], strides = [1, 1]} : vector<256x128xf32> to vector<256x15xf32>
    %48 = vector.extract_strided_slice %45 {offsets = [0, 30], sizes = [256, 15], strides = [1, 1]} : vector<256x128xf32> to vector<256x15xf32>
    %49 = vector.extract_strided_slice %45 {offsets = [0, 45], sizes = [256, 15], strides = [1, 1]} : vector<256x128xf32> to vector<256x15xf32>
    %50 = vector.extract_strided_slice %45 {offsets = [0, 60], sizes = [256, 15], strides = [1, 1]} : vector<256x128xf32> to vector<256x15xf32>
    %c0_26 = arith.constant 0 : index
    %c0_27 = arith.constant 0 : index
    %51 = vector.load %arg3[%c0_26, %c0_27] : memref<256x128xf32, #tpu.memory_space<vmem>>, vector<256x128xf32>
    %52 = vector.extract_strided_slice %51 {offsets = [0, 0], sizes = [256, 15], strides = [1, 1]} : vector<256x128xf32> to vector<256x15xf32>
    %53 = vector.extract_strided_slice %51 {offsets = [0, 15], sizes = [256, 15], strides = [1, 1]} : vector<256x128xf32> to vector<256x15xf32>
    %54 = vector.extract_strided_slice %51 {offsets = [0, 30], sizes = [256, 15], strides = [1, 1]} : vector<256x128xf32> to vector<256x15xf32>
    %55 = vector.extract_strided_slice %51 {offsets = [0, 45], sizes = [256, 15], strides = [1, 1]} : vector<256x128xf32> to vector<256x15xf32>
    %56 = arith.subf %54, %52 : vector<256x15xf32>
    %57 = arith.subf %55, %53 : vector<256x15xf32>
    %cst_28 = arith.constant 5.000000e-01 : f32
    %58 = vector.broadcast %cst_28 : f32 to vector<256x15xf32>
    %59 = arith.addf %58, %47 : vector<256x15xf32>
    %60 = arith.mulf %59, %56 : vector<256x15xf32>
    %61 = arith.addf %52, %60 : vector<256x15xf32>
    %cst_29 = arith.constant 5.000000e-01 : f32
    %62 = vector.broadcast %cst_29 : f32 to vector<256x15xf32>
    %63 = arith.addf %62, %48 : vector<256x15xf32>
    %64 = arith.mulf %63, %57 : vector<256x15xf32>
    %65 = arith.addf %53, %64 : vector<256x15xf32>
    %cst_30 = arith.constant 5.000000e-01 : f32
    %66 = vector.broadcast %cst_30 : f32 to vector<256x15xf32>
    %67 = arith.mulf %66, %56 : vector<256x15xf32>
    %68 = math.exp %49 : vector<256x15xf32>
    %69 = arith.mulf %67, %68 : vector<256x15xf32>
    %cst_31 = arith.constant 5.000000e-01 : f32
    %70 = vector.broadcast %cst_31 : f32 to vector<256x15xf32>
    %71 = arith.mulf %70, %57 : vector<256x15xf32>
    %72 = math.exp %50 : vector<256x15xf32>
    %73 = arith.mulf %71, %72 : vector<256x15xf32>
    %74 = arith.subf %61, %69 : vector<256x15xf32>
    %cst_32 = arith.constant 0.000000e+00 : f32
    %cst_33 = arith.constant 6.400000e+01 : f32
    %75 = vector.broadcast %cst_32 : f32 to vector<256x15xf32>
    %76 = arith.maximumf %75, %74 : vector<256x15xf32>
    %77 = vector.broadcast %cst_33 : f32 to vector<256x15xf32>
    %78 = arith.minimumf %77, %76 : vector<256x15xf32>
    %79 = arith.subf %65, %73 : vector<256x15xf32>
    %cst_34 = arith.constant 0.000000e+00 : f32
    %cst_35 = arith.constant 6.400000e+01 : f32
    %80 = vector.broadcast %cst_34 : f32 to vector<256x15xf32>
    %81 = arith.maximumf %80, %79 : vector<256x15xf32>
    %82 = vector.broadcast %cst_35 : f32 to vector<256x15xf32>
    %83 = arith.minimumf %82, %81 : vector<256x15xf32>
    %84 = arith.addf %61, %69 : vector<256x15xf32>
    %cst_36 = arith.constant 0.000000e+00 : f32
    %cst_37 = arith.constant 6.400000e+01 : f32
    %85 = vector.broadcast %cst_36 : f32 to vector<256x15xf32>
    %86 = arith.maximumf %85, %84 : vector<256x15xf32>
    %87 = vector.broadcast %cst_37 : f32 to vector<256x15xf32>
    %88 = arith.minimumf %87, %86 : vector<256x15xf32>
    %89 = arith.addf %65, %73 : vector<256x15xf32>
    %cst_38 = arith.constant 0.000000e+00 : f32
    %cst_39 = arith.constant 6.400000e+01 : f32
    %90 = vector.broadcast %cst_38 : f32 to vector<256x15xf32>
    %91 = arith.maximumf %90, %89 : vector<256x15xf32>
    %92 = vector.broadcast %cst_39 : f32 to vector<256x15xf32>
    %93 = arith.minimumf %92, %91 : vector<256x15xf32>
    %94 = arith.subf %88, %78 : vector<256x15xf32>
    %cst_40 = arith.constant 1.000000e-03 : f32
    %95 = vector.broadcast %cst_40 : f32 to vector<256x15xf32>
    %96 = arith.cmpf oge, %94, %95 : vector<256x15xf32>
    %97 = arith.subf %93, %83 : vector<256x15xf32>
    %cst_41 = arith.constant 1.000000e-03 : f32
    %98 = vector.broadcast %cst_41 : f32 to vector<256x15xf32>
    %99 = arith.cmpf oge, %97, %98 : vector<256x15xf32>
    %100 = arith.andi %96, %99 : vector<256x15xi1>
    %cst_42 = arith.constant 0xFF800000 : f32
    %101 = vector.broadcast %cst_42 : f32 to vector<256x15xf32>
    %102 = arith.select %100, %46, %101 : vector<256x15xi1>, vector<256x15xf32>
    %cst_43 = arith.constant 0.000000e+00 : f32
    %103 = vector.broadcast %cst_43 : f32 to vector<256x53xf32>
    %104 = tpu.concatenate %78, %83, %88, %93, %102, %103 in 1 : vector<256x15xf32>, vector<256x15xf32>, vector<256x15xf32>, vector<256x15xf32>, vector<256x15xf32>, vector<256x53xf32> -> vector<256x128xf32>
    %c0_44 = arith.constant 0 : index
    %c0_45 = arith.constant 0 : index
    %c0_46 = arith.constant 0 : index
    %105 = vector.load %arg8[%c0_44, %c0_45, %c0_46] : memref<1x256x128xf32, #tpu.memory_space<vmem>>, vector<1x256x128xf32>
    %106 = vector.shape_cast %105 : vector<1x256x128xf32> to vector<256x128xf32>
    %107 = vector.shape_cast %104 : vector<256x128xf32> to vector<1x256x128xf32>
    tpu.vector_store %arg8[%c0_44, %c0_45, %c0_46], %107 {strides = array<i32>} : memref<1x256x128xf32, #tpu.memory_space<vmem>>, vector<1x256x128xf32>,
    return
  }
  func.func @transform_0(%arg0: i32, %arg1: i32) -> (i32, i32, i32, i32, i32) {
    %c0_i32 = arith.constant 0 : i32
    %c0_i32_0 = arith.constant 0 : i32
    %c0_i32_1 = arith.constant 0 : i32
    %c0_i32_2 = arith.constant 0 : i32
    return %arg0, %arg1, %c0_i32, %c0_i32_0, %c0_i32_1 : i32, i32, i32, i32, i32
  }
  func.func @transform_1(%arg0: i32, %arg1: i32) -> (i32, i32) {
    %c0_i32 = arith.constant 0 : i32
    %c0_i32_0 = arith.constant 0 : i32
    return %arg1, %c0_i32 : i32, i32
  }
  func.func @transform_2(%arg0: i32, %arg1: i32) -> (i32, i32) {
    %c0_i32 = arith.constant 0 : i32
    %c0_i32_0 = arith.constant 0 : i32
    %c0_i32_1 = arith.constant 0 : i32
    return %c0_i32, %c0_i32_0 : i32, i32
  }
  func.func @transform_3(%arg0: i32, %arg1: i32) -> (i32, i32) {
    %c0_i32 = arith.constant 0 : i32
    %c0_i32_0 = arith.constant 0 : i32
    %c0_i32_1 = arith.constant 0 : i32
    return %c0_i32, %c0_i32_0 : i32, i32
  }
  func.func @transform_4(%arg0: i32, %arg1: i32) -> (i32, i32) {
    %c0_i32 = arith.constant 0 : i32
    %c0_i32_0 = arith.constant 0 : i32
    %c0_i32_1 = arith.constant 0 : i32
    return %c0_i32, %c0_i32_0 : i32, i32
  }
  func.func @transform_5(%arg0: i32, %arg1: i32) -> (i32, i32) {
    %c0_i32 = arith.constant 0 : i32
    %c0_i32_0 = arith.constant 0 : i32
    %c0_i32_1 = arith.constant 0 : i32
    return %c0_i32, %c0_i32_0 : i32, i32
  }
  func.func @transform_6(%arg0: i32, %arg1: i32) -> (i32, i32, i32) {
    %c0_i32 = arith.constant 0 : i32
    %c0_i32_0 = arith.constant 0 : i32
    return %arg0, %arg1, %c0_i32 : i32, i32, i32
  }
}

</mosaic_0001>

<bundles_post_ra>
// kernel: tpu_custom_call.1
= control target key start
LH: loop header
LB: loop body
LE: loop exit
PB: predicated region body
PF: predicated region fallthrough
CT: control target
= control target key end

     0   :  { %11 = vsyncpa [#allocation4], 0  ;;  %s7726_s0 = inlined_call_operand.vmem [shape: bf16[2,1,18,18,4], index: 0, kind: input, shape index: {}]   ;;  %s7727_s1 = inlined_call_operand.vmem [shape: f32[256,128], index: 1, kind: input, shape index: {}]   ;;  %s7728_s2 = inlined_call_operand.vmem [shape: bf16[36,128], index: 2, kind: input, shape index: {}]   ;;  %s7729_s3 = inlined_call_operand.vmem [shape: f32[1,128], index: 3, kind: input, shape index: {}]   ;;  %s7730_s4 = inlined_call_operand.vmem [shape: bf16[128,128], index: 4, kind: input, shape index: {}]   ;;  %s7731_s5 = inlined_call_operand.vmem [shape: f32[1,128], index: 5, kind: input, shape index: {}]   ;;  %s7732_s6 = inlined_call_operand.hbm [shape: f32[2,256,128], index: 6, kind: output, shape index: {}]  }
   0x1   :  { %13 = vsyncpa [#allocation4 + $0x1], 0  ;;  %s4720_s21 = smov 0   ;;  %s4722_s22 = smov 0  }
   0x2   :  { %s4724_s23 = smov 0   ;;  %s4726_s24 = smov 0  }
   0x3   :  { %s4728_s25 = smov 0   ;;  %s4730_s26 = smov 0  }
   0x4 LB: > { %s4135_s27 = sadd.s32 4294967295, %s4668_s26   ;;  %s4136_s28 = sadd.s32 4294967294, %s4668_s26   ;;  %s4668_s26 = sphi %s4730_s26, %s19_s26   ;;  %s4664_s25 = sphi %s4728_s25, %s8010_s25   ;;  %s4660_s24 = sphi %s4726_s24, %s8009_s24   ;;  %s4656_s23 = sphi %s4724_s23, %s8008_s23   ;;  %s4652_s22 = sphi %s4722_s22, %s8007_s22   ;;  %s4648_s21 = sphi %s4720_s21, %s8006_s21  }
   0x5   : > { %s31_s29 = sadd.s32 1, %s4664_s25  ;;  %s178_s30 = sadd.s32 1, %s4656_s23 }
   0x6   : > { %p33_p0 = scmp.ge.s32.totalorder %s31_s29, 2  ;;  %p188_p1 = scmp.ne.s32.totalorder %s4656_s23, %s4652_s22 }
   0x7   : > { %p189_p2 = scmp.eq.s32.totalorder %s4135_s27, 1  ;;  %p194_p3 = scmp.ne.s32.totalorder %s4652_s22, %s4648_s21 }
   0x8   : > { %s8012_s29 = smov (%p33_p0, %s31_s29), 0  ;;  %p195_p5 = scmp.eq.s32.totalorder %s4136_s28, 1 }
   0x9   : > { %p4760_p4 = por %p189_p2, %p188_p1  ;;  %s173_s8 = ssub.s32 %s4664_s25, %s8012_s29 }
   0xa   : > { %p4140_p6 = scmp.ge.s32.totalorder %s4668_s26, 1  ;;  %p176_p7 = scmp.eq.s32.totalorder %s173_s8, 0 }
   0xb   : > { %p4767_p8 = por %p195_p5, %p194_p3  ;;  %p246_p9 = scmp.lt.s32.totalorder %s4668_s26, 3 }
   0xc   : > { %s4773_s10 = scalar_select %p176_p7, %s4656_s23, %s178_s30  }
   0xd   : > { %p247_p10 = pnand %p4140_p6, %p246_p9 }
   0xf   : > { %250 = sbr.rel (%p247_p10) target bundleno = 1384 (0x568), region = 44 }
  0x16   : > { %p285_p11 = scmp.lt.s32.totalorder %s4660_s24, 1  ;;  %vm452_vm0 = vcmask 31744   ;;  %vm609_vm1 = vsmask.f32 3328  ;;  %vm610_vm2 = vsmask.f32 7440 }
  0x17   : > { %s4670_s16 = smov 12   ;;  %s4671_s17 = smov 24   ;;  %vm4837_vm3 = vmor %vm609_vm1, %vm610_vm2  ;;  %vm1309_vm4 = vcmask 1042432   ;;  %vm1310_vm5 = vcmask 1046532   ;;  %vm1781_vm7 = vcmask 1041408   ;;  %vm522_vm8 = vcmask 130144  }
  0x18   : > { %s286_s11 = scalar_select %p285_p11, %s4660_s24, 1  ;;  %vm4880_vm6 = vmor %vm1309_vm4, %vm1310_vm5  ;;  %vm592_vm9 = vcmask 228544   ;;  %vm1092_vm10 = vcmask 64544   ;;  %vm1184_vm11 = vcmask 162944   ;;  %vm1276_vm12 = vcmask 261344  }
  0x19   : > { %s4672_s18 = smov 4   ;;  %s4673_s19 = smov 16   ;;  %vm1520_vm13 = vcmask 97344   ;;  %vm1596_vm14 = vcmask 195744   ;;  %vm1672_vm15 = vcmask 294144  }
  0x1a   : > { %s4396_s12 = smul.u32 216, %s286_s11  ;;  %s4674_s28 = smov 28  }
  0x1b   : > { %s4675_s11 = smov 8   ;;  %s4677_s13 = smov 32  }
  0x1c   : > { %s4780_s15 = scalar_lea.vmem %s7726_s0, %s4396_s12  ;;  %s4676_s12 = smov 20  }
  0x1d   : > { %v4783_v0 = vld [vmem:[%s4780_s15 + $0xc] sm:$0xf]  ;;  %v4786_v1 = vld [vmem:[%s4780_s15 + $0x10] sm:$0xf]  ;;  %v4789_v2 = vld [vmem:[%s4780_s15 + $0x18] sm:$0xf] }
  0x1e   : > { %v4144_v3 = vcombine.low %v4783_v0, %v4786_v1  ;;  %v637_v4 = vshrl.u32 %v4783_v0, 16  ;;  %v640_v5 = vshll.u32 %v4783_v0, 16  ;;  %v646_v6 = vshll.u32 %v4786_v1, 16  ;;  %v4797_v7 = vld [vmem:[%s4780_s15 + $0x1c] sm:$0xf]  ;;  %s4249_s8 = sshll.u32 %s4660_s24, 12 }
  0x1f   : > { %v650_v8 = vshrl.u32 %v4786_v1, 16  ;;  %v4145_v9 = vcombine.low %v4789_v2, %v4797_v7  ;;  %v661_v10 = vshrl.u32 %v4789_v2, 16  ;;  %v664_v11 = vshll.u32 %v4789_v2, 16  ;;  %v4805_v12 = vld [vmem:[%s4780_s15 + $0x24] sm:$0xf]  ;;  %s7668_s14 = scalar_lea.hbm %s7732_s6, %s4249_s8 }
  0x20   : > { %v639_v13 = vrot.slane %v637_v4, 4  ;;  %v642_v14 = vrot.slane %v640_v5, 5  ;;  %474 = vrot.lane.b32.xlu0 %v4144_v3, %s4670_s16  ;;  %454 = vst.msk [vmem:[#allocation2 + $0x8] sm:$0xff] %vm452_vm0, %v4144_v3  ;;  %v674_v15 = vshrl.u32 %v4797_v7, 16  ;;  %v4811_v16 = vld [vmem:[%s4780_s15 + $0x28] sm:$0xf] }
  0x21   : > { %v685_v17 = vshrl.u32 %v4805_v12, 16  ;;  %v652_v18 = vrot.slane %v650_v8, 4  ;;  %544 = vrot.lane.b32.xlu1 %v4145_v9, %s4671_s17  ;;  %455 = vst.msk [vmem:[#allocation2 + $0x10] sm:$0xff] %vm452_vm0, %v4145_v9  ;;  %v4818_v19 = vcombine.low %v4805_v12, %v4811_v16  ;;  %v688_v20 = vshll.u32 %v4805_v12, 16  ;;  %v4823_v22 = vld [vmem:[%s4780_s15] sm:$0xf] }
  0x22   : > { %v698_v21 = vshrl.u32 %v4811_v16, 16  ;;  %v4826_v23 = vld [vmem:[%s4780_s15 + $0x4] sm:$0xf]  ;;  %v4829_v24 = vld [vmem:[%s4780_s15 + $0x8] sm:$0x1]  ;;  %v613_v25 = vshrl.u32 %v4823_v22, 16  ;;  %v643_v27 = vor.u32 %v642_v14, %v639_v13 }
  0x23   : > { %v616_v26 = vshll.u32 %v4823_v22, 16  ;;  %456 = vst.msk [vmem:[#allocation2 + $0x18] sm:$0xff] %vm452_vm0, %v4818_v19  ;;  %v622_v29 = vshll.u32 %v4826_v23, 16  ;;  %v626_v30 = vshrl.u32 %v4826_v23, 16  ;;  %v632_v31 = vshll.u32 %v4829_v24, 16 }
  0x24   : > { %v4845_v32 = vld [vmem:[%s4780_s15 + $0x14] sm:$0x1]  ;;  %v648_v33 = vrot.slane %v646_v6, 5  ;;  %476 = vrot.lane.b32.xlu0 %v4145_v9, %s4670_s16  ;;  %v615_v34 = vrot.slane %v613_v25, 4  ;;  %v644_v36 = vrot.slane %v643_v27, 4  ;;  %v663_v46 = vrot.slane %v661_v10, 4 }
  0x25   : > { %v618_v35 = vrot.slane %v616_v26, 5  ;;  %v656_v37 = vshll.u32 %v4845_v32, 16  ;;  %546 = vrot.lane.b32.xlu1 %v4818_v19, %s4671_s17  ;;  %v624_v38 = vrot.slane %v622_v29, 5  ;;  %v628_v39 = vrot.slane %v626_v30, 4  ;;  %v4852_v42 = vld [vmem:[%s4780_s15 + $0x20] sm:$0x1] }
  0x26   : > { %v634_v40 = vrot.slane %v632_v31, 5  ;;  %v653_v41 = vor.u32 %v652_v18, %v648_v33  ;;  %v649_v44 = vsel %vm4837_vm3, %v644_v36, %v648_v33  ;;  %v666_v49 = vrot.slane %v664_v11, 5  ;;  %v4861_v59 = vld [vmem:[%s4780_s15 + $0x2c] sm:$0x1] }
  0x27   : > { %v619_v43 = vor.u32 %v618_v35, %v615_v34  ;;  %v658_v45 = vrot.slane %v656_v37, 5  ;;  %v629_v47 = vor.u32 %v628_v39, %v624_v38  ;;  %v670_v50 = vshll.u32 %v4797_v7, 16 }
  0x28   : > { %v654_v48 = vrot.slane %v653_v41, 4  ;;  %v676_v52 = vrot.slane %v674_v15, 4  ;;  %v680_v53 = vshll.u32 %v4852_v42, 16  ;;  %v687_v54 = vrot.slane %v685_v17, 4  ;;  %v4908_v41 = vld [vmem:[%s4780_s15 + $0x3c] sm:$0xf] }
  0x29   : > { %v620_v51 = vrot.slane %v619_v43, 4  ;;  %v630_v55 = vrot.slane %v629_v47, 4  ;;  %v667_v57 = vor.u32 %v666_v49, %v663_v46  ;;  %v672_v58 = vrot.slane %v670_v50, 5  ;;  %v4917_v47 = vld [vmem:[%s4780_s15 + $0x40] sm:$0xf] }
  0x2a   : > { %v659_v56 = vsel %vm4837_vm3, %v654_v48, %v658_v45  ;;  %v682_v62 = vrot.slane %v680_v53, 5  ;;  %v690_v63 = vrot.slane %v688_v20, 5  ;;  %v694_v6 = vshll.u32 %v4811_v16, 16 }
  0x2b   : > { %v625_v60 = vsel %vm4837_vm3, %v620_v51, %v624_v38  ;;  %v4162_v61 = vcombine.low %v649_v44, %v659_v56  ;;  %v635_v3 = vsel %vm4837_vm3, %v630_v55, %v634_v40  ;;  %v668_v4 = vrot.slane %v667_v57, 4  ;;  %v4892_v38 = vld [vmem:[%s4780_s15 + $0x30] sm:$0xf]  ;;  %v4478_v56 = vld [vmem:[%s7728_s2 + $0x8] sm:$0xff]  }
  0x2c   : > { %v677_v5 = vor.u32 %v676_v52, %v672_v58  ;;  %v4161_v8 = vcombine.low %v625_v60, %v635_v3  ;;  %v691_v9 = vor.u32 %v690_v63, %v687_v54  ;;  %v700_v10 = vrot.slane %v698_v21, 4 }
  0x2d   : > { %1046 = vrot.lane.b32.xlu1 %v4162_v61, %s4672_s18  ;;  %v704_v11 = vshll.u32 %v4861_v59, 16  ;;  %v673_v13 = vsel %vm4837_vm3, %v668_v4, %v672_v58  ;;  %v696_v15 = vrot.slane %v694_v6, 5  ;;  %v4179_v17 = vrot.slane %v4823_v22, 9 }
  0x2e   : > { %v678_v14 = vrot.slane %v677_v5, 4  ;;  %1044 = vrot.lane.b32.xlu0 %v4161_v8, %s4672_s18  ;;  %v692_v18 = vrot.slane %v691_v9, 4  ;;  %v1314_v25 = vrot.slane %v4826_v23, 5  ;;  %v1317_v26 = vrot.slane %v4829_v24, 5  ;;  %v4967_v9 = vld [vmem:[%s4780_s15 + $0x48] sm:$0xf] }
  0x2f   : > { %v706_v20 = vrot.slane %v704_v11, 5  ;;  %v701_v27 = vor.u32 %v700_v10, %v696_v15  ;;  %v4180_v30 = vrot.slane %v4783_v0, 9  ;;  %v1321_v31 = vrot.slane %v4786_v1, 5 }
  0x30   : > { %v683_v21 = vsel %vm4837_vm3, %v678_v14, %v682_v62  ;;  %v1316_v34 = vrot.slane %v1314_v25, 4  ;;  %v697_v24 = vsel %vm4837_vm3, %v692_v18, %v696_v15  ;;  %v1324_v37 = vrot.slane %v4845_v32, 5  ;;  %v4905_v32 = vld [vmem:[%s4780_s15 + $0x34] sm:$0xf]  ;;  %v4973_v15 = vld [vmem:[%s4780_s15 + $0x4c] sm:$0xf] }
  0x31   : > { %v4886_v33 = vcombine.low %v673_v13, %v683_v21  ;;  %v702_v35 = vrot.slane %v701_v27, 4  ;;  %v1323_v36 = vrot.slane %v1321_v31, 4  ;;  %v1315_v0 = vsel %vm4880_vm6, %v4179_v17, %v1314_v25  ;;  %v4986_v21 = vld [vmem:[%s4780_s15 + $0x54] sm:$0xf]  ;;  %v4989_v27 = vld [vmem:[%s4780_s15 + $0x58] sm:$0xf] }
  0x32   : > { %1136 = vrot.lane.b32.xlu0 %v4162_v61, %s4673_s19  ;;  %v1318_v1 = vsel %vm4880_vm6, %v1316_v34, %v1317_v26  ;;  %v1322_v39 = vsel %vm4880_vm6, %v4180_v30, %v1321_v31  ;;  %v1328_v40 = vrot.slane %v4797_v7, 5  ;;  %v4181_v45 = vrot.slane %v4789_v2, 9  ;;  %v4477_v7 = vld [vmem:[%s7728_s2] sm:$0xff]   ;;  %v4954_v61 = vld [vmem:[%s4780_s15 + $0x38] sm:$0x1] }
  0x33   : > { %1138 = vrot.lane.b32.xlu1 %v4886_v33, %s4673_s19  ;;  %v707_v43 = vsel %vm4837_vm3, %v702_v35, %v706_v20  ;;  %v1325_v44 = vsel %vm4880_vm6, %v1323_v36, %v1324_v37  ;;  %v1331_v46 = vrot.slane %v4852_v42, 5  ;;  %v1335_v50 = vrot.slane %v4811_v16, 5  ;;  %4293 = vmatprep.subr.bf16.mxu0 %v4477_v7 }
  0x34   : > { %v4922_v48 = vcombine.low %v697_v24, %v707_v43  ;;  %v1330_v49 = vrot.slane %v1328_v40, 4  ;;  %v4927_v51 = vcombine.low %v4892_v38, %v4905_v32  ;;  %v709_v52 = vshrl.u32 %v4892_v38, 16  ;;  %4294 = vmatpush3.bf16.msra.mxu0 %v4477_v7  ;;  %v4994_v24 = vld [vmem:[%s4780_s15 + $0x44] sm:$0x1] }
  0x35   : > { %v4195_v2 = vcombine.low %v1315_v0, %v1318_v1  ;;  %v4196_v42 = vcombine.low %v1322_v39, %v1325_v44  ;;  %v712_v53 = vshll.u32 %v4892_v38, 16  ;;  %v4937_v16 = vcombine.low %v4908_v41, %v4917_v47  ;;  %4295 = vmatprep.subr.bf16.mxu0 %v4478_v56 }
  0x36   : > { %1228 = vrot.lane.b32.xlu0 %v4886_v33, %s4674_s28  ;;  %v1329_v54 = vsel %vm4880_vm6, %v4181_v45, %v1328_v40  ;;  %v1332_v55 = vsel %vm4880_vm6, %v1330_v49, %v1331_v46  ;;  %457 = vst.msk [vmem:[#allocation2 + $0x20] sm:$0xff] %vm452_vm0, %v4927_v51  ;;  %v4182_v57 = vrot.slane %v4805_v12, 9  ;;  %v1338_v58 = vrot.slane %v4861_v59, 5 }
  0x37   : > { %1230 = vrot.lane.b32.xlu1 %v4922_v48, %s4674_s28  ;;  %v722_v60 = vshrl.u32 %v4905_v32, 16  ;;  %458 = vst.msk [vmem:[#allocation2 + $0x28] sm:$0xff] %vm452_vm0, %v4937_v16  ;;  %v1337_v62 = vrot.slane %v1335_v50, 4  ;;  %v733_v63 = vshrl.u32 %v4908_v41, 16  ;;  %v711_v3 = vrot.slane %v709_v52, 4 }
  0x38   : > { %v714_v4 = vrot.slane %v712_v53, 5  ;;  %v4959_v12 = vcombine.low %v1329_v54, %v1332_v55  ;;  %v736_v59 = vshll.u32 %v4908_v41, 16  ;;  %v718_v5 = vshll.u32 %v4905_v32, 16  ;;  %4296 = vmatpush3.bf16.msra.mxu0 %v4478_v56  ;;  %v5031_v53 = vld [vmem:[%s4780_s15 + $0x50] sm:$0x1] }
  0x39   : > { %v1336_v6 = vsel %vm4880_vm6, %v4182_v57, %v1335_v50  ;;  %v746_v8 = vshrl.u32 %v4917_v47, 16  ;;  %v1339_v10 = vsel %vm4880_vm6, %v1337_v62, %v1338_v58  ;;  %v724_v13 = vrot.slane %v722_v60, 4  ;;  %v5037_v60 = vld [vmem:[%s4780_s15 + $0x5c] sm:$0x1] }
  0x3a   : > { %1472 = vrot.lane.b32.xlu0 %v4195_v2, %s4675_s11  ;;  %v715_v11 = vor.u32 %v714_v4, %v711_v3  ;;  %v728_v14 = vshll.u32 %v4954_v61, 16  ;;  %v4978_v17 = vrot.slane %v718_v5, 5  ;;  %v735_v18 = vrot.slane %v733_v63, 4 }
  0x3b   : > { %1474 = vrot.lane.b32.xlu1 %v4196_v42, %s4675_s11  ;;  %v738_v20 = vrot.slane %v736_v59, 5  ;;  %v742_v25 = vshll.u32 %v4917_v47, 16  ;;  %v4983_v26 = vcombine.low %v4967_v9, %v4973_v15  ;;  %v4991_v30 = vcombine.low %v1336_v6, %v1339_v10  ;;  %v5045_v6 = vld [vmem:[%s4780_s15 + $0x60] sm:$0xf] }
  0x3c   : > { %v716_v31 = vrot.slane %v715_v11, 4  ;;  %v730_v34 = vrot.slane %v728_v14, 5  ;;  %v725_v35 = vor.u32 %v724_v13, %v4978_v17  ;;  %v748_v0 = vrot.slane %v746_v8, 4  ;;  %v5056_v13 = vld [vmem:[%s4780_s15 + $0x64] sm:$0xf] }
  0x3d   : > { %v739_v36 = vor.u32 %v738_v20, %v735_v18  ;;  %v5001_v37 = vrot.slane %v742_v25, 5  ;;  %459 = vst.msk [vmem:[#allocation2 + $0x30] sm:$0xff] %vm452_vm0, %v4983_v26  ;;  %v757_v1 = vshrl.u32 %v4967_v9, 16  ;;  %v760_v39 = vshll.u32 %v4967_v9, 16 }
  0x3e   : > { %1548 = vrot.lane.b32.xlu0 %v4196_v42, %s4676_s12  ;;  %v770_v40 = vshrl.u32 %v4973_v15, 16  ;;  %v5010_v43 = vcombine.low %v4986_v21, %v4989_v27  ;;  %v4183_v44 = vrot.slane %v4892_v38, 9  ;;  %v781_v45 = vshrl.u32 %v4986_v21, 16 }
  0x3f   : > { %1550 = vrot.lane.b32.xlu1 %v4959_v12, %s4676_s12  ;;  %v784_v46 = vshll.u32 %v4986_v21, 16  ;;  %v721_v7 = vsel %vm4837_vm3, %v716_v31, %v4978_v17  ;;  %v1342_v49 = vrot.slane %v4905_v32, 5  ;;  %v1345_v50 = vrot.slane %v4954_v61, 5 }
  0x40   : > { %v794_v52 = vshrl.u32 %v4989_v27, 16  ;;  %460 = vst.msk [vmem:[#allocation2 + $0x38] sm:$0xff] %vm452_vm0, %v5010_v43  ;;  %v726_v38 = vrot.slane %v725_v35, 4  ;;  %v740_v2 = vrot.slane %v739_v36, 4  ;;  %v749_v42 = vor.u32 %v748_v0, %v5001_v37 }
  0x41   : > { %v766_v32 = vshll.u32 %v4973_v15, 16  ;;  %v759_v54 = vrot.slane %v757_v1, 4  ;;  %v762_v55 = vrot.slane %v760_v39, 5  ;;  %v772_v56 = vrot.slane %v770_v40, 4  ;;  %v5077_v1 = vld [vmem:[%s4780_s15 + $0x70] sm:$0xf] }
  0x42   : > { %1624 = vrot.lane.b32.xlu0 %v4959_v12, %s4677_s13  ;;  %v790_v57 = vshll.u32 %v4989_v27, 16  ;;  %v783_v61 = vrot.slane %v781_v45, 4  ;;  %v786_v62 = vrot.slane %v784_v46, 5  ;;  %v796_v63 = vrot.slane %v794_v52, 4 }
  0x43   : > { %478 = vrot.lane.b32.xlu1 %v4818_v19, %s4670_s16  ;;  %v752_v19 = vshll.u32 %v4994_v24, 16  ;;  %v5034_v58 = vrot.slane %v766_v32, 5  ;;  %v1343_v4 = vsel %vm4880_vm6, %v4183_v44, %v1342_v49  ;;  %v4184_v59 = vrot.slane %v4908_v41, 9 }
  0x44   : > { %v5042_v5 = vrot.slane %v790_v57, 5  ;;  %v731_v8 = vsel %vm4837_vm3, %v726_v38, %v730_v34  ;;  %v750_v10 = vrot.slane %v749_v42, 4  ;;  %v1349_v11 = vrot.slane %v4917_v47, 5 }
  0x45   : > { %v754_v3 = vrot.slane %v752_v19, 5  ;;  %v776_v41 = vshll.u32 %v5031_v53, 16  ;;  %v1344_v14 = vrot.slane %v1342_v49, 4  ;;  %v763_v17 = vor.u32 %v762_v55, %v759_v54 }
  0x46   : > { %1626 = vrot.lane.b32.xlu0 %v4991_v30, %s4677_s13  ;;  %v773_v18 = vor.u32 %v772_v56, %v5034_v58  ;;  %v745_v20 = vsel %vm4837_vm3, %v740_v2, %v5001_v37  ;;  %v787_v25 = vor.u32 %v786_v62, %v783_v61  ;;  %v797_v31 = vor.u32 %v796_v63, %v5042_v5 }
  0x47   : > { %480 = vrot.lane.b32.xlu1 %v4927_v51, %s4670_s16  ;;  %v800_v47 = vshll.u32 %v5037_v60, 16  ;;  %v5065_v34 = vcombine.low %v721_v7, %v731_v8  ;;  %v1352_v35 = vrot.slane %v4994_v24, 5  ;;  %v1363_v36 = vrot.slane %v4989_v27, 5 }
  0x48   : > { %v5071_v0 = vcombine.low %v5045_v6, %v5056_v13  ;;  %v755_v37 = vsel %vm4837_vm3, %v750_v10, %v754_v3  ;;  %v1351_v24 = vrot.slane %v1349_v11, 4  ;;  %v778_v39 = vrot.slane %v776_v41, 5  ;;  %v5154_v41 = vld [vmem:[%s4780_s15 + $0x78] sm:$0xf] }
  0x49   : > { %v4185_v27 = vrot.slane %v4967_v9, 9  ;;  %v764_v40 = vrot.slane %v763_v17, 4  ;;  %v774_v19 = vrot.slane %v773_v18, 4  ;;  %v1359_v45 = vrot.slane %v5031_v53, 5 }
  0x4a   : > { %548 = vrot.lane.b32.xlu0 %v4927_v51, %s4671_s17  ;;  %v1356_v51 = vrot.slane %v4973_v15, 5  ;;  %v5074_v15 = vld [vmem:[%s4780_s15 + $0x6c] sm:$0xf]  ;;  %461 = vst.msk [vmem:[#allocation2 + $0x40] sm:$0xff] %vm452_vm0, %v5071_v0  ;;  %v788_v46 = vrot.slane %v787_v25, 4  ;;  %v802_v7 = vrot.slane %v800_v47, 5  ;;  %v1346_v52 = vsel %vm4880_vm6, %v1344_v14, %v1345_v50 }
  0x4b   : > { %550 = vrot.lane.b32.xlu1 %v4937_v16, %s4671_s17  ;;  %v5091_v49 = vcombine.low %v5074_v15, %v5077_v1  ;;  %v4186_v9 = vrot.slane %v4986_v21, 9  ;;  %v1365_v38 = vrot.slane %v1363_v36, 4  ;;  %v1366_v2 = vrot.slane %v5037_v60, 5 }
  0x4c   : > { %v1358_v44 = vrot.slane %v1356_v51, 4  ;;  %v5101_v42 = vcombine.low %v745_v20, %v755_v37  ;;  %v1350_v32 = vsel %vm4880_vm6, %v4184_v59, %v1349_v11  ;;  %v1353_v53 = vsel %vm4880_vm6, %v1351_v24, %v1352_v35 }
  0x4d   : > { %462 = vst.msk [vmem:[#allocation2 + $0x48] sm:$0xff] %vm452_vm0, %v5091_v49  ;;  %v769_v21 = vsel %vm4837_vm3, %v764_v40, %v5034_v58  ;;  %v1357_v50 = vsel %vm4880_vm6, %v4185_v27, %v1356_v51  ;;  %v5118_v55 = vcombine.low %v1343_v4, %v1346_v52  ;;  %v793_v56 = vsel %vm4837_vm3, %v788_v46, %v5042_v5  ;;  %v5144_v5 = vld [vmem:[%s4780_s15 + $0x68] sm:$0x1]  ;;  %v5162_v51 = vld [vmem:[%s4780_s15 + $0x7c] sm:$0xf] }
  0x4e   : > { %1048 = vrot.lane.b32.xlu0 %v4886_v33, %s4672_s18  ;;  %v798_v33 = vrot.slane %v797_v31, 4  ;;  %v1360_v54 = vsel %vm4880_vm6, %v1358_v44, %v1359_v45  ;;  %v805_v58 = vshrl.u32 %v5045_v6, 16  ;;  %v1364_v60 = vsel %vm4880_vm6, %v4186_v9, %v1363_v36  ;;  %v5169_v31 = vld [vmem:[%s4780_s15 + $0x74] sm:$0x1]  ;;  %v5191_v44 = vld [vmem:[%s4780_s15 + $0x84] sm:$0xf] }
  0x4f   : > { %1050 = vrot.lane.b32.xlu1 %v4922_v48, %s4672_s18  ;;  %v1367_v61 = vsel %vm4880_vm6, %v1365_v38, %v1366_v2  ;;  %v808_v62 = vshll.u32 %v5045_v6, 16  ;;  %v4143_v63 = vcombine.low %v4823_v22, %v4826_v23  ;;  %v5137_v3 = vcombine.low %v1350_v32, %v1353_v53 }
  0x50   : > { %v803_v57 = vsel %vm4837_vm3, %v798_v33, %v802_v7  ;;  %v5141_v59 = vcombine.low %v1357_v50, %v1360_v54  ;;  %v4187_v8 = vrot.slane %v5045_v6, 9  ;;  %v818_v22 = vshrl.u32 %v5056_v13, 16 }
  0x51   : > { %v5147_v10 = vcombine.low %v793_v56, %v803_v57  ;;  %453 = vst.msk [vmem:[#allocation2] sm:$0xff] %vm452_vm0, %v4143_v63  ;;  %v1370_v23 = vrot.slane %v5056_v13, 5  ;;  %v1373_v11 = vrot.slane %v5144_v5, 5  ;;  %v5156_v14 = vcombine.low %v1364_v60, %v1367_v61  ;;  %v4479_v57 = vld [vmem:[%s7728_s2 + $0x10] ss:$0 sps:$4 sm:$0x33]  }
  0x52   : > { %1140 = vrot.lane.b32.xlu0 %v4922_v48, %s4673_s19  ;;  %v779_v48 = vsel %vm4837_vm3, %v774_v19, %v778_v39  ;;  %v829_v17 = vshrl.u32 %v5074_v15, 16  ;;  %v832_v18 = vshll.u32 %v5074_v15, 16  ;;  %v842_v6 = vshrl.u32 %v5077_v1, 16  ;;  %v337_v63 = vld [vmem:[%s4780_s15 + $0x8c] sm:$0x1]  ;;  %4395 = vmatprep.subr.msk.bf16.mxu0 %vm1781_vm7, %v4479_v57 }
  0x53   : > { %1142 = vrot.lane.b32.xlu1 %v5065_v34, %s4673_s19  ;;  %v5139_v4 = vcombine.low %v769_v21, %v779_v48  ;;  %v5164_v20 = vrot.slane %v805_v58, 4  ;;  %v5166_v25 = vrot.slane %v808_v62, 5  ;;  %v1371_v47 = vsel %vm4880_vm6, %v4187_v8, %v1370_v23  ;;  %v5222_v48 = vld [vmem:[%s4780_s15 + $0x80] sm:$0x1] }
  0x54   : > { %v1372_v35 = vrot.slane %v1370_v23, 4  ;;  %v814_v36 = vshll.u32 %v5056_v13, 16  ;;  %v4188_v37 = vrot.slane %v5074_v15, 9  ;;  %v1377_v24 = vrot.slane %v5077_v1, 5  ;;  %v5194_v13 = vld [vmem:[%s4780_s15 + $0x88] sm:$0xf] }
  0x55   : > { %v1380_v39 = vrot.slane %v5169_v31, 5  ;;  %v5181_v27 = vrot.slane %v818_v22, 4  ;;  %v5196_v15 = vrot.slane %v829_v17, 4  ;;  %v5202_v7 = vrot.slane %v832_v18, 5 }
  0x56   : > { %1232 = vrot.lane.b32.xlu0 %v5065_v34, %s4674_s28  ;;  %v1374_v19 = vsel %vm4880_vm6, %v1372_v35, %v1373_v11  ;;  %v1378_v46 = vsel %vm4880_vm6, %v4188_v37, %v1377_v24  ;;  %v1379_v33 = vrot.slane %v1377_v24, 4  ;;  %v853_v52 = vshrl.u32 %v5154_v41, 16 }
  0x57   : > { %1234 = vrot.lane.b32.xlu1 %v5101_v42, %s4674_s28  ;;  %v5198_v45 = vcombine.low %v1371_v47, %v1374_v19  ;;  %v856_v9 = vshll.u32 %v5154_v41, 16  ;;  %v866_v38 = vshrl.u32 %v5162_v51, 16  ;;  %v5217_v32 = vcombine.low %v5191_v44, %v5194_v13 }
  0x58   : > { %v1381_v2 = vsel %vm4880_vm6, %v1379_v33, %v1380_v39  ;;  %v877_v53 = vshrl.u32 %v5191_v44, 16  ;;  %v880_v21 = vshll.u32 %v5191_v44, 16  ;;  %v838_v50 = vshll.u32 %v5077_v1, 16 }
  0x59   : > { %v5227_v54 = vcombine.low %v1378_v46, %v1381_v2  ;;  %v890_v56 = vshrl.u32 %v5194_v13, 16  ;;  %464 = vst.msk [vmem:[#allocation2 + $0x58] sm:$0xff] %vm452_vm0, %v5217_v32  ;;  %v855_v58 = vrot.slane %v853_v52, 4  ;;  %v858_v60 = vrot.slane %v856_v9, 5 }
  0x5a   : > { %1476 = vrot.lane.b32.xlu0 %v4959_v12, %s4675_s11  ;;  %v5188_v12 = vcombine.low %v5154_v41, %v5162_v51  ;;  %v862_v61 = vshll.u32 %v5162_v51, 16  ;;  %v868_v62 = vrot.slane %v866_v38, 4  ;;  %v5237_v8 = vrot.slane %v814_v36, 5 }
  0x5b   : > { %1478 = vrot.lane.b32.xlu1 %v4991_v30, %s4675_s11  ;;  %v872_v22 = vshll.u32 %v5222_v48, 16  ;;  %v879_v23 = vrot.slane %v877_v53, 4  ;;  %v882_v11 = vrot.slane %v880_v21, 5  ;;  %v859_v17 = vor.u32 %v858_v60, %v855_v58 }
  0x5c   : > { %463 = vst.msk [vmem:[#allocation2 + $0x50] sm:$0xff] %vm452_vm0, %v5188_v12  ;;  %v864_v18 = vrot.slane %v862_v61, 5  ;;  %v886_v47 = vshll.u32 %v5194_v13, 16  ;;  %v892_v35 = vrot.slane %v890_v56, 4  ;;  %v5245_v37 = vrot.slane %v842_v6, 4 }
  0x5d   : > { %v883_v24 = vor.u32 %v882_v11, %v879_v23  ;;  %v896_v36 = vshll.u32 %v337_v63, 16  ;;  %v860_v39 = vrot.slane %v859_v17, 4  ;;  %v874_v46 = vrot.slane %v872_v22, 5  ;;  %v5256_v56 = vld [vmem:[%s4780_s15 + $0x90] sm:$0xf] }
  0x5e   : > { %1552 = vrot.lane.b32.xlu0 %v4991_v30, %s4676_s12  ;;  %v869_v19 = vor.u32 %v868_v62, %v864_v18  ;;  %v888_v33 = vrot.slane %v886_v47, 5  ;;  %v4189_v38 = vrot.slane %v5154_v41, 9  ;;  %v1384_v21 = vrot.slane %v5162_v51, 5  ;;  %v5264_v61 = vld [vmem:[%s4780_s15 + $0x94] sm:$0xf] }
  0x5f   : > { %1554 = vrot.lane.b32.xlu1 %v5118_v55, %s4676_s12  ;;  %v884_v52 = vrot.slane %v883_v24, 4  ;;  %v898_v9 = vrot.slane %v896_v36, 5  ;;  %v865_v6 = vsel %vm4837_vm3, %v860_v39, %v864_v18  ;;  %v4190_v58 = vrot.slane %v5191_v44, 9  ;;  %v5275_v18 = vld [vmem:[%s4780_s15 + $0x9c] sm:$0xf] }
  0x60   : > { %v870_v2 = vrot.slane %v869_v19, 4  ;;  %v893_v53 = vor.u32 %v892_v35, %v888_v33  ;;  %v1391_v60 = vrot.slane %v5194_v13, 5  ;;  %v1385_v22 = vsel %vm4880_vm6, %v4189_v38, %v1384_v21  ;;  %v5278_v13 = vld [vmem:[%s4780_s15 + $0xa0] sm:$0xf] }
  0x61   : > { %v889_v41 = vsel %vm4837_vm3, %v884_v52, %v888_v33  ;;  %v1386_v23 = vrot.slane %v1384_v21, 4  ;;  %v1394_v44 = vrot.slane %v337_v63, 5  ;;  %v5290_v24 = vcombine.low %v5256_v56, %v5264_v61  ;;  %v343_v21 = vld [vmem:[%s4780_s15 + $0xa4] sm:$0x1] }
  0x62   : > { %1628 = vrot.lane.b32.xlu0 %v5118_v55, %s4677_s13  ;;  %v875_v62 = vsel %vm4837_vm3, %v870_v2, %v874_v46  ;;  %v894_v51 = vrot.slane %v893_v53, 4  ;;  %v1393_v17 = vrot.slane %v1391_v60, 4  ;;  %v901_v63 = vshrl.u32 %v5256_v56, 16  ;;  %v340_v46 = vld [vmem:[%s4780_s15 + $0x98] sm:$0x1] }
  0x63   : > { %482 = vrot.lane.b32.xlu1 %v4937_v16, %s4670_s16  ;;  %v1783_v16 = vsel %vm1781_vm7, %v4479_v57, 0  ;;  %v1387_v57 = vrot.slane %v5222_v48, 5  ;;  %v5270_v11 = vcombine.low %v865_v6, %v875_v62  ;;  %v1392_v48 = vsel %vm4880_vm6, %v4190_v58, %v1391_v60  ;;  %465 = vst.msk [vmem:[#allocation2 + $0x60] sm:$0xff] %vm452_vm0, %v5290_v24 }
  0x64   : > { %4298 = vmatpush3.bf16.msra.mxu0 %v1783_v16  ;;  %v899_v47 = vsel %vm4837_vm3, %v894_v51, %v898_v9  ;;  %v904_v19 = vshll.u32 %v5256_v56, 16  ;;  %v914_v52 = vshrl.u32 %v5264_v61, 16  ;;  %v5308_v9 = vcombine.low %v5275_v18, %v5278_v13 }
  0x65   : > { %v1388_v35 = vsel %vm4880_vm6, %v1386_v23, %v1387_v57  ;;  %v5293_v36 = vcombine.low %v889_v41, %v899_v47  ;;  %v925_v16 = vshrl.u32 %v5275_v18, 16  ;;  %v928_v38 = vshll.u32 %v5275_v18, 16 }
  0x66   : > { %1630 = vrot.lane.b32.xlu0 %v5137_v3, %s4677_s13  ;;  %v5295_v39 = vcombine.low %v1385_v22, %v1388_v35  ;;  %v938_v6 = vshrl.u32 %v5278_v13, 16  ;;  %v903_v2 = vrot.slane %v901_v63, 4  ;;  %v906_v53 = vrot.slane %v904_v19, 5  ;;  %466 = vst.msk [vmem:[#allocation2 + $0x68] sm:$0xff] %vm452_vm0, %v5308_v9  ;;  %v5325_v19 = vld [vmem:[%s4780_s15 + $0xa8] sm:$0xf] }
  0x67   : > { %484 = vrot.lane.b32.xlu1 %v4983_v26, %s4670_s16  ;;  %v910_v41 = vshll.u32 %v5264_v61, 16  ;;  %v916_v57 = vrot.slane %v914_v52, 4  ;;  %v920_v58 = vshll.u32 %v340_v46, 16  ;;  %v927_v60 = vrot.slane %v925_v16, 4 }
  0x68   : > { %v907_v62 = vor.u32 %v906_v53, %v903_v2  ;;  %v930_v51 = vrot.slane %v928_v38, 5  ;;  %v934_v22 = vshll.u32 %v5278_v13, 16  ;;  %v940_v23 = vrot.slane %v938_v6, 4  ;;  %v5333_v2 = vld [vmem:[%s4780_s15 + $0xac] sm:$0xf] }
  0x69   : > { %v1401_v38 = vrot.slane %v340_v46, 5  ;;  %v4192_v6 = vrot.slane %v5275_v18, 9 }
  0x6a   : > { %552 = vrot.lane.b32.xlu0 %v4983_v26, %s4671_s17  ;;  %v1395_v26 = vsel %vm4880_vm6, %v1393_v17, %v1394_v44  ;;  %v944_v17 = vshll.u32 %v343_v21, 16  ;;  %v4191_v44 = vrot.slane %v5256_v56, 9  ;;  %v908_v47 = vrot.slane %v907_v62, 4 }
  0x6b   : > { %554 = vrot.lane.b32.xlu1 %v5010_v43, %s4671_s17  ;;  %v5301_v33 = vcombine.low %v1392_v48, %v1395_v26  ;;  %v912_v48 = vrot.slane %v910_v41, 5  ;;  %v931_v35 = vor.u32 %v930_v51, %v927_v60  ;;  %v936_v63 = vrot.slane %v934_v22, 5 }
  0x6c   : > { %v1398_v26 = vrot.slane %v5264_v61, 5  ;;  %v946_v16 = vrot.slane %v944_v17, 5  ;;  %v1405_v60 = vrot.slane %v5278_v13, 5  ;;  %v1408_v62 = vrot.slane %v343_v21, 5 }
  0x6d   : > { %v917_v52 = vor.u32 %v916_v57, %v912_v48  ;;  %v913_v56 = vsel %vm4837_vm3, %v908_v47, %v912_v48  ;;  %v932_v53 = vrot.slane %v931_v35, 4  ;;  %v941_v61 = vor.u32 %v940_v23, %v936_v63  ;;  %v348_v35 = vld [vmem:[%s4780_s15 + $0xb8] sm:$0xf] }
  0x6e   : > { %1052 = vrot.lane.b32.xlu0 %v5065_v34, %s4672_s18  ;;  %v922_v34 = vrot.slane %v920_v58, 5  ;;  %v1399_v41 = vsel %vm4880_vm6, %v4191_v44, %v1398_v26  ;;  %v5344_v57 = vcombine.low %v5325_v19, %v5333_v2  ;;  %v949_v51 = vshrl.u32 %v5325_v19, 16 }
  0x6f   : > { %1054 = vrot.lane.b32.xlu1 %v5101_v42, %s4672_s18  ;;  %v918_v58 = vrot.slane %v917_v52, 4  ;;  %v937_v46 = vsel %vm4837_vm3, %v932_v53, %v936_v63  ;;  %v942_v18 = vrot.slane %v941_v61, 4  ;;  %v1406_v22 = vsel %vm4880_vm6, %v4192_v6, %v1405_v60  ;;  %v346_v6 = vld [vmem:[%s4780_s15 + $0xb0] sm:$0x1] }
  0x70   : > { %v1407_v23 = vrot.slane %v1405_v60, 4  ;;  %v951_v47 = vrot.slane %v949_v51, 4  ;;  %467 = vst.msk [vmem:[#allocation2 + $0x70] sm:$0xff] %vm452_vm0, %v5344_v57  ;;  %v952_v52 = vshll.u32 %v5325_v19, 16  ;;  %v4193_v53 = vrot.slane %v5325_v19, 9 }
  0x71   : > { %v923_v13 = vsel %vm4837_vm3, %v918_v58, %v922_v34  ;;  %v947_v17 = vsel %vm4837_vm3, %v942_v18, %v946_v16  ;;  %v347_v34 = vld [vmem:[%s4780_s15 + $0xb4] sm:$0xf]  ;;  %v962_v16 = vshrl.u32 %v5333_v2, 16  ;;  %v1412_v61 = vrot.slane %v5333_v2, 5 }
  0x72   : > { %1144 = vrot.lane.b32.xlu0 %v5101_v42, %s4673_s19  ;;  %v1400_v42 = vrot.slane %v1398_v26, 4  ;;  %v5357_v48 = vcombine.low %v913_v56, %v923_v13  ;;  %v5367_v63 = vcombine.low %v937_v46, %v947_v17  ;;  %v1409_v26 = vsel %vm4880_vm6, %v1407_v23, %v1408_v62 }
  0x73   : > { %1146 = vrot.lane.b32.xlu1 %v5139_v4, %s4673_s19  ;;  %v5374_v56 = vcombine.low %v1406_v22, %v1409_v26  ;;  %v954_v58 = vrot.slane %v952_v52, 5  ;;  %v5384_v60 = vcombine.low %v347_v34, %v348_v35  ;;  %v973_v62 = vshrl.u32 %v347_v34, 16 }
  0x74   : > { %v1402_v21 = vsel %vm4880_vm6, %v1400_v42, %v1401_v38  ;;  %v958_v38 = vshll.u32 %v5333_v2, 16  ;;  %v964_v46 = vrot.slane %v962_v16, 4  ;;  %v976_v18 = vshll.u32 %v347_v34, 16 }
  0x75   : > { %v5361_v44 = vcombine.low %v1399_v41, %v1402_v21  ;;  %v349_v41 = vld [vmem:[%s4780_s15 + $0xbc] sm:$0x1]  ;;  %v986_v51 = vshrl.u32 %v348_v35, 16  ;;  %v968_v13 = vshll.u32 %v346_v6, 16  ;;  %468 = vst.msk [vmem:[#allocation2 + $0x78] sm:$0xff] %vm452_vm0, %v5384_v60  ;;  %v955_v19 = vor.u32 %v954_v58, %v951_v47 }
  0x76   : > { %1236 = vrot.lane.b32.xlu0 %v5139_v4, %s4674_s28  ;;  %v960_v42 = vrot.slane %v958_v38, 5  ;;  %v975_v2 = vrot.slane %v973_v62, 4  ;;  %v982_v21 = vshll.u32 %v348_v35, 16  ;;  %v992_v22 = vshll.u32 %v349_v41, 16 }
  0x77   : > { %1238 = vrot.lane.b32.xlu1 %v5147_v10, %s4674_s28  ;;  %v970_v23 = vrot.slane %v968_v13, 5  ;;  %v978_v17 = vrot.slane %v976_v18, 5  ;;  %v988_v26 = vrot.slane %v986_v51, 4  ;;  %v840_v52 = vrot.slane %v838_v50, 5 }
  0x78   : > { %v956_v38 = vrot.slane %v955_v19, 4  ;;  %v984_v16 = vrot.slane %v982_v21, 5  ;;  %v1413_v47 = vsel %vm4880_vm6, %v4193_v53, %v1412_v61  ;;  %v1415_v13 = vrot.slane %v346_v6, 5 }
  0x79   : > { %v979_v62 = vor.u32 %v978_v17, %v975_v2  ;;  %v1419_v30 = vrot.slane %v348_v35, 5  ;;  %v4194_v19 = vrot.slane %v347_v34, 9  ;;  %v1422_v21 = vrot.slane %v349_v41, 5 }
  0x7a   : > { %1480 = vrot.lane.b32.xlu0 %v5118_v55, %s4675_s11  ;;  %v965_v55 = vor.u32 %v964_v46, %v960_v42  ;;  %v1414_v46 = vrot.slane %v1412_v61, 4  ;;  %v961_v18 = vsel %vm4837_vm3, %v956_v38, %v960_v42  ;;  %v989_v51 = vor.u32 %v988_v26, %v984_v16 }
  0x7b   : > { %1482 = vrot.lane.b32.xlu1 %v5137_v3, %s4675_s11  ;;  %v980_v1 = vrot.slane %v979_v62, 4  ;;  %v1421_v35 = vrot.slane %v1419_v30, 4  ;;  %v821_v42 = vor.u32 %v5181_v27, %v5237_v8  ;;  %v1420_v34 = vsel %vm4880_vm6, %v4194_v19, %v1419_v30 }
  0x7c   : > { %v966_v58 = vrot.slane %v965_v55, 4  ;;  %v1416_v50 = vsel %vm4880_vm6, %v1414_v46, %v1415_v13  ;;  %v990_v53 = vrot.slane %v989_v51, 4  ;;  %v7838_v27 = vshll.u32 %v5144_v5, 16 }
  0x7d   : > { %v5408_v61 = vcombine.low %v1413_v47, %v1416_v50  ;;  %v985_v2 = vsel %vm4837_vm3, %v980_v1, %v984_v16  ;;  %v848_v30 = vshll.u32 %v5169_v31, 16  ;;  %v822_v26 = vrot.slane %v821_v42, 4 }
  0x7e   : > { %1556 = vrot.lane.b32.xlu0 %v5137_v3, %s4676_s12  ;;  %v994_v3 = vrot.slane %v992_v22, 5  ;;  %v971_v40 = vsel %vm4837_vm3, %v966_v58, %v970_v23  ;;  %v826_v55 = vrot.slane %v7838_v27, 5  ;;  %v7839_v23 = vor.u32 %v5166_v25, %v5164_v20 }
  0x7f   : > { %1558 = vrot.lane.b32.xlu1 %v5141_v59, %s4676_s12  ;;  %v5406_v6 = vcombine.low %v961_v18, %v971_v40  ;;  %v1423_v40 = vsel %vm4880_vm6, %v1421_v35, %v1422_v21  ;;  %v835_v38 = vor.u32 %v5202_v7, %v5196_v15  ;;  %v845_v16 = vor.u32 %v5245_v37, %v840_v52 }
  0x80   : > { %v995_v22 = vsel %vm4837_vm3, %v990_v53, %v994_v3  ;;  %v5429_v41 = vcombine.low %v1420_v34, %v1423_v40  ;;  %v812_v17 = vrot.slane %v7839_v23, 4  ;;  %v850_v5 = vrot.slane %v848_v30, 5 }
  0x81   : > { %v827_v20 = vsel %vm4837_vm3, %v822_v26, %v826_v55  ;;  %v836_v25 = vrot.slane %v835_v38, 4  ;;  %v846_v47 = vrot.slane %v845_v16, 4  ;;  %vm1732_vm0 = vcmask 293888  }
  0x82   : > { %1632 = vrot.lane.b32.xlu0 %v5141_v59, %s4677_s13  ;;  %v817_v31 = vsel %vm4837_vm3, %v812_v17, %v5237_v8 }
  0x83   : > { %486 = vrot.lane.b32.xlu1 %v5010_v43, %s4670_s16  ;;  %v5418_v43 = vcombine.low %v985_v2, %v995_v22  ;;  %v841_v15 = vsel %vm4837_vm3, %v836_v25, %v840_v52  ;;  %v851_v7 = vsel %vm4837_vm3, %v846_v47, %v850_v5 }
  0x84   : > { %v4170_v8 = vcombine.low %v841_v15, %v851_v7 }
  0x86   : > { %1634 = vrot.lane.b32.xlu0 %v5156_v14, %s4677_s13 }
  0x87   : > { %488 = vrot.lane.b32.xlu1 %v5071_v0, %s4670_s16 }
  0x8a   : > { %556 = vrot.lane.b32.xlu0 %v5071_v0, %s4671_s17  ;;  %v4169_v0 = vcombine.low %v817_v31, %v827_v20 }
  0x8b   : > { %558 = vrot.lane.b32.xlu1 %v5091_v49, %s4671_s17 }
  0x8e   : > { %1056 = vrot.lane.b32.xlu0 %v5139_v4, %s4672_s18 }
  0x8f   : > { %1058 = vrot.lane.b32.xlu1 %v5147_v10, %s4672_s18 }
  0x92   : > { %1148 = vrot.lane.b32.xlu0 %v5147_v10, %s4673_s19  ;;  %v475_v37 = vpop.permute.xlu0 %474 }
  0x93   : > { %1150 = vrot.lane.b32.xlu1 %v4169_v0, %s4673_s19  ;;  %523 = vst.msk [vmem:[#allocation2] sm:$0xff] %vm522_vm8, %v475_v37  ;;  %v545_v4 = vpop.permute.xlu1 %544  ;;  %v5610_v37 = vld [vmem:[%s4780_s15 + $0xc4] sm:$0xf] }
  0x94   : > { %593 = vst.msk [vmem:[#allocation2] sm:$0xff] %vm592_vm9, %v545_v4 }
  0x96   : > { %1240 = vrot.lane.b32.xlu0 %v4169_v0, %s4674_s28  ;;  %v477_v52 = vpop.permute.xlu0 %476 }
  0x97   : > { %1242 = vrot.lane.b32.xlu1 %v4170_v8, %s4674_s28  ;;  %524 = vst.msk [vmem:[#allocation2 + $0x8] sm:$0xff] %vm522_vm8, %v477_v52  ;;  %v547_v58 = vpop.permute.xlu1 %546 }
  0x98   : > { %594 = vst.msk [vmem:[#allocation2 + $0x8] sm:$0xff] %vm592_vm9, %v547_v58  ;;  %v1123_v58 = vshrl.u32 %v5610_v37, 16 }
  0x9a   : > { %1484 = vrot.lane.b32.xlu0 %v5141_v59, %s4675_s11 }
  0x9b   : > { %1486 = vrot.lane.b32.xlu1 %v5156_v14, %s4675_s11 }
  0x9e   : > { %1560 = vrot.lane.b32.xlu0 %v5156_v14, %s4676_s12 }
  0x9f   : > { %1562 = vrot.lane.b32.xlu1 %v5198_v45, %s4676_s12  ;;  %v1047_v10 = vpop.permute.xlu1 %1046 }
  0xa0   : > { %1094 = vst.msk [vmem:[#allocation2 + $0x8] sm:$0xff] %vm1092_vm10, %v1047_v10  ;;  %v1045_v62 = vpop.permute.xlu0 %1044  ;;  %v1119_v10 = vshll.u32 %v5610_v37, 16 }
  0xa1   : > { %1093 = vst.msk [vmem:[#allocation2] sm:$0xff] %vm1092_vm10, %v1045_v62 }
  0xa2   : > { %1636 = vrot.lane.b32.xlu0 %v5198_v45, %s4677_s13 }
  0xa3   : > { %490 = vrot.lane.b32.xlu1 %v5091_v49, %s4670_s16 }
  0xa4   : > { %v1137_v59 = vpop.permute.xlu0 %1136 }
  0xa5   : > { %v1139_v46 = vpop.permute.xlu1 %1138  ;;  %1185 = vst.msk [vmem:[#allocation2] sm:$0xff] %vm1184_vm11, %v1137_v59 }
  0xa6   : > { %1186 = vst.msk [vmem:[#allocation2 + $0x8] sm:$0xff] %vm1184_vm11, %v1139_v46  ;;  %1638 = vrot.lane.b32.xlu0 %v5227_v54, %s4677_s13 }
  0xa7   : > { %492 = vrot.lane.b32.xlu1 %v5188_v12, %s4670_s16 }
  0xa8   : > { %v1229_v14 = vpop.permute.xlu0 %1228 }
  0xa9   : > { %v1231_v13 = vpop.permute.xlu1 %1230  ;;  %1277 = vst.msk [vmem:[#allocation2] sm:$0xff] %vm1276_vm12, %v1229_v14  ;;  %v5631_v14 = vld [vmem:[%s4780_s15 + $0xd0] sm:$0xf] }
  0xaa   : > { %1278 = vst.msk [vmem:[#allocation2 + $0x8] sm:$0xff] %vm1276_vm12, %v1231_v13  ;;  %560 = vrot.lane.b32.xlu0 %v5188_v12, %s4671_s17 }
  0xab   : > { %562 = vrot.lane.b32.xlu1 %v5217_v32, %s4671_s17 }
  0xac   : > { %v1473_v49 = vpop.permute.xlu0 %1472 }
  0xad   : > { %v1475_v18 = vpop.permute.xlu1 %1474  ;;  %1521 = vst.msk [vmem:[#allocation2] sm:$0xff] %vm1520_vm13, %v1473_v49 }
  0xae   : > { %1522 = vst.msk [vmem:[#allocation2 + $0x8] sm:$0xff] %vm1520_vm13, %v1475_v18  ;;  %1060 = vrot.lane.b32.xlu0 %v4169_v0, %s4672_s18  ;;  %v5633_v18 = vrot.slane %v1119_v10, 5  ;;  %v1616_v10 = vrot.slane %v5631_v14, 5 }
  0xaf   : > { %1062 = vrot.lane.b32.xlu1 %v4170_v8, %s4672_s18 }
  0xb0   : > { %v1549_v51 = vpop.permute.xlu0 %1548 }
  0xb1   : > { %v1551_v3 = vpop.permute.xlu1 %1550  ;;  %1597 = vst.msk [vmem:[#allocation2] sm:$0xff] %vm1596_vm14, %v1549_v51  ;;  %v1125_v51 = vrot.slane %v1123_v58, 4 }
  0xb2   : > { %1598 = vst.msk [vmem:[#allocation2 + $0x8] sm:$0xff] %vm1596_vm14, %v1551_v3  ;;  %1152 = vrot.lane.b32.xlu0 %v4170_v8, %s4673_s19 }
  0xb3   : > { %1154 = vrot.lane.b32.xlu1 %v5270_v11, %s4673_s19 }
  0xb4   : > { %v1625_v12 = vpop.permute.xlu0 %1624 }
  0xb5   : > { %v479_v1 = vpop.permute.xlu1 %478  ;;  %1673 = vst.msk [vmem:[#allocation2] sm:$0xff] %vm1672_vm15, %v1625_v12 }
  0xb6   : > { %525 = vst.msk [vmem:[#allocation2 + $0x10] sm:$0xff] %vm522_vm8, %v479_v1  ;;  %1244 = vrot.lane.b32.xlu0 %v5270_v11, %s4674_s28  ;;  %v1215_v1 = vshrl.u32 %v5631_v14, 16 }
  0xb7   : > { %1246 = vrot.lane.b32.xlu1 %v5293_v36, %s4674_s28 }
  0xb8   : > { %v1627_v50 = vpop.permute.xlu0 %1626 }
  0xb9   : > { %v481_v19 = vpop.permute.xlu1 %480  ;;  %1674 = vst.msk [vmem:[#allocation2 + $0x8] sm:$0xff] %vm1672_vm15, %v1627_v50  ;;  %v5639_v50 = vld [vmem:[%s4780_s15 + $0xc8] sm:$0x1] }
  0xba   : > { %526 = vst.msk [vmem:[#allocation2 + $0x18] sm:$0xff] %vm522_vm8, %v481_v19  ;;  %1488 = vrot.lane.b32.xlu0 %v5198_v45, %s4675_s11  ;;  %v1543_v58 = vrot.slane %v5639_v50, 5 }
  0xbb   : > { %1490 = vrot.lane.b32.xlu1 %v5227_v54, %s4675_s11 }
  0xbc   : > { %v549_v53 = vpop.permute.xlu0 %548  ;;  %v1689_v42 = vld [vmem:[#allocation2] sm:$0xff] }
  0xbd   : > { %v551_v35 = vpop.permute.xlu1 %550  ;;  %595 = vst.msk [vmem:[#allocation2 + $0x10] sm:$0xff] %vm592_vm9, %v549_v53  ;;  %4299 = vmatprep.mubr.msk.bf16.mxu0 %vm1732_vm0, %v1689_v42 }
  0xbe   : > { %596 = vst.msk [vmem:[#allocation2 + $0x18] sm:$0xff] %vm592_vm9, %v551_v35  ;;  %1564 = vrot.lane.b32.xlu0 %v5227_v54, %s4676_s12 }
  0xbf   : > { %1566 = vrot.lane.b32.xlu1 %v5295_v39, %s4676_s12 }
  0xc0   : > { %v1049_v45 = vpop.permute.xlu0 %1048  ;;  %v1690_v34 = vld [vmem:[#allocation2 + $0x8] sm:$0xff] }
  0xc1   : > { %v1051_v2 = vpop.permute.xlu1 %1050  ;;  %1095 = vst.msk [vmem:[#allocation2 + $0x10] sm:$0xff] %vm1092_vm10, %v1049_v45  ;;  %4300 = vmatmul.mubr.msk.bf16.vlgmr.msra.gmra.mrb[0].mxu0 %vm1732_vm0, %v1690_v34  ;;  %v1129_v34 = vshll.u32 %v5639_v50, 16 }
  0xc2   : > { %1096 = vst.msk [vmem:[#allocation2 + $0x18] sm:$0xff] %vm1092_vm10, %v1051_v2  ;;  %1640 = vrot.lane.b32.xlu0 %v5295_v39, %s4677_s13  ;;  %v1126_v2 = vor.u32 %v1125_v51, %v5633_v18 }
  0xc3   : > { %494 = vrot.lane.b32.xlu1 %v5217_v32, %s4670_s16 }
  0xc4   : > { %v1141_v21 = vpop.permute.xlu0 %1140 }
  0xc5   : > { %v1143_v54 = vpop.permute.xlu1 %1142  ;;  %1187 = vst.msk [vmem:[#allocation2 + $0x10] sm:$0xff] %vm1184_vm11, %v1141_v21 }
  0xc6   : > { %1188 = vst.msk [vmem:[#allocation2 + $0x18] sm:$0xff] %vm1184_vm11, %v1143_v54  ;;  %1642 = vrot.lane.b32.xlu0 %v5301_v33, %s4677_s13 }
  0xc7   : > { %496 = vrot.lane.b32.xlu1 %v5290_v24, %s4670_s16 }
  0xc8   : > { %v1233_v22 = vpop.permute.xlu0 %1232 }
  0xc9   : > { %v1235_v40 = vpop.permute.xlu1 %1234  ;;  %1279 = vst.msk [vmem:[#allocation2 + $0x10] sm:$0xff] %vm1276_vm12, %v1233_v22 }
  0xca   : > { %1280 = vst.msk [vmem:[#allocation2 + $0x18] sm:$0xff] %vm1276_vm12, %v1235_v40  ;;  %564 = vrot.lane.b32.xlu0 %v5290_v24, %s4671_s17  ;;  %v1217_v40 = vrot.slane %v1215_v1, 4 }
  0xcb   : > { %566 = vrot.lane.b32.xlu1 %v5308_v9, %s4671_s17 }
  0xcc   : > { %v1477_v32 = vpop.permute.xlu0 %1476 }
  0xcd   : > { %v1479_v27 = vpop.permute.xlu1 %1478  ;;  %1523 = vst.msk [vmem:[#allocation2 + $0x10] sm:$0xff] %vm1520_vm13, %v1477_v32 }
  0xce   : > { %1524 = vst.msk [vmem:[#allocation2 + $0x18] sm:$0xff] %vm1520_vm13, %v1479_v27  ;;  %1064 = vrot.lane.b32.xlu0 %v5270_v11, %s4672_s18 }
  0xcf   : > { %1066 = vrot.lane.b32.xlu1 %v5293_v36, %s4672_s18 }
  0xd0   : > { %v1553_v55 = vpop.permute.xlu0 %1552 }
  0xd1   : > { %v1555_v30 = vpop.permute.xlu1 %1554  ;;  %1599 = vst.msk [vmem:[#allocation2 + $0x10] sm:$0xff] %vm1596_vm14, %v1553_v55  ;;  %v5654_v55 = vld [vmem:[%s4780_s15 + $0xd4] sm:$0x1] }
  0xd2   : > { %1600 = vst.msk [vmem:[#allocation2 + $0x18] sm:$0xff] %vm1596_vm14, %v1555_v30  ;;  %1156 = vrot.lane.b32.xlu0 %v5293_v36, %s4673_s19 }
  0xd3   : > { %1158 = vrot.lane.b32.xlu1 %v5357_v48, %s4673_s19 }
  0xd4   : > { %v1629_v24 = vpop.permute.xlu0 %1628 }
  0xd5   : > { %v483_v23 = vpop.permute.xlu1 %482  ;;  %1675 = vst.msk [vmem:[#allocation2 + $0x10] sm:$0xff] %vm1672_vm15, %v1629_v24 }
  0xd6   : > { %527 = vst.msk [vmem:[#allocation2 + $0x20] sm:$0xff] %vm522_vm8, %v483_v23  ;;  %1248 = vrot.lane.b32.xlu0 %v5357_v48, %s4674_s28  ;;  %v1131_v23 = vrot.slane %v1129_v34, 5 }
  0xd7   : > { %1250 = vrot.lane.b32.xlu1 %v5367_v63, %s4674_s28 }
  0xd8   : > { %v1631_v11 = vpop.permute.xlu0 %1630 }
  0xd9   : > { %v485_v17 = vpop.permute.xlu1 %484  ;;  %1676 = vst.msk [vmem:[#allocation2 + $0x18] sm:$0xff] %vm1672_vm15, %v1631_v11  ;;  %v1127_v11 = vrot.slane %v1126_v2, 4  ;;  %v5755_v2 = vld [vmem:[%s7727_s1 + $0x8] sm:$0xff] }
  0xda   : > { %528 = vst.msk [vmem:[#allocation2 + $0x28] sm:$0xff] %vm522_vm8, %v485_v17  ;;  %1492 = vrot.lane.b32.xlu0 %v5295_v39, %s4675_s11 }
  0xdb   : > { %1494 = vrot.lane.b32.xlu1 %v5301_v33, %s4675_s11 }
  0xdc   : > { %v553_v36 = vpop.permute.xlu0 %552  ;;  %v1691_v38 = vld [vmem:[#allocation2 + $0x10] sm:$0xff] }
  0xdd   : > { %v555_v26 = vpop.permute.xlu1 %554  ;;  %597 = vst.msk [vmem:[#allocation2 + $0x20] sm:$0xff] %vm592_vm9, %v553_v36  ;;  %4303 = vmatprep.mubr.msk.bf16.mxu0 %vm1732_vm0, %v1691_v38 }
  0xde   : > { %598 = vst.msk [vmem:[#allocation2 + $0x28] sm:$0xff] %vm592_vm9, %v555_v26  ;;  %1568 = vrot.lane.b32.xlu0 %v5301_v33, %s4676_s12  ;;  %v1221_v26 = vshll.u32 %v5654_v55, 16 }
  0xdf   : > { %1570 = vrot.lane.b32.xlu1 %v5361_v44, %s4676_s12 }
  0xe0   : > { %v1053_v16 = vpop.permute.xlu0 %1052  ;;  %v1692_v5 = vld [vmem:[#allocation2 + $0x18] sm:$0xff] }
  0xe1   : > { %v1055_v39 = vpop.permute.xlu1 %1054  ;;  %1097 = vst.msk [vmem:[#allocation2 + $0x20] sm:$0xff] %vm1092_vm10, %v1053_v16  ;;  %4304 = vmatmul.mubr.msk.bf16.gmra.mrb[4].mxu0 %vm1732_vm0, %v1692_v5 }
  0xe2   : > { %1098 = vst.msk [vmem:[#allocation2 + $0x28] sm:$0xff] %vm1092_vm10, %v1055_v39  ;;  %1644 = vrot.lane.b32.xlu0 %v5361_v44, %s4677_s13  ;;  %v4487_v39 = vld [vmem:[%s7730_s4 + $0x8] sm:$0xff]  }
  0xe3   : > { %498 = vrot.lane.b32.xlu1 %v5308_v9, %s4670_s16 }
  0xe4   : > { %v1145_v31 = vpop.permute.xlu0 %1144 }
  0xe5   : > { %v1147_v33 = vpop.permute.xlu1 %1146  ;;  %1189 = vst.msk [vmem:[#allocation2 + $0x20] sm:$0xff] %vm1184_vm11, %v1145_v31  ;;  %v1132_v31 = vsel %vm4837_vm3, %v1127_v11, %v1131_v23  ;;  %v5803_v23 = vld [vmem:[%s7727_s1 + $0x38] sm:$0xff] }
  0xe6   : > { %1190 = vst.msk [vmem:[#allocation2 + $0x28] sm:$0xff] %vm1184_vm11, %v1147_v33  ;;  %1646 = vrot.lane.b32.xlu0 %v5374_v56, %s4677_s13 }
  0xe7   : > { %500 = vrot.lane.b32.xlu1 %v5344_v57, %s4670_s16 }
  0xe8   : > { %v1237_v20 = vpop.permute.xlu0 %1236 }
  0xe9   : > { %v1239_v25 = vpop.permute.xlu1 %1238  ;;  %1281 = vst.msk [vmem:[#allocation2 + $0x20] sm:$0xff] %vm1276_vm12, %v1237_v20 }
  0xea   : > { %1282 = vst.msk [vmem:[#allocation2 + $0x28] sm:$0xff] %vm1276_vm12, %v1239_v25  ;;  %568 = vrot.lane.b32.xlu0 %v5344_v57, %s4671_s17  ;;  %v1223_v25 = vrot.slane %v1221_v26, 5 }
  0xeb   : > { %570 = vrot.lane.b32.xlu1 %v5384_v60, %s4671_s17 }
  0xec   : > { %v1481_v9 = vpop.permute.xlu0 %1480 }
  0xed   : > { %v1483_v47 = vpop.permute.xlu1 %1482  ;;  %1525 = vst.msk [vmem:[#allocation2 + $0x20] sm:$0xff] %vm1520_vm13, %v1481_v9 }
  0xee   : > { %1526 = vst.msk [vmem:[#allocation2 + $0x28] sm:$0xff] %vm1520_vm13, %v1483_v47  ;;  %1068 = vrot.lane.b32.xlu0 %v5357_v48, %s4672_s18 }
  0xef   : > { %1070 = vrot.lane.b32.xlu1 %v5367_v63, %s4672_s18 }
  0xf0   : > { %v1557_v0 = vpop.permute.xlu0 %1556 }
  0xf1   : > { %v1559_v15 = vpop.permute.xlu1 %1558  ;;  %1601 = vst.msk [vmem:[#allocation2 + $0x20] sm:$0xff] %vm1596_vm14, %v1557_v0  ;;  %v4488_v0 = vld [vmem:[%s7730_s4 + $0x10] sm:$0xff]  }
  0xf2   : > { %1602 = vst.msk [vmem:[#allocation2 + $0x28] sm:$0xff] %vm1596_vm14, %v1559_v15  ;;  %1160 = vrot.lane.b32.xlu0 %v5367_v63, %s4673_s19  ;;  %v5607_v63 = vld [vmem:[%s4780_s15 + $0xc0] sm:$0xf] }
  0xf3   : > { %1162 = vrot.lane.b32.xlu1 %v5406_v6, %s4673_s19  ;;  %v1110_v4 = vshrl.u32 %v5607_v63, 16  ;;  %v1113_v52 = vshll.u32 %v5607_v63, 16  ;;  %v4159_v42 = vcombine.low %v5607_v63, %v5610_v37 }
  0xf4   : > { %v1633_v57 = vpop.permute.xlu0 %1632 }
  0xf5   : > { %v487_v7 = vpop.permute.xlu1 %486  ;;  %1677 = vst.msk [vmem:[#allocation2 + $0x20] sm:$0xff] %vm1672_vm15, %v1633_v57  ;;  %v1112_v13 = vrot.slane %v1110_v4, 4  ;;  %v1115_v49 = vrot.slane %v1113_v52, 5 }
  0xf6   : > { %529 = vst.msk [vmem:[#allocation2 + $0x30] sm:$0xff] %vm522_vm8, %v487_v7  ;;  %1252 = vrot.lane.b32.xlu0 %v5406_v6, %s4674_s28 }
  0xf7   : > { %1254 = vrot.lane.b32.xlu1 %v5418_v43, %s4674_s28  ;;  %v1116_v45 = vor.u32 %v1115_v49, %v1112_v13  ;;  %v1618_v13 = vrot.slane %v1616_v10, 4  ;;  %v1619_v49 = vrot.slane %v5654_v55, 5  ;;  %v5787_v55 = vld [vmem:[%s7727_s1 + $0x28] sm:$0xff] }
  0xf8   : > { %v1635_v48 = vpop.permute.xlu0 %1634 }
  0xf9   : > { %v489_v8 = vpop.permute.xlu1 %488  ;;  %1678 = vst.msk [vmem:[#allocation2 + $0x28] sm:$0xff] %vm1672_vm15, %v1635_v48  ;;  %v1117_v24 = vrot.slane %v1116_v45, 4  ;;  %v1540_v48 = vrot.slane %v5610_v37, 5  ;;  %v4211_v37 = vrot.slane %v5607_v63, 9  ;;  %v1620_v1 = vsel %vm4880_vm6, %v1618_v13, %v1619_v49 }
  0xfa   : > { %530 = vst.msk [vmem:[#allocation2 + $0x38] sm:$0xff] %vm522_vm8, %v489_v8  ;;  %1496 = vrot.lane.b32.xlu0 %v5361_v44, %s4675_s11  ;;  %v5624_v44 = vld [vmem:[%s4780_s15 + $0xcc] sm:$0xf]  ;;  %s4680_s15 = smov 98  }
  0xfb   : > { %1498 = vrot.lane.b32.xlu1 %v5374_v56, %s4675_s11  ;;  %v1202_v3 = vshrl.u32 %v5624_v44, 16  ;;  %v1205_v12 = vshll.u32 %v5624_v44, 16  ;;  %v4160_v30 = vcombine.low %v5624_v44, %v5631_v14  ;;  %v1122_v5 = vsel %vm4837_vm3, %v1117_v24, %v5633_v18  ;;  %v5798_v24 = vld [vmem:[%s7727_s1 + $0x30] sm:$0xff] }
  0xfc   : > { %v557_v62 = vpop.permute.xlu0 %556  ;;  %v1693_v46 = vld [vmem:[#allocation2 + $0x20] sm:$0xff]  ;;  %v4177_v15 = vcombine.low %v1122_v5, %v1132_v31  ;;  %v1542_v52 = vrot.slane %v1540_v48, 4 }
  0xfd   : > { %v559_v59 = vpop.permute.xlu1 %558  ;;  %599 = vst.msk [vmem:[#allocation2 + $0x30] sm:$0xff] %vm592_vm9, %v557_v62  ;;  %4307 = vmatprep.mubr.msk.bf16.mxu0 %vm1732_vm0, %v1693_v46  ;;  %v1204_v21 = vrot.slane %v1202_v3, 4  ;;  %v1207_v54 = vrot.slane %v1205_v12, 5  ;;  %v4490_v46 = vld [vmem:[%s7730_s4 + $0x20] sm:$0xff]   ;;  %v4491_v3 = vld [vmem:[%s7730_s4 + $0x28] sm:$0xff]  }
  0xfe   : > { %600 = vst.msk [vmem:[#allocation2 + $0x38] sm:$0xff] %vm592_vm9, %v559_v59  ;;  %1572 = vrot.lane.b32.xlu0 %v5374_v56, %s4676_s12  ;;  %v1211_v56 = vshll.u32 %v5631_v14, 16  ;;  %v1544_v63 = vsel %vm4880_vm6, %v1542_v52, %v1543_v58  ;;  %v4213_v14 = vrot.slane %v5624_v44, 9 }
  0xff   : > { %1574 = vrot.lane.b32.xlu1 %v5408_v61, %s4676_s12  ;;  %v1208_v17 = vor.u32 %v1207_v54, %v1204_v21  ;;  %v5766_v54 = vld [vmem:[%s7727_s1 + $0x10] sm:$0xff] }
 0x100   : > { %v1057_v19 = vpop.permute.xlu0 %1056  ;;  %v1694_v35 = vld [vmem:[#allocation2 + $0x28] sm:$0xff]  ;;  %v1213_v22 = vrot.slane %v1211_v56, 5  ;;  %v1617_v12 = vsel %vm4880_vm6, %v4213_v14, %v1616_v10 }
 0x101   : > { %v1059_v53 = vpop.permute.xlu1 %1058  ;;  %1099 = vst.msk [vmem:[#allocation2 + $0x30] sm:$0xff] %vm1092_vm10, %v1057_v19  ;;  %4308 = vmatmul.mubr.msk.bf16.gmra.mrb[8].mxu0 %vm1732_vm0, %v1694_v35  ;;  %v1209_v33 = vrot.slane %v1208_v17, 4  ;;  %v4214_v29 = vcombine.low %v1617_v12, %v1620_v1  ;;  %v5874_v14 = vld [vmem:[%s7727_s1 + $0x68] sm:$0xff]  ;;  %v5898_v1 = vld [vmem:[%s7727_s1 + $0x80] sm:$0xff] }
 0x102   : > { %1100 = vst.msk [vmem:[#allocation2 + $0x38] sm:$0xff] %vm1092_vm10, %v1059_v53  ;;  %1648 = vrot.lane.b32.xlu0 %v5408_v61, %s4677_s13  ;;  %v1218_v36 = vor.u32 %v1217_v40, %v1213_v22  ;;  %v4493_v53 = vld [vmem:[%s7730_s4 + $0x38] sm:$0xff]  }
 0x103   : > { %502 = vrot.lane.b32.xlu1 %v5384_v60, %s4670_s16  ;;  %v4486_v60 = vld [vmem:[%s7730_s4] sm:$0xff]   ;;  %v1214_v57 = vsel %vm4837_vm3, %v1209_v33, %v1213_v22  ;;  %v5771_v22 = vld [vmem:[%s7727_s1 + $0x18] sm:$0xff] }
 0x104   : > { %v1149_v32 = vpop.permute.xlu0 %1148  ;;  %4331 = vmatprep.subr.bf16.mxu0 %v4486_v60  ;;  %4379 = vmatprep.subr.bf16.mxu1 %v4486_v60  ;;  %v1219_v20 = vrot.slane %v1218_v36, 4  ;;  %v5821_v33 = vld [vmem:[%s7727_s1 + $0x40] sm:$0xff] }
 0x105   : > { %v1151_v27 = vpop.permute.xlu1 %1150  ;;  %1191 = vst.msk [vmem:[#allocation2 + $0x30] sm:$0xff] %vm1184_vm11, %v1149_v32  ;;  %4332 = vmatpush3.bf16.msra.mxu0 %v4486_v60  ;;  %4387 = vmatpush3.bf16.msra.mxu1 %v4486_v60 }
 0x106   : > { %1192 = vst.msk [vmem:[#allocation2 + $0x38] sm:$0xff] %vm1184_vm11, %v1151_v27  ;;  %1650 = vrot.lane.b32.xlu0 %v5429_v41, %s4677_s13  ;;  %4333 = vmatprep.subr.bf16.mxu0 %v4487_v39  ;;  %v1224_v7 = vsel %vm4837_vm3, %v1219_v20, %v1223_v25  ;;  %v5782_v27 = vld [vmem:[%s7727_s1 + $0x20] sm:$0xff]  ;;  %v5826_v20 = vld [vmem:[%s7727_s1 + $0x48] sm:$0xff] }
 0x107   : > { %504 = vrot.lane.b32.xlu1 %v4159_v42, %s4670_s16  ;;  %4380 = vmatprep.subr.bf16.mxu1 %v4487_v39  ;;  %v4178_v28 = vcombine.low %v1214_v57, %v1224_v7 }
 0x108   : > { %v1241_v38 = vpop.permute.xlu0 %1240 }
 0x109   : > { %v1243_v16 = vpop.permute.xlu1 %1242  ;;  %1283 = vst.msk [vmem:[#allocation2 + $0x30] sm:$0xff] %vm1276_vm12, %v1241_v38  ;;  %4334 = vmatpush3.bf16.msra.mxu0 %v4487_v39  ;;  %4388 = vmatpush3.bf16.msra.mxu1 %v4487_v39 }
 0x10a   : > { %1284 = vst.msk [vmem:[#allocation2 + $0x38] sm:$0xff] %vm1276_vm12, %v1243_v16  ;;  %572 = vrot.lane.b32.xlu0 %v4159_v42, %s4671_s17  ;;  %4335 = vmatprep.subr.bf16.mxu0 %v4488_v0 }
 0x10b   : > { %574 = vrot.lane.b32.xlu1 %v4160_v30, %s4671_s17  ;;  %4381 = vmatprep.subr.bf16.mxu1 %v4488_v0 }
 0x10c   : > { %v1485_v9 = vpop.permute.xlu0 %1484 }
 0x10d   : > { %v1487_v47 = vpop.permute.xlu1 %1486  ;;  %1527 = vst.msk [vmem:[#allocation2 + $0x30] sm:$0xff] %vm1520_vm13, %v1485_v9  ;;  %4336 = vmatpush3.bf16.msra.mxu0 %v4488_v0  ;;  %4389 = vmatpush3.bf16.msra.mxu1 %v4488_v0  ;;  %v5838_v0 = vld [vmem:[%s7727_s1 + $0x50] sm:$0xff] }
 0x10e   : > { %1528 = vst.msk [vmem:[#allocation2 + $0x38] sm:$0xff] %vm1520_vm13, %v1487_v47  ;;  %1072 = vrot.lane.b32.xlu0 %v5406_v6, %s4672_s18  ;;  %v4489_v6 = vld [vmem:[%s7730_s4 + $0x18] sm:$0xff]  }
 0x10f   : > { %1074 = vrot.lane.b32.xlu1 %v5418_v43, %s4672_s18  ;;  %4337 = vmatprep.subr.bf16.mxu0 %v4489_v6  ;;  %s4683_s18 = smov [#allocation3]  }
 0x110   : > { %v1561_v8 = vpop.permute.xlu0 %1560  ;;  %4382 = vmatprep.subr.bf16.mxu1 %v4489_v6  ;;  %s4594_s27 = sshll.u32 %s4683_s18, 4  ;;  %s4595_s27 = int_to_ptr.vmem [resolvable:$false] %s4594_s27 }
 0x111   : > { %v1563_v4 = vpop.permute.xlu1 %1562  ;;  %1603 = vst.msk [vmem:[#allocation2 + $0x30] sm:$0xff] %vm1596_vm14, %v1561_v8  ;;  %4338 = vmatpush3.bf16.msra.mxu0 %v4489_v6  ;;  %4390 = vmatpush3.bf16.msra.mxu1 %v4489_v6  ;;  %s4596_s30 = scalar_lea.vmem %s4595_s27, 8192 }
 0x112   : > { %1604 = vst.msk [vmem:[#allocation2 + $0x38] sm:$0xff] %vm1596_vm14, %v1563_v4  ;;  %1164 = vrot.lane.b32.xlu0 %v5418_v43, %s4673_s19  ;;  %v1541_v43 = vsel %vm4880_vm6, %v4211_v37, %v1540_v48  ;;  %4339 = vmatprep.subr.bf16.mxu0 %v4490_v46 }
 0x113   : > { %1166 = vrot.lane.b32.xlu1 %v4177_v15, %s4673_s19  ;;  %4383 = vmatprep.subr.bf16.mxu1 %v4490_v46  ;;  %v4212_v44 = vcombine.low %v1541_v43, %v1544_v63  ;;  %v5867_v63 = vld [vmem:[%s7727_s1 + $0x60] sm:$0xff]  ;;  %s4679_s19 = smov 113  }
 0x114   : > { %v1637_v62 = vpop.permute.xlu0 %1636 }
 0x115   : > { %v491_v59 = vpop.permute.xlu1 %490  ;;  %1679 = vst.msk [vmem:[#allocation2 + $0x30] sm:$0xff] %vm1672_vm15, %v1637_v62  ;;  %4340 = vmatpush3.bf16.msra.mxu0 %v4490_v46  ;;  %4391 = vmatpush3.bf16.msra.mxu1 %v4490_v46 }
 0x116   : > { %531 = vst.msk [vmem:[#allocation2 + $0x40] sm:$0xff] %vm522_vm8, %v491_v59  ;;  %1256 = vrot.lane.b32.xlu0 %v4177_v15, %s4674_s28  ;;  %4341 = vmatprep.subr.bf16.mxu0 %v4491_v3  ;;  %v5843_v15 = vld [vmem:[%s7727_s1 + $0x58] sm:$0xff] }
 0x117   : > { %1258 = vrot.lane.b32.xlu1 %v4178_v28, %s4674_s28  ;;  %4384 = vmatprep.subr.bf16.mxu1 %v4491_v3 }
 0x118   : > { %v1639_v18 = vpop.permute.xlu0 %1638 }
 0x119   : > { %v493_v51 = vpop.permute.xlu1 %492  ;;  %1680 = vst.msk [vmem:[#allocation2 + $0x38] sm:$0xff] %vm1672_vm15, %v1639_v18  ;;  %4342 = vmatpush3.bf16.msra.mxu0 %v4491_v3  ;;  %4392 = vmatpush3.bf16.msra.mxu1 %v4491_v3  ;;  %v5889_v3 = vld [vmem:[%s7727_s1 + $0x78] sm:$0xff] }
 0x11a   : > { %532 = vst.msk [vmem:[#allocation2 + $0x48] sm:$0xff] %vm522_vm8, %v493_v51  ;;  %1500 = vrot.lane.b32.xlu0 %v5408_v61, %s4675_s11  ;;  %v4492_v61 = vld [vmem:[%s7730_s4 + $0x30] sm:$0xff]  }
 0x11b   : > { %1502 = vrot.lane.b32.xlu1 %v5429_v41, %s4675_s11  ;;  %4343 = vmatprep.subr.bf16.mxu0 %v4492_v61  ;;  %v5881_v51 = vld [vmem:[%s7727_s1 + $0x70] sm:$0xff] }
 0x11c   : > { %v561_v50 = vpop.permute.xlu0 %560  ;;  %v1695_v19 = vld [vmem:[#allocation2 + $0x30] sm:$0xff]  ;;  %4385 = vmatprep.subr.bf16.mxu1 %v4492_v61 }
 0x11d   : > { %v563_v56 = vpop.permute.xlu1 %562  ;;  %601 = vst.msk [vmem:[#allocation2 + $0x40] sm:$0xff] %vm592_vm9, %v561_v50  ;;  %4311 = vmatprep.mubr.msk.bf16.mxu0 %vm1732_vm0, %v1695_v19  ;;  %4344 = vmatpush3.bf16.msra.mxu0 %v4492_v61  ;;  %v5905_v50 = vld [vmem:[%s7727_s1 + $0x88] sm:$0xff] }
 0x11e   : > { %602 = vst.msk [vmem:[#allocation2 + $0x48] sm:$0xff] %vm592_vm9, %v563_v56  ;;  %1576 = vrot.lane.b32.xlu0 %v5429_v41, %s4676_s12  ;;  %4393 = vmatpush3.bf16.msra.mxu1 %v4492_v61  ;;  %v5750_v41 = vld [vmem:[%s7727_s1] sm:$0xff]  ;;  %v5914_v61 = vld [vmem:[%s7727_s1 + $0x90] sm:$0xff] }
 0x11f   : > { %1578 = vrot.lane.b32.xlu1 %v4212_v44, %s4676_s12  ;;  %4345 = vmatprep.subr.bf16.mxu0 %v4493_v53 }
 0x120   : > { %v1061_v35 = vpop.permute.xlu0 %1060  ;;  %v1696_v45 = vld [vmem:[#allocation2 + $0x38] sm:$0xff]  ;;  %4386 = vmatprep.subr.bf16.mxu1 %v4493_v53 }
 0x121   : > { %v1063_v42 = vpop.permute.xlu1 %1062  ;;  %1101 = vst.msk [vmem:[#allocation2 + $0x40] sm:$0xff] %vm1092_vm10, %v1061_v35  ;;  %4312 = vmatmul.mubr.msk.bf16.gmra.mrb[12].mxu0 %vm1732_vm0, %v1696_v45  ;;  %v5937_v45 = vld [vmem:[%s7727_s1 + $0xa8] sm:$0xff] }
 0x122   : > { %1102 = vst.msk [vmem:[#allocation2 + $0x48] sm:$0xff] %vm1092_vm10, %v1063_v42  ;;  %1652 = vrot.lane.b32.xlu0 %v4212_v44, %s4677_s13  ;;  %4346 = vmatpush3.bf16.msra.mxu0 %v4493_v53  ;;  %v5930_v42 = vld [vmem:[%s7727_s1 + $0xa0] sm:$0xff] }
 0x123   : > { %1654 = vrot.lane.b32.xlu1 %v4214_v29, %s4677_s13  ;;  %4394 = vmatpush3.bf16.msra.mxu1 %v4493_v53  ;;  %s4678_s13 = smov 30   ;;  %v5921_v29 = vld [vmem:[%s7727_s1 + $0x98] sm:$0xff] }
 0x124   : > { %v1153_v34 = vpop.permute.xlu0 %1152 }
 0x125   : > { %v1155_v21 = vpop.permute.xlu1 %1154  ;;  %1193 = vst.msk [vmem:[#allocation2 + $0x40] sm:$0xff] %vm1184_vm11, %v1153_v34 }
 0x126   : > { %1194 = vst.msk [vmem:[#allocation2 + $0x48] sm:$0xff] %vm1184_vm11, %v1155_v21  ;;  %2290 = vrot.lane.b32.xlu0 %v5750_v41, %s4678_s13 }
 0x127   : > { %2292 = vrot.lane.b32.xlu1 %v5755_v2, %s4678_s13 }
 0x128   : > { %v1245_v40 = vpop.permute.xlu0 %1244 }
 0x129   : > { %v1247_v32 = vpop.permute.xlu1 %1246  ;;  %1285 = vst.msk [vmem:[#allocation2 + $0x40] sm:$0xff] %vm1276_vm12, %v1245_v40  ;;  %v5946_v40 = vld [vmem:[%s7727_s1 + $0xb0] sm:$0xff] }
 0x12a   : > { %1286 = vst.msk [vmem:[#allocation2 + $0x48] sm:$0xff] %vm1276_vm12, %v1247_v32  ;;  %2294 = vrot.lane.b32.xlu0 %v5766_v54, %s4678_s13 }
 0x12b   : > { %2296 = vrot.lane.b32.xlu1 %v5771_v22, %s4678_s13 }
 0x12c   : > { %v1489_v60 = vpop.permute.xlu0 %1488 }
 0x12d   : > { %v1491_v30 = vpop.permute.xlu1 %1490  ;;  %1529 = vst.msk [vmem:[#allocation2 + $0x40] sm:$0xff] %vm1520_vm13, %v1489_v60 }
 0x12e   : > { %1530 = vst.msk [vmem:[#allocation2 + $0x48] sm:$0xff] %vm1520_vm13, %v1491_v30  ;;  %2298 = vrot.lane.b32.xlu0 %v5782_v27, %s4678_s13  ;;  %v5955_v30 = vld [vmem:[%s7727_s1 + $0xb8] sm:$0xff] }
 0x12f   : > { %2300 = vrot.lane.b32.xlu1 %v5787_v55, %s4678_s13 }
 0x130   : > { %v1565_v11 = vpop.permute.xlu0 %1564 }
 0x131   : > { %v1567_v17 = vpop.permute.xlu1 %1566  ;;  %1605 = vst.msk [vmem:[#allocation2 + $0x40] sm:$0xff] %vm1596_vm14, %v1565_v11  ;;  %v5964_v11 = vld [vmem:[%s7727_s1 + $0xc0] sm:$0xff] }
 0x132   : > { %1606 = vst.msk [vmem:[#allocation2 + $0x48] sm:$0xff] %vm1596_vm14, %v1567_v17  ;;  %2302 = vrot.lane.b32.xlu0 %v5798_v24, %s4678_s13 }
 0x133   : > { %2304 = vrot.lane.b32.xlu1 %v5803_v23, %s4678_s13 }
 0x134   : > { %v1641_v36 = vpop.permute.xlu0 %1640 }
 0x135   : > { %v495_v26 = vpop.permute.xlu1 %494  ;;  %1681 = vst.msk [vmem:[#allocation2 + $0x40] sm:$0xff] %vm1672_vm15, %v1641_v36 }
 0x136   : > { %533 = vst.msk [vmem:[#allocation2 + $0x50] sm:$0xff] %vm522_vm8, %v495_v26  ;;  %2306 = vrot.lane.b32.xlu0 %v5821_v33, %s4678_s13  ;;  %v5971_v26 = vld [vmem:[%s7727_s1 + $0xc8] sm:$0xff] }
 0x137   : > { %2308 = vrot.lane.b32.xlu1 %v5826_v20, %s4678_s13 }
 0x138   : > { %v1643_v38 = vpop.permute.xlu0 %1642 }
 0x139   : > { %v497_v16 = vpop.permute.xlu1 %496  ;;  %1682 = vst.msk [vmem:[#allocation2 + $0x48] sm:$0xff] %vm1672_vm15, %v1643_v38  ;;  %v5980_v38 = vld [vmem:[%s7727_s1 + $0xd0] sm:$0xff] }
 0x13a   : > { %534 = vst.msk [vmem:[#allocation2 + $0x58] sm:$0xff] %vm522_vm8, %v497_v16  ;;  %2310 = vrot.lane.b32.xlu0 %v5838_v0, %s4678_s13 }
 0x13b   : > { %2312 = vrot.lane.b32.xlu1 %v5843_v15, %s4678_s13 }
 0x13c   : > { %v565_v39 = vpop.permute.xlu0 %564  ;;  %v1697_v31 = vld [vmem:[#allocation2 + $0x40] sm:$0xff] }
 0x13d   : > { %v567_v5 = vpop.permute.xlu1 %566  ;;  %603 = vst.msk [vmem:[#allocation2 + $0x50] sm:$0xff] %vm592_vm9, %v565_v39  ;;  %4315 = vmatprep.mubr.msk.bf16.mxu0 %vm1732_vm0, %v1697_v31  ;;  %v5987_v31 = vld [vmem:[%s7727_s1 + $0xd8] sm:$0xff] }
 0x13e   : > { %604 = vst.msk [vmem:[#allocation2 + $0x58] sm:$0xff] %vm592_vm9, %v567_v5  ;;  %2314 = vrot.lane.b32.xlu0 %v5867_v63, %s4678_s13 }
 0x13f   : > { %2316 = vrot.lane.b32.xlu1 %v5874_v14, %s4678_s13 }
 0x140   : > { %v1065_v25 = vpop.permute.xlu0 %1064  ;;  %v1698_v47 = vld [vmem:[#allocation2 + $0x48] sm:$0xff] }
 0x141   : > { %v1067_v9 = vpop.permute.xlu1 %1066  ;;  %1103 = vst.msk [vmem:[#allocation2 + $0x50] sm:$0xff] %vm1092_vm10, %v1065_v25  ;;  %4316 = vmatmul.mubr.msk.bf16.gmra.mrb[16].mxu0 %vm1732_vm0, %v1698_v47  ;;  %v5997_v25 = vld [vmem:[%s7727_s1 + $0xe0] sm:$0xff] }
 0x142   : > { %1104 = vst.msk [vmem:[#allocation2 + $0x58] sm:$0xff] %vm1092_vm10, %v1067_v9  ;;  %2318 = vrot.lane.b32.xlu0 %v5881_v51, %s4678_s13  ;;  %v6004_v9 = vld [vmem:[%s7727_s1 + $0xe8] sm:$0xff] }
 0x143   : > { %2320 = vrot.lane.b32.xlu1 %v5889_v3, %s4678_s13 }
 0x144   : > { %v1157_v57 = vpop.permute.xlu0 %1156 }
 0x145   : > { %v1159_v7 = vpop.permute.xlu1 %1158  ;;  %1195 = vst.msk [vmem:[#allocation2 + $0x50] sm:$0xff] %vm1184_vm11, %v1157_v57 }
 0x146   : > { %1196 = vst.msk [vmem:[#allocation2 + $0x58] sm:$0xff] %vm1184_vm11, %v1159_v7  ;;  %2322 = vrot.lane.b32.xlu0 %v5898_v1, %s4678_s13 }
 0x147   : > { %2324 = vrot.lane.b32.xlu1 %v5905_v50, %s4678_s13 }
 0x148   : > { %v1249_v48 = vpop.permute.xlu0 %1248 }
 0x149   : > { %v1251_v8 = vpop.permute.xlu1 %1250  ;;  %1287 = vst.msk [vmem:[#allocation2 + $0x50] sm:$0xff] %vm1276_vm12, %v1249_v48  ;;  %v6009_v48 = vld [vmem:[%s7727_s1 + $0xf0] sm:$0xff] }
 0x14a   : > { %1288 = vst.msk [vmem:[#allocation2 + $0x58] sm:$0xff] %vm1276_vm12, %v1251_v8  ;;  %2326 = vrot.lane.b32.xlu0 %v5914_v61, %s4678_s13  ;;  %v6019_v8 = vld [vmem:[%s7727_s1 + $0xf8] sm:$0xff] }
 0x14b   : > { %2328 = vrot.lane.b32.xlu1 %v5921_v29, %s4678_s13 }
 0x14c   : > { %v1493_v4 = vpop.permute.xlu0 %1492 }
 0x14d   : > { %v1495_v6 = vpop.permute.xlu1 %1494  ;;  %1531 = vst.msk [vmem:[#allocation2 + $0x50] sm:$0xff] %vm1520_vm13, %v1493_v4 }
 0x14e   : > { %1532 = vst.msk [vmem:[#allocation2 + $0x58] sm:$0xff] %vm1520_vm13, %v1495_v6  ;;  %2330 = vrot.lane.b32.xlu0 %v5930_v42, %s4678_s13 }
 0x14f   : > { %2332 = vrot.lane.b32.xlu1 %v5937_v45, %s4678_s13 }
 0x150   : > { %v1569_v28 = vpop.permute.xlu0 %1568 }
 0x151   : > { %v1571_v37 = vpop.permute.xlu1 %1570  ;;  %1607 = vst.msk [vmem:[#allocation2 + $0x50] sm:$0xff] %vm1596_vm14, %v1569_v28 }
 0x152   : > { %1608 = vst.msk [vmem:[#allocation2 + $0x58] sm:$0xff] %vm1596_vm14, %v1571_v37  ;;  %2334 = vrot.lane.b32.xlu0 %v5946_v40, %s4678_s13 }
 0x153   : > { %2336 = vrot.lane.b32.xlu1 %v5955_v30, %s4678_s13 }
 0x154   : > { %v1645_v52 = vpop.permute.xlu0 %1644 }
 0x155   : > { %v499_v58 = vpop.permute.xlu1 %498  ;;  %1683 = vst.msk [vmem:[#allocation2 + $0x50] sm:$0xff] %vm1672_vm15, %v1645_v52 }
 0x156   : > { %535 = vst.msk [vmem:[#allocation2 + $0x60] sm:$0xff] %vm522_vm8, %v499_v58  ;;  %2338 = vrot.lane.b32.xlu0 %v5964_v11, %s4678_s13 }
 0x157   : > { %2340 = vrot.lane.b32.xlu1 %v5971_v26, %s4678_s13 }
 0x158   : > { %v1647_v10 = vpop.permute.xlu0 %1646 }
 0x159   : > { %v501_v62 = vpop.permute.xlu1 %500  ;;  %1684 = vst.msk [vmem:[#allocation2 + $0x58] sm:$0xff] %vm1672_vm15, %v1647_v10 }
 0x15a   : > { %536 = vst.msk [vmem:[#allocation2 + $0x68] sm:$0xff] %vm522_vm8, %v501_v62  ;;  %2342 = vrot.lane.b32.xlu0 %v5980_v38, %s4678_s13 }
 0x15b   : > { %2344 = vrot.lane.b32.xlu1 %v5987_v31, %s4678_s13 }
 0x15c   : > { %v569_v59 = vpop.permute.xlu0 %568  ;;  %v1699_v43 = vld [vmem:[#allocation2 + $0x50] sm:$0xff] }
 0x15d   : > { %v571_v46 = vpop.permute.xlu1 %570  ;;  %605 = vst.msk [vmem:[#allocation2 + $0x60] sm:$0xff] %vm592_vm9, %v569_v59  ;;  %4319 = vmatprep.mubr.msk.bf16.mxu0 %vm1732_vm0, %v1699_v43  ;;  %v6036_v59 = vld [vmem:[%s7729_s3] ss:$0 sm:$0xff] }
 0x15e   : > { %606 = vst.msk [vmem:[#allocation2 + $0x68] sm:$0xff] %vm592_vm9, %v571_v46  ;;  %2346 = vrot.lane.b32.xlu0 %v5997_v25, %s4678_s13 }
 0x15f   : > { %2348 = vrot.lane.b32.xlu1 %v6004_v9, %s4678_s13 }
 0x160   : > { %v1069_v13 = vpop.permute.xlu0 %1068  ;;  %v1700_v18 = vld [vmem:[#allocation2 + $0x58] sm:$0xff] }
 0x161   : > { %v1071_v49 = vpop.permute.xlu1 %1070  ;;  %1105 = vst.msk [vmem:[#allocation2 + $0x60] sm:$0xff] %vm1092_vm10, %v1069_v13  ;;  %4320 = vmatmul.mubr.msk.bf16.gmra.mrb[20].mxu0 %vm1732_vm0, %v1700_v18 }
 0x162   : > { %1106 = vst.msk [vmem:[#allocation2 + $0x68] sm:$0xff] %vm1092_vm10, %v1071_v49  ;;  %2350 = vrot.lane.b32.xlu0 %v6009_v48, %s4678_s13 }
 0x163   : > { %2352 = vrot.lane.b32.xlu1 %v6019_v8, %s4678_s13 }
 0x164   : > { %v1161_v44 = vpop.permute.xlu0 %1160 }
 0x165   : > { %v1163_v12 = vpop.permute.xlu1 %1162  ;;  %1197 = vst.msk [vmem:[#allocation2 + $0x60] sm:$0xff] %vm1184_vm11, %v1161_v44 }
 0x166   : > { %1198 = vst.msk [vmem:[#allocation2 + $0x68] sm:$0xff] %vm1184_vm11, %v1163_v12 }
 0x168   : > { %v1253_v56 = vpop.permute.xlu0 %1252 }
 0x169   : > { %v1255_v19 = vpop.permute.xlu1 %1254  ;;  %1289 = vst.msk [vmem:[#allocation2 + $0x60] sm:$0xff] %vm1276_vm12, %v1253_v56 }
 0x16a   : > { %1290 = vst.msk [vmem:[#allocation2 + $0x68] sm:$0xff] %vm1276_vm12, %v1255_v19 }
 0x16c   : > { %v1497_v53 = vpop.permute.xlu0 %1496 }
 0x16d   : > { %v1499_v35 = vpop.permute.xlu1 %1498  ;;  %1533 = vst.msk [vmem:[#allocation2 + $0x60] sm:$0xff] %vm1520_vm13, %v1497_v53 }
 0x16e   : > { %1534 = vst.msk [vmem:[#allocation2 + $0x68] sm:$0xff] %vm1520_vm13, %v1499_v35 }
 0x170   : > { %v1573_v34 = vpop.permute.xlu0 %1572 }
 0x171   : > { %v1575_v21 = vpop.permute.xlu1 %1574  ;;  %1609 = vst.msk [vmem:[#allocation2 + $0x60] sm:$0xff] %vm1596_vm14, %v1573_v34 }
 0x172   : > { %1610 = vst.msk [vmem:[#allocation2 + $0x68] sm:$0xff] %vm1596_vm14, %v1575_v21 }
 0x174   : > { %v1649_v32 = vpop.permute.xlu0 %1648 }
 0x175   : > { %v503_v60 = vpop.permute.xlu1 %502  ;;  %1685 = vst.msk [vmem:[#allocation2 + $0x60] sm:$0xff] %vm1672_vm15, %v1649_v32 }
 0x176   : > { %537 = vst.msk [vmem:[#allocation2 + $0x70] sm:$0xff] %vm522_vm8, %v503_v60 }
 0x178   : > { %v1651_v17 = vpop.permute.xlu0 %1650 }
 0x179   : > { %v505_v36 = vpop.permute.xlu1 %504  ;;  %1686 = vst.msk [vmem:[#allocation2 + $0x68] sm:$0xff] %vm1672_vm15, %v1651_v17 }
 0x17a   : > { %538 = vst.msk [vmem:[#allocation2 + $0x78] sm:$0xff] %vm522_vm8, %v505_v36 }
 0x17c   : > { %v573_v16 = vpop.permute.xlu0 %572  ;;  %v1701_v5 = vld [vmem:[#allocation2 + $0x60] sm:$0xff] }
 0x17d   : > { %v575_v39 = vpop.permute.xlu1 %574  ;;  %607 = vst.msk [vmem:[#allocation2 + $0x70] sm:$0xff] %vm592_vm9, %v573_v16  ;;  %4323 = vmatprep.mubr.msk.bf16.mxu0 %vm1732_vm0, %v1701_v5 }
 0x17e   : > { %608 = vst.msk [vmem:[#allocation2 + $0x78] sm:$0xff] %vm592_vm9, %v575_v39 }
 0x180   : > { %v1073_v47 = vpop.permute.xlu0 %1072  ;;  %v1702_v7 = vld [vmem:[#allocation2 + $0x68] sm:$0xff] }
 0x181   : > { %v1075_v57 = vpop.permute.xlu1 %1074  ;;  %1107 = vst.msk [vmem:[#allocation2 + $0x70] sm:$0xff] %vm1092_vm10, %v1073_v47  ;;  %4324 = vmatmul.mubr.msk.bf16.gmra.mrb[24].mxu0 %vm1732_vm0, %v1702_v7 }
 0x182   : > { %1108 = vst.msk [vmem:[#allocation2 + $0x78] sm:$0xff] %vm1092_vm10, %v1075_v57 }
 0x184   : > { %v1165_v4 = vpop.permute.xlu0 %1164 }
 0x185   : > { %v1167_v6 = vpop.permute.xlu1 %1166  ;;  %1199 = vst.msk [vmem:[#allocation2 + $0x70] sm:$0xff] %vm1184_vm11, %v1165_v4 }
 0x186   : > { %1200 = vst.msk [vmem:[#allocation2 + $0x78] sm:$0xff] %vm1184_vm11, %v1167_v6 }
 0x188   : > { %v1257_v28 = vpop.permute.xlu0 %1256 }
 0x189   : > { %v1259_v37 = vpop.permute.xlu1 %1258  ;;  %1291 = vst.msk [vmem:[#allocation2 + $0x70] sm:$0xff] %vm1276_vm12, %v1257_v28 }
 0x18a   : > { %1292 = vst.msk [vmem:[#allocation2 + $0x78] sm:$0xff] %vm1276_vm12, %v1259_v37 }
 0x18c   : > { %v1501_v52 = vpop.permute.xlu0 %1500 }
 0x18d   : > { %v1503_v58 = vpop.permute.xlu1 %1502  ;;  %1535 = vst.msk [vmem:[#allocation2 + $0x70] sm:$0xff] %vm1520_vm13, %v1501_v52 }
 0x18e   : > { %1536 = vst.msk [vmem:[#allocation2 + $0x78] sm:$0xff] %vm1520_vm13, %v1503_v58 }
 0x190   : > { %v1577_v10 = vpop.permute.xlu0 %1576 }
 0x191   : > { %v1579_v62 = vpop.permute.xlu1 %1578  ;;  %1611 = vst.msk [vmem:[#allocation2 + $0x70] sm:$0xff] %vm1596_vm14, %v1577_v10 }
 0x192   : > { %1612 = vst.msk [vmem:[#allocation2 + $0x78] sm:$0xff] %vm1596_vm14, %v1579_v62 }
 0x194   : > { %v1653_v46 = vpop.permute.xlu0 %1652  ;;  %v4301_v43 = vpop.f32.mrb[0].mxu0 }
 0x195   : > { %1687 = vst.msk [vmem:[#allocation2 + $0x70] sm:$0xff] %vm1672_vm15, %v1653_v46  ;;  %v1828_v13 = vadd.f32 %v4301_v43, %v6036_v59  ;;  %v1655_v49 = vpop.permute.xlu1 %1654  ;;  %v1819_v18 = vpop.f32.mrb[1].mxu0 }
 0x196   : > { %1688 = vst.msk [vmem:[#allocation2 + $0x78] sm:$0xff] %vm1672_vm15, %v1655_v49  ;;  %v1820_v44 = vadd.f32 %v6036_v59, %v1819_v18  ;;  %v4302_v12 = vpop.f32.mrb[2].mxu0 }
 0x197   : > { %v1831_v56 = vadd.f32 %v4302_v12, %v6036_v59  ;;  %v1822_v19 = vpop.f32.mrb[3].mxu0  ;;  %v1948_v34 = vmax.f32 %v1828_v13, 0.0 }
 0x198   : > { %v1823_v53 = vadd.f32 %v6036_v59, %v1822_v19  ;;  %v2291_v35 = vpop.permute.xlu0 %2290  ;;  %v1946_v17 = vmax.f32 %v1820_v44, 0.0 }
 0x199   : > { %v1949_v21 = vmax.f32 %v1831_v56, 0.0  ;;  %v6045_v32 = vsub.f32 %v5750_v41, %v2291_v35  ;;  %v2293_v60 = vpop.permute.xlu1 %2292 }
 0x19a   : > { %v1947_v36 = vmax.f32 %v1823_v53, 0.0  ;;  %v6048_v16 = vsub.f32 %v5755_v2, %v2293_v60 }
 0x19b   : > { %v1979_v39 = vpack.c.bf16 %v1949_v21, %v1948_v34  ;;  %2482 = vrot.lane.b32.xlu0 %v6045_v32, %s4679_s19 }
 0x19c   : > { %v1978_v5 = vpack.c.bf16 %v1947_v36, %v1946_v17  ;;  %v1703_v47 = vld [vmem:[#allocation2 + $0x70] sm:$0xff]  ;;  %v2295_v57 = vpop.permute.xlu0 %2294  ;;  %2484 = vrot.lane.b32.xlu1 %v6048_v16, %s4679_s19 }
 0x19d   : > { %4327 = vmatprep.mubr.msk.bf16.mxu0 %vm1732_vm0, %v1703_v47  ;;  %v1704_v41 = vld [vmem:[#allocation2 + $0x78] sm:$0xff]  ;;  %v6056_v7 = vsub.f32 %v5766_v54, %v2295_v57  ;;  %v2297_v4 = vpop.permute.xlu1 %2296 }
 0x19e   : > { %4328 = vmatmul.mubr.msk.bf16.gmra.mrb[28].mxu0 %vm1732_vm0, %v1704_v41  ;;  %v6060_v2 = vsub.f32 %v5771_v22, %v2297_v4 }
 0x19f   : > { %4347 = vmatprep.mubr.bf16.mxu0 %v1978_v5  ;;  %2486 = vrot.lane.b32.xlu0 %v6056_v7, %s4679_s19 }
 0x1a0   : > { %2488 = vrot.lane.b32.xlu1 %v6060_v2, %s4679_s19  ;;  %v2299_v6 = vpop.permute.xlu0 %2298 }
 0x1a1   : > { %v6067_v28 = vsub.f32 %v5782_v27, %v2299_v6  ;;  %v2301_v37 = vpop.permute.xlu1 %2300 }
 0x1a2   : > { %v6070_v54 = vsub.f32 %v5787_v55, %v2301_v37 }
 0x1a3   : > { %2490 = vrot.lane.b32.xlu0 %v6067_v28, %s4679_s19 }
 0x1a4   : > { %v2303_v22 = vpop.permute.xlu0 %2302  ;;  %2492 = vrot.lane.b32.xlu1 %v6070_v54, %s4679_s19 }
 0x1a5   : > { %v6077_v52 = vsub.f32 %v5798_v24, %v2303_v22  ;;  %v2305_v58 = vpop.permute.xlu1 %2304 }
 0x1a6   : > { %4348 = vmatmul.mubr.bf16.vlgmr.msra.gmra.mrb[32].mxu0 %v1979_v39  ;;  %v6080_v10 = vsub.f32 %v5803_v23, %v2305_v58 }
 0x1a7   : > { %2494 = vrot.lane.b32.xlu0 %v6077_v52, %s4679_s19 }
 0x1a8   : > { %2496 = vrot.lane.b32.xlu1 %v6080_v10, %s4679_s19  ;;  %v2307_v53 = vpop.permute.xlu0 %2306 }
 0x1a9   : > { %v6091_v35 = vsub.f32 %v5821_v33, %v2307_v53  ;;  %v2309_v34 = vpop.permute.xlu1 %2308 }
 0x1aa   : > { %v6094_v21 = vsub.f32 %v5826_v20, %v2309_v34 }
 0x1ab   : > { %2498 = vrot.lane.b32.xlu0 %v6091_v35, %s4679_s19 }
 0x1ac   : > { %v2311_v60 = vpop.permute.xlu0 %2310  ;;  %2500 = vrot.lane.b32.xlu1 %v6094_v21, %s4679_s19 }
 0x1ad   : > { %v6099_v17 = vsub.f32 %v5838_v0, %v2311_v60  ;;  %v2313_v36 = vpop.permute.xlu1 %2312 }
 0x1ae   : > { %v6104_v33 = vsub.f32 %v5843_v15, %v2313_v36 }
 0x1af   : > { %2502 = vrot.lane.b32.xlu0 %v6099_v17, %s4679_s19 }
 0x1b0   : > { %2504 = vrot.lane.b32.xlu1 %v6104_v33, %s4679_s19  ;;  %v2315_v20 = vpop.permute.xlu0 %2314 }
 0x1b1   : > { %v6111_v39 = vsub.f32 %v5867_v63, %v2315_v20  ;;  %v2317_v5 = vpop.permute.xlu1 %2316 }
 0x1b2   : > { %v6114_v0 = vsub.f32 %v5874_v14, %v2317_v5 }
 0x1b3   : > { %2506 = vrot.lane.b32.xlu0 %v6111_v39, %s4679_s19 }
 0x1b4   : > { %v4305_v27 = vpop.f32.mrb[4].mxu0  ;;  %v2319_v41 = vpop.permute.xlu0 %2318  ;;  %2508 = vrot.lane.b32.xlu1 %v6114_v0, %s4679_s19 }
 0x1b5   : > { %v1844_v55 = vadd.f32 %v4305_v27, %v6036_v59  ;;  %v1835_v62 = vpop.f32.mrb[5].mxu0  ;;  %v6124_v14 = vsub.f32 %v5881_v51, %v2319_v41  ;;  %v2321_v22 = vpop.permute.xlu1 %2320 }
 0x1b6   : > { %v1836_v46 = vadd.f32 %v6036_v59, %v1835_v62  ;;  %v4306_v43 = vpop.f32.mrb[6].mxu0 }
 0x1b7   : > { %v1847_v24 = vadd.f32 %v4306_v43, %v6036_v59  ;;  %v1838_v13 = vpop.f32.mrb[7].mxu0  ;;  %v1952_v23 = vmax.f32 %v1844_v55, 0.0  ;;  %2510 = vrot.lane.b32.xlu0 %v6124_v14, %s4679_s19 }
 0x1b8   : > { %v1839_v49 = vadd.f32 %v6036_v59, %v1838_v13  ;;  %v1950_v44 = vmax.f32 %v1836_v46, 0.0  ;;  %v2323_v62 = vpop.permute.xlu0 %2322  ;;  %v6130_v13 = vsub.f32 %v5889_v3, %v2321_v22 }
 0x1b9   : > { %v1953_v18 = vmax.f32 %v1847_v24, 0.0  ;;  %v6133_v51 = vsub.f32 %v5898_v1, %v2323_v62 }
 0x1ba   : > { %v1951_v12 = vmax.f32 %v1839_v49, 0.0  ;;  %v2325_v49 = vpop.permute.xlu1 %2324  ;;  %2512 = vrot.lane.b32.xlu1 %v6130_v13, %s4679_s19 }
 0x1bb   : > { %v1981_v56 = vpack.c.bf16 %v1953_v18, %v1952_v23  ;;  %v6136_v18 = vsub.f32 %v5905_v50, %v2325_v49  ;;  %2514 = vrot.lane.b32.xlu0 %v6133_v51, %s4679_s19 }
 0x1bc   : > { %v1980_v19 = vpack.c.bf16 %v1951_v12, %v1950_v44  ;;  %v2327_v44 = vpop.permute.xlu0 %2326 }
 0x1bd   : > { %v6141_v12 = vsub.f32 %v5914_v61, %v2327_v44 }
 0x1be   : > { %4351 = vmatprep.mubr.bf16.mxu1 %v1980_v19  ;;  %v2329_v3 = vpop.permute.xlu1 %2328  ;;  %2516 = vrot.lane.b32.xlu1 %v6136_v18, %s4679_s19 }
 0x1bf   : > { %4352 = vmatmul.mubr.bf16.vlgmr.msra.gmra.mrb[0].mxu1 %v1981_v56  ;;  %v6146_v56 = vsub.f32 %v5921_v29, %v2329_v3  ;;  %2518 = vrot.lane.b32.xlu0 %v6141_v12, %s4679_s19 }
 0x1c0   : > { %v2331_v1 = vpop.permute.xlu0 %2330 }
 0x1c1   : > { %v6151_v50 = vsub.f32 %v5930_v42, %v2331_v1 }
 0x1c2   : > { %v2333_v61 = vpop.permute.xlu1 %2332  ;;  %2520 = vrot.lane.b32.xlu1 %v6146_v56, %s4679_s19 }
 0x1c3   : > { %v6156_v19 = vsub.f32 %v5937_v45, %v2333_v61  ;;  %2522 = vrot.lane.b32.xlu0 %v6151_v50, %s4679_s19 }
 0x1c4   : > { %v2335_v53 = vpop.permute.xlu0 %2334 }
 0x1c5   : > { %v6161_v29 = vsub.f32 %v5946_v40, %v2335_v53 }
 0x1c6   : > { %v2337_v34 = vpop.permute.xlu1 %2336  ;;  %2524 = vrot.lane.b32.xlu1 %v6156_v19, %s4679_s19 }
 0x1c7   : > { %v6166_v42 = vsub.f32 %v5955_v30, %v2337_v34  ;;  %2526 = vrot.lane.b32.xlu0 %v6161_v29, %s4679_s19 }
 0x1c8   : > { %v2339_v60 = vpop.permute.xlu0 %2338 }
 0x1c9   : > { %v6171_v45 = vsub.f32 %v5964_v11, %v2339_v60 }
 0x1ca   : > { %v2341_v36 = vpop.permute.xlu1 %2340  ;;  %2528 = vrot.lane.b32.xlu1 %v6166_v42, %s4679_s19 }
 0x1cb   : > { %v6176_v40 = vsub.f32 %v5971_v26, %v2341_v36  ;;  %2530 = vrot.lane.b32.xlu0 %v6171_v45, %s4679_s19 }
 0x1cc   : > { %v2343_v20 = vpop.permute.xlu0 %2342 }
 0x1cd   : > { %v6181_v30 = vsub.f32 %v5980_v38, %v2343_v20 }
 0x1ce   : > { %v2345_v5 = vpop.permute.xlu1 %2344  ;;  %2532 = vrot.lane.b32.xlu1 %v6176_v40, %s4679_s19 }
 0x1cf   : > { %v6186_v11 = vsub.f32 %v5987_v31, %v2345_v5  ;;  %2534 = vrot.lane.b32.xlu0 %v6181_v30, %s4679_s19 }
 0x1d2   : > { %2536 = vrot.lane.b32.xlu1 %v6186_v11, %s4679_s19 }
 0x1d4   : > { %v4309_v47 = vpop.f32.mrb[8].mxu0 }
 0x1d5   : > { %v1860_v15 = vadd.f32 %v4309_v47, %v6036_v59  ;;  %v1851_v57 = vpop.f32.mrb[9].mxu0  ;;  %v2347_v47 = vpop.permute.xlu0 %2346 }
 0x1d6   : > { %v1852_v4 = vadd.f32 %v6036_v59, %v1851_v57  ;;  %v4310_v6 = vpop.f32.mrb[10].mxu0  ;;  %v6191_v26 = vsub.f32 %v5997_v25, %v2347_v47 }
 0x1d7   : > { %v1863_v63 = vadd.f32 %v4310_v6, %v6036_v59  ;;  %v1854_v37 = vpop.f32.mrb[11].mxu0  ;;  %v1956_v27 = vmax.f32 %v1860_v15, 0.0  ;;  %v2349_v15 = vpop.permute.xlu1 %2348 }
 0x1d8   : > { %v1855_v58 = vadd.f32 %v6036_v59, %v1854_v37  ;;  %v1954_v46 = vmax.f32 %v1852_v4, 0.0  ;;  %v6197_v4 = vsub.f32 %v6004_v9, %v2349_v15  ;;  %2538 = vrot.lane.b32.xlu0 %v6191_v26, %s4679_s19 }
 0x1d9   : > { %v1957_v55 = vmax.f32 %v1863_v63, 0.0  ;;  %v2351_v22 = vpop.permute.xlu0 %2350 }
 0x1da   : > { %v1955_v43 = vmax.f32 %v1855_v58, 0.0  ;;  %v6207_v9 = vsub.f32 %v6009_v48, %v2351_v22  ;;  %2540 = vrot.lane.b32.xlu1 %v6197_v4, %s4679_s19 }
 0x1db   : > { %v1983_v24 = vpack.c.bf16 %v1957_v55, %v1956_v27  ;;  %v2353_v58 = vpop.permute.xlu1 %2352 }
 0x1dc   : > { %v1982_v23 = vpack.c.bf16 %v1955_v43, %v1954_v46  ;;  %v6210_v62 = vsub.f32 %v6019_v8, %v2353_v58  ;;  %2542 = vrot.lane.b32.xlu0 %v6207_v9, %s4679_s19 }
 0x1de   : > { %4355 = vmatprep.mubr.bf16.mxu1 %v1982_v23  ;;  %2544 = vrot.lane.b32.xlu1 %v6210_v62, %s4679_s19 }
 0x1df   : > { %4356 = vmatmul.mubr.bf16.gmra.mrb[4].mxu1 %v1983_v24 }
 0x1f4   : > { %v4313_v38 = vpop.f32.mrb[12].mxu0 }
 0x1f5   : > { %v1876_v57 = vadd.f32 %v4313_v38, %v6036_v59  ;;  %v1867_v41 = vpop.f32.mrb[13].mxu0 }
 0x1f6   : > { %v1868_v31 = vadd.f32 %v6036_v59, %v1867_v41  ;;  %v4314_v6 = vpop.f32.mrb[14].mxu0 }
 0x1f7   : > { %v1879_v25 = vadd.f32 %v4314_v6, %v6036_v59  ;;  %v1870_v63 = vpop.f32.mrb[15].mxu0  ;;  %v1960_v27 = vmax.f32 %v1876_v57, 0.0 }
 0x1f8   : > { %v1871_v37 = vadd.f32 %v6036_v59, %v1870_v63  ;;  %v1958_v46 = vmax.f32 %v1868_v31, 0.0 }
 0x1f9   : > { %v1961_v55 = vmax.f32 %v1879_v25, 0.0 }
 0x1fa   : > { %v1959_v43 = vmax.f32 %v1871_v37, 0.0 }
 0x1fb   : > { %v1985_v24 = vpack.c.bf16 %v1961_v55, %v1960_v27 }
 0x1fc   : > { %v1984_v49 = vpack.c.bf16 %v1959_v43, %v1958_v46 }
 0x1fe   : > { %4359 = vmatprep.mubr.bf16.mxu1 %v1984_v49 }
 0x1ff   : > { %4360 = vmatmul.mubr.bf16.gmra.mrb[8].mxu1 %v1985_v24 }
 0x214   : > { %v4317_v48 = vpop.f32.mrb[16].mxu0 }
 0x215   : > { %v1892_v23 = vadd.f32 %v4317_v48, %v6036_v59  ;;  %v1883_v8 = vpop.f32.mrb[17].mxu0 }
 0x216   : > { %v1884_v44 = vadd.f32 %v6036_v59, %v1883_v8  ;;  %v4318_v3 = vpop.f32.mrb[18].mxu0 }
 0x217   : > { %v1895_v1 = vadd.f32 %v4318_v3, %v6036_v59  ;;  %v1886_v61 = vpop.f32.mrb[19].mxu0  ;;  %v1964_v34 = vmax.f32 %v1892_v23, 0.0 }
 0x218   : > { %v1887_v53 = vadd.f32 %v6036_v59, %v1886_v61  ;;  %v1962_v36 = vmax.f32 %v1884_v44, 0.0 }
 0x219   : > { %v1965_v60 = vmax.f32 %v1895_v1, 0.0 }
 0x21a   : > { %v1963_v20 = vmax.f32 %v1887_v53, 0.0 }
 0x21b   : > { %v1987_v5 = vpack.c.bf16 %v1965_v60, %v1964_v34 }
 0x21c   : > { %v1986_v47 = vpack.c.bf16 %v1963_v20, %v1962_v36 }
 0x21e   : > { %4363 = vmatprep.mubr.bf16.mxu1 %v1986_v47 }
 0x21f   : > { %4364 = vmatmul.mubr.bf16.gmra.mrb[12].mxu1 %v1987_v5 }
 0x234   : > { %v4321_v15 = vpop.f32.mrb[20].mxu0 }
 0x235   : > { %v1908_v38 = vadd.f32 %v4321_v15, %v6036_v59  ;;  %v1899_v57 = vpop.f32.mrb[21].mxu0 }
 0x236   : > { %v1900_v41 = vadd.f32 %v6036_v59, %v1899_v57  ;;  %v4322_v31 = vpop.f32.mrb[22].mxu0 }
 0x237   : > { %v1911_v6 = vadd.f32 %v4322_v31, %v6036_v59  ;;  %v1902_v25 = vpop.f32.mrb[23].mxu0  ;;  %v1968_v37 = vmax.f32 %v1908_v38, 0.0 }
 0x238   : > { %v1903_v63 = vadd.f32 %v6036_v59, %v1902_v25  ;;  %v1966_v58 = vmax.f32 %v1900_v41, 0.0 }
 0x239   : > { %v1969_v22 = vmax.f32 %v1911_v6, 0.0  ;;  %v2483_v6 = vpop.permute.xlu0 %2482 }
 0x23a   : > { %v1967_v27 = vmax.f32 %v1903_v63, 0.0 }
 0x23b   : > { %v1989_v55 = vpack.c.bf16 %v1969_v22, %v1968_v37 }
 0x23c   : > { %v1988_v46 = vpack.c.bf16 %v1967_v27, %v1966_v58  ;;  %v6237_v58 = vld [vmem:[%s7731_s5] ss:$0 sm:$0xff]  ;;  %v2485_v27 = vpop.permute.xlu1 %2484 }
 0x23e   : > { %4367 = vmatprep.mubr.bf16.mxu1 %v1988_v46 }
 0x23f   : > { %4368 = vmatmul.mubr.bf16.gmra.mrb[16].mxu1 %v1989_v55 }
 0x254   : > { %v4325_v43 = vpop.f32.mrb[24].mxu0 }
 0x255   : > { %v1924_v24 = vadd.f32 %v4325_v43, %v6036_v59  ;;  %v1915_v49 = vpop.f32.mrb[25].mxu0 }
 0x256   : > { %v1916_v48 = vadd.f32 %v6036_v59, %v1915_v49  ;;  %v4326_v23 = vpop.f32.mrb[26].mxu0 }
 0x257   : > { %v1927_v8 = vadd.f32 %v4326_v23, %v6036_v59  ;;  %v1918_v44 = vpop.f32.mrb[27].mxu0  ;;  %v1972_v1 = vmax.f32 %v1924_v24, 0.0  ;;  %v2487_v23 = vpop.permute.xlu0 %2486 }
 0x258   : > { %v1919_v3 = vadd.f32 %v6036_v59, %v1918_v44  ;;  %v1970_v53 = vmax.f32 %v1916_v48, 0.0 }
 0x259   : > { %v1973_v61 = vmax.f32 %v1927_v8, 0.0 }
 0x25a   : > { %v1971_v34 = vmax.f32 %v1919_v3, 0.0 }
 0x25b   : > { %v1991_v60 = vpack.c.bf16 %v1973_v61, %v1972_v1  ;;  %v2489_v61 = vpop.permute.xlu1 %2488 }
 0x25c   : > { %v1990_v36 = vpack.c.bf16 %v1971_v34, %v1970_v53 }
 0x25e   : > { %4371 = vmatprep.mubr.bf16.mxu1 %v1990_v36 }
 0x25f   : > { %4372 = vmatmul.mubr.bf16.gmra.mrb[20].mxu1 %v1991_v60 }
 0x271   : > { %v4329_v20 = vpop.f32.mrb[28].mxu0 }
 0x272   : > { %v1940_v5 = vadd.f32 %v4329_v20, %v6036_v59  ;;  %v1931_v47 = vpop.f32.mrb[29].mxu0 }
 0x273   : > { %v1932_v15 = vadd.f32 %v6036_v59, %v1931_v47  ;;  %v4330_v38 = vpop.f32.mrb[30].mxu0 }
 0x274   : > { %v1943_v57 = vadd.f32 %v4330_v38, %v6036_v59  ;;  %v1934_v41 = vpop.f32.mrb[31].mxu0  ;;  %v1976_v25 = vmax.f32 %v1940_v5, 0.0  ;;  %v2493_v38 = vpop.permute.xlu1 %2492 }
 0x275   : > { %v1935_v31 = vadd.f32 %v6036_v59, %v1934_v41  ;;  %v1974_v37 = vmax.f32 %v1932_v15, 0.0  ;;  %v2491_v15 = vpop.permute.xlu0 %2490 }
 0x276   : > { %v1977_v63 = vmax.f32 %v1943_v57, 0.0 }
 0x277   : > { %v1975_v22 = vmax.f32 %v1935_v31, 0.0 }
 0x278   : > { %v1993_v55 = vpack.c.bf16 %v1977_v63, %v1976_v25 }
 0x279   : > { %v1992_v46 = vpack.c.bf16 %v1975_v22, %v1974_v37  ;;  %v4349_v43 = vpop.f32.mrb[32].mxu0  ;;  %v2495_v22 = vpop.permute.xlu0 %2494 }
 0x27a   : > { %v6240_v24 = vadd.f32 %v4349_v43, %v6237_v58  ;;  %v2099_v49 = vpop.f32.mrb[33].mxu0 }
 0x27b   : > { %v6243_v59 = vadd.f32 %v6237_v58, %v2099_v49  ;;  %v4350_v48 = vpop.f32.mrb[34].mxu0  ;;  %4375 = vmatprep.mubr.bf16.mxu1 %v1992_v46 }
 0x27c   : > { %7840 = vst [vmem:[#allocation6_spill] sm:$0xff] %v6240_v24  ;;  %v6246_v8 = vadd.f32 %v4350_v48, %v6237_v58  ;;  %v2102_v44 = vpop.f32.mrb[35].mxu0  ;;  %4376 = vmatmul.mubr.bf16.gmra.mrb[24].mxu1 %v1993_v55  ;;  %v2420_v3 = vadd.f32 0.5, %v6240_v24  ;;  %v2806_v57 = vmul.f32 1.442695, %v6240_v24  ;;  %v2497_v48 = vpop.permute.xlu1 %2496 }
 0x27d   : > { %7841 = vst [vmem:[#allocation7_spill] sm:$0xff] %v6243_v59  ;;  %v6250_v1 = vadd.f32 %v6237_v58, %v2102_v44  ;;  %v2418_v53 = vadd.f32 0.5, %v6243_v59  ;;  %v2802_v43 = vmul.f32 1.442695, %v6243_v59 }
 0x27e   : > { %7842 = vst [vmem:[#allocation8_spill] sm:$0xff] %v6246_v8  ;;  %v2580_v34 = vmul.f32 %v2487_v23, %v2420_v3  ;;  %v2421_v60 = vadd.f32 0.5, %v6246_v8  ;;  %v2808_v63 = vmul.f32 1.442695, %v6246_v8  ;;  %4494 = vpow2.f32 %v2806_v57 }
 0x27f   : > { %7843 = vst [vmem:[#allocation9_spill] sm:$0xff] %v6250_v1  ;;  %v2419_v36 = vadd.f32 0.5, %v6250_v1  ;;  %v2578_v5 = vmul.f32 %v2483_v6, %v2418_v53 }
 0x280   : > { %v2581_v20 = vmul.f32 %v2489_v61, %v2421_v60  ;;  %2646 = vrot.lane.b32.xlu0 %v2580_v34, %s4679_s19  ;;  %4496 = vpow2.f32 %v2808_v63  ;;  %v2804_v61 = vmul.f32 1.442695, %v6250_v1 }
 0x281   : > { %v2579_v47 = vmul.f32 %v2485_v27, %v2419_v36  ;;  %4498 = vpow2.f32 %v2802_v43 }
 0x282   : > { %2648 = vrot.lane.b32.xlu1 %v2581_v20, %s4679_s19  ;;  %4500 = vpow2.f32 %v2804_v61 }
 0x284   : > { %2642 = vrot.lane.b32.xlu0 %v2578_v5, %s4679_s19 }
 0x286   : > { %2644 = vrot.lane.b32.xlu1 %v2579_v47, %s4679_s19 }
 0x288   : > { %v4495_v20 = vpop.eup %4494 }
 0x28a   : > { %v4497_v5 = vpop.eup %4496 }
 0x28b   : > { %v4499_v47 = vpop.eup %4498 }
 0x28c   : > { %v4501_v57 = vpop.eup %4500 }
 0x292   : > { %v4353_v41 = vpop.f32.mrb[0].mxu1 }
 0x293   : > { %v6261_v31 = vadd.f32 %v4353_v41, %v6237_v58  ;;  %v2115_v25 = vpop.f32.mrb[1].mxu1  ;;  %v2501_v41 = vpop.permute.xlu1 %2500 }
 0x294   : > { %v6265_v6 = vadd.f32 %v6237_v58, %v2115_v25  ;;  %v4354_v37 = vpop.f32.mrb[2].mxu1 }
 0x295   : > { %7844 = vst [vmem:[#allocation10_spill] sm:$0xff] %v6261_v31  ;;  %v6268_v27 = vadd.f32 %v4354_v37, %v6237_v58  ;;  %v2118_v55 = vpop.f32.mrb[3].mxu1  ;;  %v2424_v46 = vadd.f32 0.5, %v6261_v31 }
 0x296   : > { %7845 = vst [vmem:[#allocation11_spill] sm:$0xff] %v6265_v6  ;;  %v6273_v49 = vadd.f32 %v6237_v58, %v2118_v55  ;;  %v2422_v23 = vadd.f32 0.5, %v6265_v6 }
 0x297   : > { %7846 = vst [vmem:[#allocation12_spill] sm:$0xff] %v6268_v27  ;;  %v2584_v44 = vmul.f32 %v2495_v22, %v2424_v46  ;;  %v2425_v3 = vadd.f32 0.5, %v6268_v27  ;;  %v2816_v22 = vmul.f32 1.442695, %v6268_v27 }
 0x298   : > { %7847 = vst [vmem:[#allocation13_spill] sm:$0xff] %v6273_v49  ;;  %v2423_v53 = vadd.f32 0.5, %v6273_v49  ;;  %v2582_v60 = vmul.f32 %v2491_v15, %v2422_v23  ;;  %v2499_v15 = vpop.permute.xlu0 %2498 }
 0x299   : > { %v2585_v34 = vmul.f32 %v2497_v48, %v2425_v3  ;;  %2654 = vrot.lane.b32.xlu0 %v2584_v44, %s4679_s19  ;;  %v2810_v3 = vmul.f32 1.442695, %v6265_v6 }
 0x29a   : > { %v2583_v36 = vmul.f32 %v2493_v38, %v2423_v53  ;;  %v2814_v38 = vmul.f32 1.442695, %v6261_v31  ;;  %v2505_v53 = vpop.permute.xlu1 %2504 }
 0x29b   : > { %2656 = vrot.lane.b32.xlu1 %v2585_v34, %s4679_s19 }
 0x29c   : > { %v2503_v43 = vpop.permute.xlu0 %2502  ;;  %4502 = vpow2.f32 %v2814_v38 }
 0x29d   : > { %2650 = vrot.lane.b32.xlu0 %v2582_v60, %s4679_s19  ;;  %4504 = vpow2.f32 %v2816_v22 }
 0x29e   : > { %4506 = vpow2.f32 %v2810_v3 }
 0x29f   : > { %2652 = vrot.lane.b32.xlu1 %v2583_v36, %s4679_s19 }
 0x2a1   : > { %2902 = vrot.lane.b32.xlu0 %v4495_v20, %s4679_s19  ;;  %v2812_v20 = vmul.f32 1.442695, %v6273_v49 }
 0x2a3   : > { %2904 = vrot.lane.b32.xlu1 %v4497_v5, %s4679_s19  ;;  %4508 = vpow2.f32 %v2812_v20 }
 0x2a5   : > { %2898 = vrot.lane.b32.xlu0 %v4499_v47, %s4679_s19 }
 0x2a7   : > { %2900 = vrot.lane.b32.xlu1 %v4501_v57, %s4679_s19 }
 0x2b2   : > { %v4357_v25 = vpop.f32.mrb[4].mxu1 }
 0x2b3   : > { %v6289_v63 = vadd.f32 %v4357_v25, %v6237_v58  ;;  %v2131_v37 = vpop.f32.mrb[5].mxu1  ;;  %v4503_v25 = vpop.eup %4502 }
 0x2b4   : > { %v6293_v55 = vadd.f32 %v6237_v58, %v2131_v37  ;;  %v4358_v46 = vpop.f32.mrb[6].mxu1  ;;  %v4505_v37 = vpop.eup %4504 }
 0x2b5   : > { %7848 = vst [vmem:[#allocation14_spill] sm:$0xff] %v6289_v63  ;;  %v6296_v48 = vadd.f32 %v4358_v46, %v6237_v58  ;;  %v2134_v23 = vpop.f32.mrb[7].mxu1  ;;  %v2428_v44 = vadd.f32 0.5, %v6289_v63  ;;  %v4507_v22 = vpop.eup %4506 }
 0x2b6   : > { %7849 = vst [vmem:[#allocation15_spill] sm:$0xff] %v6293_v55  ;;  %v6301_v61 = vadd.f32 %v6237_v58, %v2134_v23  ;;  %v2426_v34 = vadd.f32 0.5, %v6293_v55  ;;  %v4509_v46 = vpop.eup %4508 }
 0x2b7   : > { %7850 = vst [vmem:[#allocation16_spill] sm:$0xff] %v6296_v48  ;;  %v2588_v60 = vmul.f32 %v2503_v43, %v2428_v44  ;;  %v2429_v36 = vadd.f32 0.5, %v6296_v48  ;;  %v2822_v43 = vmul.f32 1.442695, %v6289_v63 }
 0x2b8   : > { %7851 = vst [vmem:[#allocation17_spill] sm:$0xff] %v6301_v61  ;;  %v2427_v5 = vadd.f32 0.5, %v6301_v61  ;;  %v2586_v57 = vmul.f32 %v2499_v15, %v2426_v34  ;;  %v2507_v15 = vpop.permute.xlu0 %2506 }
 0x2b9   : > { %v2589_v47 = vmul.f32 %v2505_v53, %v2429_v36  ;;  %2662 = vrot.lane.b32.xlu0 %v2588_v60, %s4679_s19  ;;  %v2824_v53 = vmul.f32 1.442695, %v6296_v48  ;;  %4510 = vpow2.f32 %v2822_v43 }
 0x2ba   : > { %v2587_v38 = vmul.f32 %v2501_v41, %v2427_v5  ;;  %v2509_v41 = vpop.permute.xlu1 %2508 }
 0x2bb   : > { %2664 = vrot.lane.b32.xlu1 %v2589_v47, %s4679_s19  ;;  %v2818_v47 = vmul.f32 1.442695, %v6293_v55  ;;  %4512 = vpow2.f32 %v2824_v53 }
 0x2bd   : > { %2658 = vrot.lane.b32.xlu0 %v2586_v57, %s4679_s19  ;;  %v2511_v57 = vpop.permute.xlu0 %2510  ;;  %4514 = vpow2.f32 %v2818_v47 }
 0x2bf   : > { %2660 = vrot.lane.b32.xlu1 %v2587_v38, %s4679_s19 }
 0x2c1   : > { %2910 = vrot.lane.b32.xlu0 %v4503_v25, %s4679_s19 }
 0x2c3   : > { %2912 = vrot.lane.b32.xlu1 %v4505_v37, %s4679_s19 }
 0x2c5   : > { %2906 = vrot.lane.b32.xlu0 %v4507_v22, %s4679_s19 }
 0x2c7   : > { %2908 = vrot.lane.b32.xlu1 %v4509_v46, %s4679_s19  ;;  %v2820_v46 = vmul.f32 1.442695, %v6301_v61 }
 0x2c9   : > { %4516 = vpow2.f32 %v2820_v46 }
 0x2d2   : > { %v4361_v23 = vpop.f32.mrb[8].mxu1 }
 0x2d3   : > { %v6317_v44 = vadd.f32 %v4361_v23, %v6237_v58  ;;  %v2147_v3 = vpop.f32.mrb[9].mxu1  ;;  %v2513_v23 = vpop.permute.xlu1 %2512 }
 0x2d4   : > { %v6321_v34 = vadd.f32 %v6237_v58, %v2147_v3  ;;  %v4362_v60 = vpop.f32.mrb[10].mxu1 }
 0x2d5   : > { %7852 = vst [vmem:[#allocation18_spill] sm:$0xff] %v6317_v44  ;;  %v2432_v36 = vadd.f32 0.5, %v6317_v44  ;;  %v6325_v20 = vadd.f32 %v4362_v60, %v6237_v58  ;;  %v2150_v5 = vpop.f32.mrb[11].mxu1  ;;  %v2830_v47 = vmul.f32 1.442695, %v6317_v44 }
 0x2d6   : > { %7853 = vst [vmem:[#allocation19_spill] sm:$0xff] %v6321_v34  ;;  %v6329_v38 = vadd.f32 %v6237_v58, %v2150_v5  ;;  %v2430_v37 = vadd.f32 0.5, %v6321_v34 }
 0x2d7   : > { %7854 = vst [vmem:[#allocation20_spill] sm:$0xff] %v6325_v20  ;;  %v2592_v25 = vmul.f32 %v2511_v57, %v2432_v36  ;;  %v2433_v22 = vadd.f32 0.5, %v6325_v20  ;;  %v4511_v36 = vpop.eup %4510  ;;  %4518 = vpow2.f32 %v2830_v47 }
 0x2d8   : > { %7855 = vst [vmem:[#allocation21_spill] sm:$0xff] %v6329_v38  ;;  %v2431_v60 = vadd.f32 0.5, %v6329_v38  ;;  %v2590_v43 = vmul.f32 %v2507_v15, %v2430_v37  ;;  %v4513_v53 = vpop.eup %4512  ;;  %v2515_v15 = vpop.permute.xlu0 %2514  ;;  %v2828_v44 = vmul.f32 1.442695, %v6329_v38 }
 0x2d9   : > { %v2593_v3 = vmul.f32 %v2513_v23, %v2433_v22  ;;  %2670 = vrot.lane.b32.xlu0 %v2592_v25, %s4679_s19  ;;  %v4515_v57 = vpop.eup %4514  ;;  %v2832_v23 = vmul.f32 1.442695, %v6325_v20 }
 0x2da   : > { %v2591_v5 = vmul.f32 %v2509_v41, %v2431_v60  ;;  %v4517_v25 = vpop.eup %4516  ;;  %v2517_v41 = vpop.permute.xlu1 %2516 }
 0x2db   : > { %2672 = vrot.lane.b32.xlu1 %v2593_v3, %s4679_s19  ;;  %4520 = vpow2.f32 %v2832_v23 }
 0x2dd   : > { %2666 = vrot.lane.b32.xlu0 %v2590_v43, %s4679_s19 }
 0x2de   : > { %v2521_v61 = vpop.permute.xlu1 %2520 }
 0x2df   : > { %2668 = vrot.lane.b32.xlu1 %v2591_v5, %s4679_s19 }
 0x2e1   : > { %2918 = vrot.lane.b32.xlu0 %v4511_v36, %s4679_s19 }
 0x2e3   : > { %2920 = vrot.lane.b32.xlu1 %v4513_v53, %s4679_s19  ;;  %v2826_v53 = vmul.f32 1.442695, %v6321_v34 }
 0x2e5   : > { %2914 = vrot.lane.b32.xlu0 %v4515_v57, %s4679_s19  ;;  %v2519_v57 = vpop.permute.xlu0 %2518  ;;  %4522 = vpow2.f32 %v2826_v53 }
 0x2e6   : > { %4524 = vpow2.f32 %v2828_v44 }
 0x2e7   : > { %2916 = vrot.lane.b32.xlu1 %v4517_v25, %s4679_s19 }
 0x2f2   : > { %v4365_v37 = vpop.f32.mrb[12].mxu1 }
 0x2f3   : > { %v6345_v22 = vadd.f32 %v4365_v37, %v6237_v58  ;;  %v2163_v46 = vpop.f32.mrb[13].mxu1 }
 0x2f4   : > { %v6349_v3 = vadd.f32 %v6237_v58, %v2163_v46  ;;  %v4366_v60 = vpop.f32.mrb[14].mxu1 }
 0x2f5   : > { %7856 = vst [vmem:[#allocation22_spill] sm:$0xff] %v6345_v22  ;;  %v2436_v43 = vadd.f32 0.5, %v6345_v22  ;;  %v6353_v5 = vadd.f32 %v4366_v60, %v6237_v58  ;;  %v2166_v36 = vpop.f32.mrb[15].mxu1  ;;  %v2838_v53 = vmul.f32 1.442695, %v6345_v22 }
 0x2f6   : > { %7857 = vst [vmem:[#allocation23_spill] sm:$0xff] %v6349_v3  ;;  %v6357_v25 = vadd.f32 %v6237_v58, %v2166_v36  ;;  %v2434_v20 = vadd.f32 0.5, %v6349_v3  ;;  %v2834_v22 = vmul.f32 1.442695, %v6349_v3 }
 0x2f7   : > { %7858 = vst [vmem:[#allocation24_spill] sm:$0xff] %v6353_v5  ;;  %v2596_v37 = vmul.f32 %v2519_v57, %v2436_v43  ;;  %v2437_v46 = vadd.f32 0.5, %v6353_v5  ;;  %v4519_v43 = vpop.eup %4518  ;;  %v2523_v57 = vpop.permute.xlu0 %2522  ;;  %4526 = vpow2.f32 %v2838_v53 }
 0x2f8   : > { %7859 = vst [vmem:[#allocation25_spill] sm:$0xff] %v6357_v25  ;;  %v2435_v60 = vadd.f32 0.5, %v6357_v25  ;;  %v2594_v47 = vmul.f32 %v2515_v15, %v2434_v20  ;;  %v4521_v23 = vpop.eup %4520  ;;  %v2836_v49 = vmul.f32 1.442695, %v6357_v25 }
 0x2f9   : > { %v2597_v55 = vmul.f32 %v2521_v61, %v2437_v46  ;;  %2678 = vrot.lane.b32.xlu0 %v2596_v37, %s4679_s19  ;;  %v4523_v61 = vpop.eup %4522  ;;  %v2525_v46 = vpop.permute.xlu1 %2524 }
 0x2fa   : > { %v2595_v36 = vmul.f32 %v2517_v41, %v2435_v60  ;;  %v4525_v20 = vpop.eup %4524 }
 0x2fb   : > { %2680 = vrot.lane.b32.xlu1 %v2597_v55, %s4679_s19  ;;  %v2527_v55 = vpop.permute.xlu0 %2526 }
 0x2fd   : > { %2674 = vrot.lane.b32.xlu0 %v2594_v47, %s4679_s19  ;;  %v2529_v44 = vpop.permute.xlu1 %2528 }
 0x2ff   : > { %2676 = vrot.lane.b32.xlu1 %v2595_v36, %s4679_s19  ;;  %v6371_v15 = vpop.permute.xlu0 %2530  ;;  %v2840_v36 = vmul.f32 1.442695, %v6353_v5 }
 0x301   : > { %2926 = vrot.lane.b32.xlu0 %v4519_v43, %s4679_s19  ;;  %v6373_v41 = vpop.permute.xlu1 %2532  ;;  %4528 = vpow2.f32 %v2840_v36  ;;  %v4527_v36 = vpop.eup %4526 }
 0x302   : > { %4530 = vpow2.f32 %v2834_v22 }
 0x303   : > { %2928 = vrot.lane.b32.xlu1 %v4521_v23, %s4679_s19  ;;  %4532 = vpow2.f32 %v2836_v49 }
 0x305   : > { %2922 = vrot.lane.b32.xlu0 %v4523_v61, %s4679_s19  ;;  %v2535_v61 = vpop.permute.xlu0 %2534  ;;  %v2537_v48 = vpop.permute.xlu1 %2536 }
 0x307   : > { %2924 = vrot.lane.b32.xlu1 %v4525_v20, %s4679_s19 }
 0x309   : > { %v6396_v53 = vpop.permute.xlu0 %2538 }
 0x312   : > { %v4369_v37 = vpop.f32.mrb[16].mxu1 }
 0x313   : > { %v6377_v60 = vadd.f32 %v4369_v37, %v6237_v58  ;;  %v2179_v47 = vpop.f32.mrb[17].mxu1 }
 0x314   : > { %v6381_v43 = vadd.f32 %v6237_v58, %v2179_v47  ;;  %v4370_v23 = vpop.f32.mrb[18].mxu1 }
 0x315   : > { %7860 = vst [vmem:[#allocation26_spill] sm:$0xff] %v6377_v60  ;;  %v2440_v20 = vadd.f32 0.5, %v6377_v60  ;;  %v6385_v38 = vadd.f32 %v4370_v23, %v6237_v58  ;;  %v2182_v34 = vpop.f32.mrb[19].mxu1 }
 0x316   : > { %7861 = vst [vmem:[#allocation27_spill] sm:$0xff] %v6381_v43  ;;  %v6389_v37 = vadd.f32 %v6237_v58, %v2182_v34  ;;  %v2438_v5 = vadd.f32 0.5, %v6381_v43  ;;  %v6399_v34 = vpop.permute.xlu1 %2540 }
 0x317   : > { %7862 = vst [vmem:[#allocation28_spill] sm:$0xff] %v6385_v38  ;;  %v2600_v63 = vmul.f32 %v2527_v55, %v2440_v20  ;;  %v2441_v47 = vadd.f32 0.5, %v6385_v38 }
 0x318   : > { %7863 = vst [vmem:[#allocation29_spill] sm:$0xff] %v6389_v37  ;;  %v2439_v23 = vadd.f32 0.5, %v6389_v37  ;;  %v2598_v3 = vmul.f32 %v2523_v57, %v2438_v5  ;;  %v2844_v24 = vmul.f32 1.442695, %v6389_v37 }
 0x319   : > { %v2601_v6 = vmul.f32 %v2529_v44, %v2441_v47  ;;  %2686 = vrot.lane.b32.xlu0 %v2600_v63, %s4679_s19  ;;  %v6403_v44 = vpop.permute.xlu0 %2542  ;;  %v4529_v63 = vpop.eup %4528  ;;  %v2846_v47 = vmul.f32 1.442695, %v6377_v60  ;;  %v2842_v60 = vmul.f32 1.442695, %v6381_v43 }
 0x31a   : > { %v2599_v55 = vmul.f32 %v2525_v46, %v2439_v23  ;;  %v6406_v22 = vpop.permute.xlu1 %2544  ;;  %v4531_v5 = vpop.eup %4530 }
 0x31b   : > { %2688 = vrot.lane.b32.xlu1 %v2601_v6, %s4679_s19  ;;  %v4533_v6 = vpop.eup %4532  ;;  %4534 = vpow2.f32 %v2846_v47 }
 0x31d   : > { %2682 = vrot.lane.b32.xlu0 %v2598_v3, %s4679_s19  ;;  %v6410_v49 = vpop.permute.xlu0 %2646 }
 0x31e   : > { %v6413_v3 = vpop.permute.xlu1 %2648 }
 0x31f   : > { %2684 = vrot.lane.b32.xlu1 %v2599_v55, %s4679_s19 }
 0x321   : > { %2934 = vrot.lane.b32.xlu0 %v4527_v36, %s4679_s19  ;;  %v6415_v57 = vpop.permute.xlu0 %2642 }
 0x322   : > { %v6417_v46 = vpop.permute.xlu1 %2644 }
 0x323   : > { %2936 = vrot.lane.b32.xlu1 %v4529_v63, %s4679_s19 }
 0x325   : > { %2930 = vrot.lane.b32.xlu0 %v4531_v5, %s4679_s19  ;;  %v6419_v20 = vpop.permute.xlu0 %2654  ;;  %v2848_v5 = vmul.f32 1.442695, %v6385_v38 }
 0x326   : > { %v6422_v55 = vpop.permute.xlu1 %2656 }
 0x327   : > { %2932 = vrot.lane.b32.xlu1 %v4533_v6, %s4679_s19  ;;  %7864 = vst [vmem:[#allocation30_spill] sm:$0xff] %v6422_v55  ;;  %4536 = vpow2.f32 %v2848_v5 }
 0x328   : > { %4538 = vpow2.f32 %v2842_v60 }
 0x329   : > { %4540 = vpow2.f32 %v2844_v24 }
 0x32a   : > { %v6444_v55 = vpop.permute.xlu1 %2652 }
 0x32b   : > { %7868 = vst [vmem:[#allocation34_spill] sm:$0xff] %v6444_v55 }
 0x32e   : > { %v6454_v5 = vpop.permute.xlu1 %2904 }
 0x332   : > { %v4373_v23 = vpop.f32.mrb[20].mxu1  ;;  %v6461_v24 = vpop.permute.xlu1 %2900 }
 0x333   : > { %v6425_v36 = vadd.f32 %v4373_v23, %v6237_v58  ;;  %v2195_v63 = vpop.f32.mrb[21].mxu1  ;;  %v6439_v23 = vpop.permute.xlu0 %2650 }
 0x334   : > { %v6429_v6 = vadd.f32 %v6237_v58, %v2195_v63  ;;  %v4374_v25 = vpop.f32.mrb[22].mxu1 }
 0x335   : > { %7865 = vst [vmem:[#allocation31_spill] sm:$0xff] %v6425_v36  ;;  %v2444_v27 = vadd.f32 0.5, %v6425_v36  ;;  %v6433_v31 = vadd.f32 %v4374_v25, %v6237_v58  ;;  %v2198_v1 = vpop.f32.mrb[23].mxu1 }
 0x336   : > { %7866 = vst [vmem:[#allocation32_spill] sm:$0xff] %v6429_v6  ;;  %v6437_v59 = vadd.f32 %v6237_v58, %v2198_v1  ;;  %v2442_v38 = vadd.f32 0.5, %v6429_v6 }
 0x337   : > { %7867 = vst [vmem:[#allocation33_spill] sm:$0xff] %v6433_v31  ;;  %v2604_v8 = vmul.f32 %v2535_v61, %v2444_v27  ;;  %v2445_v63 = vadd.f32 0.5, %v6433_v31  ;;  %v6450_v27 = vpop.permute.xlu0 %2902 }
 0x338   : > { %v2443_v47 = vadd.f32 0.5, %v6437_v59  ;;  %v2602_v1 = vmul.f32 %v6371_v15, %v2442_v38  ;;  %v2852_v55 = vmul.f32 1.442695, %v6437_v59 }
 0x339   : > { %v2605_v25 = vmul.f32 %v2537_v48, %v2445_v63  ;;  %2694 = vrot.lane.b32.xlu0 %v2604_v8, %s4679_s19  ;;  %v4535_v48 = vpop.eup %4534  ;;  %v6467_v63 = vpop.permute.xlu1 %2664 }
 0x33a   : > { %v2603_v61 = vmul.f32 %v6373_v41, %v2443_v47  ;;  %v4537_v8 = vpop.eup %4536  ;;  %7870 = vst [vmem:[#allocation36_spill] sm:$0xff] %v6467_v63 }
 0x33b   : > { %2696 = vrot.lane.b32.xlu1 %v2605_v25, %s4679_s19  ;;  %v6458_v60 = vpop.permute.xlu0 %2898  ;;  %v4539_v38 = vpop.eup %4538 }
 0x33c   : > { %v4541_v15 = vpop.eup %4540 }
 0x33d   : > { %2690 = vrot.lane.b32.xlu0 %v2602_v1, %s4679_s19  ;;  %v6471_v47 = vpop.permute.xlu1 %2660  ;;  %v2854_v1 = vmul.f32 1.442695, %v6425_v36  ;;  %v2850_v36 = vmul.f32 1.442695, %v6429_v6 }
 0x33e   : > { %7872 = vst [vmem:[#allocation38_spill] sm:$0xff] %v6471_v47 }
 0x33f   : > { %2692 = vrot.lane.b32.xlu1 %v2603_v61, %s4679_s19  ;;  %v6464_v41 = vpop.permute.xlu0 %2662  ;;  %4542 = vpow2.f32 %v2854_v1 }
 0x340   : > { %7869 = vst [vmem:[#allocation35_spill] sm:$0xff] %v6464_v41 }
 0x341   : > { %2942 = vrot.lane.b32.xlu0 %v4535_v48, %s4679_s19 }
 0x343   : > { %2944 = vrot.lane.b32.xlu1 %v4537_v8, %s4679_s19  ;;  %v6469_v25 = vpop.permute.xlu0 %2658 }
 0x344   : > { %7871 = vst [vmem:[#allocation37_spill] sm:$0xff] %v6469_v25 }
 0x345   : > { %2938 = vrot.lane.b32.xlu0 %v4539_v38, %s4679_s19  ;;  %v2856_v38 = vmul.f32 1.442695, %v6433_v31 }
 0x347   : > { %2940 = vrot.lane.b32.xlu1 %v4541_v15, %s4679_s19  ;;  %v6486_v47 = vpop.permute.xlu0 %2910  ;;  %4544 = vpow2.f32 %v2856_v38 }
 0x348   : > { %4546 = vpow2.f32 %v2850_v36 }
 0x349   : > { %4548 = vpow2.f32 %v2852_v55 }
 0x34f   : > { %v4377_v61 = vpop.f32.mrb[24].mxu1 }
 0x350   : > { %v6475_v48 = vadd.f32 %v4377_v61, %v6237_v58  ;;  %v2211_v8 = vpop.f32.mrb[25].mxu1 }
 0x351   : > { %v6479_v37 = vadd.f32 %v6237_v58, %v2211_v8  ;;  %v4378_v43 = vpop.f32.mrb[26].mxu1 }
 0x352   : > { %7873 = vst [vmem:[#allocation39_spill] sm:$0xff] %v6475_v48  ;;  %v2448_v15 = vadd.f32 0.5, %v6475_v48  ;;  %v6483_v63 = vadd.f32 %v4378_v43, %v6237_v58  ;;  %v2214_v25 = vpop.f32.mrb[27].mxu1  ;;  %v6495_v43 = vpop.permute.xlu1 %2912 }
 0x353   : > { %v6489_v61 = vadd.f32 %v6237_v58, %v2214_v25  ;;  %v2446_v8 = vadd.f32 0.5, %v6479_v37  ;;  %v2862_v58 = vmul.f32 1.442695, %v6475_v48  ;;  %v2907_v25 = vpop.permute.xlu0 %2906 }
 0x354   : > { %7874 = vst [vmem:[#allocation40_spill] sm:$0xff] %v6483_v63  ;;  %v2608_v31 = vmul.f32 %v6403_v44, %v2448_v15  ;;  %v2449_v41 = vadd.f32 0.5, %v6483_v63  ;;  %v2864_v38 = vmul.f32 1.442695, %v6483_v63 }
 0x355   : > { %v2447_v6 = vadd.f32 0.5, %v6489_v61  ;;  %v2606_v44 = vmul.f32 %v6396_v53, %v2446_v8  ;;  %4550 = vpow2.f32 %v2862_v58  ;;  %v2860_v53 = vmul.f32 1.442695, %v6489_v61 }
 0x356   : > { %v2609_v1 = vmul.f32 %v6406_v22, %v2449_v41  ;;  %2702 = vrot.lane.b32.xlu0 %v2608_v31, %s4679_s19  ;;  %v2909_v22 = vpop.permute.xlu1 %2908  ;;  %v2858_v41 = vmul.f32 1.442695, %v6479_v37  ;;  %v4543_v31 = vpop.eup %4542  ;;  %4552 = vpow2.f32 %v2864_v38 }
 0x357   : > { %v2607_v15 = vmul.f32 %v6399_v34, %v2447_v6  ;;  %v6508_v36 = vpop.permute.xlu0 %2670  ;;  %v4545_v55 = vpop.eup %4544 }
 0x358   : > { %2704 = vrot.lane.b32.xlu1 %v2609_v1, %s4679_s19  ;;  %4554 = vpow2.f32 %v2858_v41  ;;  %v4547_v34 = vpop.eup %4546 }
 0x359   : > { %4556 = vpow2.f32 %v2860_v53  ;;  %v4549_v6 = vpop.eup %4548 }
 0x35a   : > { %2698 = vrot.lane.b32.xlu0 %v2606_v44, %s4679_s19  ;;  %v6512_v8 = vpop.permute.xlu1 %2672 }
 0x35b   : > { %v6516_v1 = vpop.permute.xlu0 %2666 }
 0x35c   : > { %2700 = vrot.lane.b32.xlu1 %v2607_v15, %s4679_s19 }
 0x35e   : > { %2950 = vrot.lane.b32.xlu0 %v4543_v31, %s4679_s19  ;;  %v6519_v44 = vpop.permute.xlu1 %2668  ;;  %v2772_v31 = vmul.f32 0.5, %v6056_v7 }
 0x35f   : > { %v4551_v58 = vpop.eup %4550  ;;  %v2919_v41 = vpop.permute.xlu0 %2918 }
 0x360   : > { %2952 = vrot.lane.b32.xlu1 %v4545_v55, %s4679_s19  ;;  %v4553_v38 = vpop.eup %4552 }
 0x362   : > { %2946 = vrot.lane.b32.xlu0 %v4547_v34, %s4679_s19  ;;  %v4555_v15 = vpop.eup %4554  ;;  %v2921_v55 = vpop.permute.xlu1 %2920  ;;  %v2996_v34 = vmul.f32 %v6450_v27, %v2772_v31  ;;  %v2777_v31 = vmul.f32 0.5, %v6080_v10  ;;  %v2780_v10 = vmul.f32 0.5, %v6099_v17 }
 0x363   : > { %v4557_v53 = vpop.eup %4556 }
 0x364   : > { %2948 = vrot.lane.b32.xlu1 %v4549_v6, %s4679_s19  ;;  %v2773_v6 = vmul.f32 0.5, %v6060_v2  ;;  %v2776_v2 = vmul.f32 0.5, %v6077_v52  ;;  %v2775_v52 = vmul.f32 0.5, %v6070_v54 }
 0x366   : > { %2958 = vrot.lane.b32.xlu0 %v4551_v58, %s4679_s19  ;;  %v2997_v63 = vmul.f32 %v6454_v5, %v2773_v6  ;;  %v2770_v58 = vmul.f32 0.5, %v6045_v32  ;;  %v2917_v48 = vpop.permute.xlu1 %2916  ;;  %v3000_v32 = vmul.f32 %v6486_v47, %v2776_v2  ;;  %v2999_v47 = vmul.f32 %v2909_v22, %v2775_v52 }
 0x367   : > { %v3004_v6 = vmul.f32 %v2919_v41, %v2780_v10  ;;  %v2779_v22 = vmul.f32 0.5, %v6094_v21  ;;  %v2785_v41 = vmul.f32 0.5, %v6130_v13  ;;  %v2783_v2 = vmul.f32 0.5, %v6114_v0 }
 0x368   : > { %2960 = vrot.lane.b32.xlu1 %v4553_v38, %s4679_s19  ;;  %v2915_v38 = vpop.permute.xlu0 %2914  ;;  %v2994_v7 = vmul.f32 %v6458_v60, %v2770_v58  ;;  %v2789_v0 = vmul.f32 0.5, %v6146_v56 }
 0x36a   : > { %2954 = vrot.lane.b32.xlu0 %v4555_v15, %s4679_s19  ;;  %v2771_v15 = vmul.f32 0.5, %v6048_v16  ;;  %v3001_v16 = vmul.f32 %v6495_v43, %v2777_v31  ;;  %v2781_v43 = vmul.f32 0.5, %v6104_v33  ;;  %v2788_v31 = vmul.f32 0.5, %v6141_v12 }
 0x36c   : > { %2956 = vrot.lane.b32.xlu1 %v4557_v53, %s4679_s19  ;;  %v2995_v27 = vmul.f32 %v6461_v24, %v2771_v15  ;;  %v6537_v5 = vpop.permute.xlu0 %2678  ;;  %v2784_v15 = vmul.f32 0.5, %v6124_v14 }
 0x36d   : > { %v6542_v60 = vpop.permute.xlu1 %2680 }
 0x36e   : > { %3062 = vrot.lane.b32.xlu0 %v2996_v34, %s4680_s15 }
 0x370   : > { %3064 = vrot.lane.b32.xlu1 %v2997_v63, %s4680_s15  ;;  %v2774_v63 = vmul.f32 0.5, %v6067_v28  ;;  %v6549_v53 = vpop.permute.xlu0 %2674  ;;  %v3005_v28 = vmul.f32 %v2921_v55, %v2781_v43  ;;  %v2787_v43 = vmul.f32 0.5, %v6136_v18  ;;  %v2793_v18 = vmul.f32 0.5, %v6166_v42 }
 0x371   : > { %v6553_v34 = vpop.permute.xlu1 %2676 }
 0x372   : > { %3058 = vrot.lane.b32.xlu0 %v2994_v7, %s4680_s15  ;;  %v2998_v24 = vmul.f32 %v2907_v25, %v2774_v63  ;;  %v2778_v25 = vmul.f32 0.5, %v6091_v35  ;;  %v3003_v7 = vmul.f32 %v2917_v48, %v2779_v22 }
 0x374   : > { %3060 = vrot.lane.b32.xlu1 %v2995_v27, %s4680_s15  ;;  %v2927_v54 = vpop.permute.xlu0 %2926  ;;  %v3002_v58 = vmul.f32 %v2915_v38, %v2778_v25  ;;  %v2782_v27 = vmul.f32 0.5, %v6111_v39 }
 0x375   : > { %v2929_v17 = vpop.permute.xlu1 %2928  ;;  %v3008_v33 = vmul.f32 %v2927_v54, %v2784_v15 }
 0x376   : > { %3070 = vrot.lane.b32.xlu0 %v3000_v32, %s4680_s15  ;;  %v3009_v55 = vmul.f32 %v2929_v17, %v2785_v41 }
 0x378   : > { %3072 = vrot.lane.b32.xlu1 %v3001_v16, %s4680_s15  ;;  %v2923_v35 = vpop.permute.xlu0 %2922 }
 0x379   : > { %v2925_v21 = vpop.permute.xlu1 %2924  ;;  %v3006_v38 = vmul.f32 %v2923_v35, %v2782_v27 }
 0x37a   : > { %3066 = vrot.lane.b32.xlu0 %v2998_v24, %s4680_s15  ;;  %v3007_v14 = vmul.f32 %v2925_v21, %v2783_v2 }
 0x37c   : > { %3068 = vrot.lane.b32.xlu1 %v2999_v47, %s4680_s15  ;;  %v2786_v47 = vmul.f32 0.5, %v6133_v51  ;;  %v2792_v51 = vmul.f32 0.5, %v6161_v29 }
 0x37e   : > { %3078 = vrot.lane.b32.xlu0 %v3004_v6, %s4680_s15 }
 0x380   : > { %3080 = vrot.lane.b32.xlu1 %v3005_v28, %s4680_s15 }
 0x382   : > { %3074 = vrot.lane.b32.xlu0 %v3002_v58, %s4680_s15 }
 0x384   : > { %3076 = vrot.lane.b32.xlu1 %v3003_v7, %s4680_s15 }
 0x386   : > { %3086 = vrot.lane.b32.xlu0 %v3008_v33, %s4680_s15  ;;  %v2790_v33 = vmul.f32 0.5, %v6151_v50  ;;  %v2796_v50 = vmul.f32 0.5, %v6181_v30  ;;  %v2800_v30 = vmul.f32 0.5, %v6207_v9  ;;  %v4558_v9 = vld [vmem:[%s7727_s1 + $0x10] sm:$0xff] }
 0x388   : > { %3088 = vrot.lane.b32.xlu1 %v3009_v55, %s4680_s15  ;;  %v2791_v55 = vmul.f32 0.5, %v6156_v19  ;;  %v2797_v19 = vmul.f32 0.5, %v6186_v11 }
 0x38a   : > { %3082 = vrot.lane.b32.xlu0 %v3006_v38, %s4680_s15 }
 0x38b   : > { %v6570_v48 = vpop.permute.xlu0 %2686 }
 0x38c   : > { %3084 = vrot.lane.b32.xlu1 %v3007_v14, %s4680_s15 }
 0x38d   : > { %v6573_v13 = vpop.permute.xlu1 %2688 }
 0x38f   : > { %v6575_v32 = vpop.permute.xlu0 %2682 }
 0x391   : > { %v6577_v39 = vpop.permute.xlu1 %2684 }
 0x393   : > { %v2935_v16 = vpop.permute.xlu0 %2934 }
 0x394   : > { %v3012_v63 = vmul.f32 %v2935_v16, %v2788_v31 }
 0x395   : > { %v2937_v24 = vpop.permute.xlu1 %2936 }
 0x396   : > { %v3013_v52 = vmul.f32 %v2937_v24, %v2789_v0  ;;  %3094 = vrot.lane.b32.xlu0 %v3012_v63, %s4680_s15  ;;  %v2794_v0 = vmul.f32 0.5, %v6171_v45 }
 0x397   : > { %v2931_v10 = vpop.permute.xlu0 %2930 }
 0x398   : > { %v3010_v6 = vmul.f32 %v2931_v10, %v2786_v47  ;;  %3096 = vrot.lane.b32.xlu1 %v3013_v52, %s4680_s15  ;;  %v2795_v47 = vmul.f32 0.5, %v6176_v40 }
 0x399   : > { %v2933_v28 = vpop.permute.xlu1 %2932 }
 0x39a   : > { %v3011_v25 = vmul.f32 %v2933_v28, %v2787_v43  ;;  %3090 = vrot.lane.b32.xlu0 %v3010_v6, %s4680_s15  ;;  %v2801_v28 = vmul.f32 0.5, %v6210_v62 }
 0x39c   : > { %3092 = vrot.lane.b32.xlu1 %v3011_v25, %s4680_s15 }
 0x3ab   : > { %v6587_v12 = vpop.permute.xlu0 %2694 }
 0x3ad   : > { %v6589_v56 = vpop.permute.xlu1 %2696 }
 0x3af   : > { %v6591_v54 = vpop.permute.xlu0 %2690 }
 0x3b1   : > { %v6593_v58 = vpop.permute.xlu1 %2692 }
 0x3b3   : > { %v2943_v22 = vpop.permute.xlu0 %2942 }
 0x3b4   : > { %v3016_v17 = vmul.f32 %v2943_v22, %v2792_v51  ;;  %v2798_v51 = vmul.f32 0.5, %v6191_v26  ;;  %v4559_v26 = vld [vmem:[%s7727_s1 + $0x18] sm:$0xff] }
 0x3b5   : > { %v2945_v7 = vpop.permute.xlu1 %2944 }
 0x3b6   : > { %v3017_v15 = vmul.f32 %v2945_v7, %v2793_v18  ;;  %3102 = vrot.lane.b32.xlu0 %v3016_v17, %s4680_s15  ;;  %v2799_v17 = vmul.f32 0.5, %v6197_v4  ;;  %v2740_v7 = vadd.f32 %v4558_v9, %v6410_v49 }
 0x3b7   : > { %v2939_v41 = vpop.permute.xlu0 %2938 }
 0x3b8   : > { %v3014_v35 = vmul.f32 %v2939_v41, %v2790_v33  ;;  %3104 = vrot.lane.b32.xlu1 %v3017_v15, %s4680_s15  ;;  %v2741_v33 = vadd.f32 %v4559_v26, %v6413_v3  ;;  %v4561_v3 = vld [vmem:[%s7727_s1 + $0x8] sm:$0xff] }
 0x3b9   : > { %v2941_v27 = vpop.permute.xlu1 %2940 }
 0x3ba   : > { %v3015_v21 = vmul.f32 %v2941_v27, %v2791_v55  ;;  %3098 = vrot.lane.b32.xlu0 %v3014_v35, %s4680_s15 }
 0x3bc   : > { %3100 = vrot.lane.b32.xlu1 %v3015_v21, %s4680_s15 }
 0x3c8   : > { %v6603_v29 = vpop.permute.xlu0 %2702 }
 0x3ca   : > { %v6605_v42 = vpop.permute.xlu1 %2704 }
 0x3cc   : > { %v6607_v38 = vpop.permute.xlu0 %2698 }
 0x3ce   : > { %v6609_v2 = vpop.permute.xlu1 %2700 }
 0x3d0   : > { %v2951_v14 = vpop.permute.xlu0 %2950 }
 0x3d1   : > { %v3020_v31 = vmul.f32 %v2951_v14, %v2796_v50  ;;  %v4560_v50 = vld [vmem:[%s7727_s1] sm:$0xff] }
 0x3d2   : > { %v2953_v16 = vpop.permute.xlu1 %2952  ;;  %v2738_v14 = vadd.f32 %v4560_v50, %v6415_v57 }
 0x3d3   : > { %v3021_v63 = vmul.f32 %v2953_v16, %v2797_v19  ;;  %3110 = vrot.lane.b32.xlu0 %v3020_v31, %s4680_s15  ;;  %v2739_v31 = vadd.f32 %v4561_v3, %v6417_v46  ;;  %v7876_v3 = vld [vmem:[#allocation34_spill] sm:$0xff] }
 0x3d4   : > { %v2947_v24 = vpop.permute.xlu0 %2946 }
 0x3d5   : > { %v3018_v52 = vmul.f32 %v2947_v24, %v2794_v0  ;;  %3112 = vrot.lane.b32.xlu1 %v3021_v63, %s4680_s15 }
 0x3d6   : > { %v2949_v10 = vpop.permute.xlu1 %2948 }
 0x3d7   : > { %v3019_v6 = vmul.f32 %v2949_v10, %v2795_v47  ;;  %3106 = vrot.lane.b32.xlu0 %v3018_v52, %s4680_s15 }
 0x3d8   : > { %v2959_v43 = vpop.permute.xlu0 %2958 }
 0x3d9   : > { %v3024_v11 = vmul.f32 %v2959_v43, %v2800_v30  ;;  %3108 = vrot.lane.b32.xlu1 %v3019_v6, %s4680_s15 }
 0x3da   : > { %v2961_v25 = vpop.permute.xlu1 %2960 }
 0x3db   : > { %v3025_v45 = vmul.f32 %v2961_v25, %v2801_v28  ;;  %3118 = vrot.lane.b32.xlu0 %v3024_v11, %s4680_s15 }
 0x3dc   : > { %v2955_v22 = vpop.permute.xlu0 %2954 }
 0x3dd   : > { %v3022_v40 = vmul.f32 %v2955_v22, %v2798_v51  ;;  %3120 = vrot.lane.b32.xlu1 %v3025_v45, %s4680_s15  ;;  %v4562_v45 = vld [vmem:[%s7727_s1 + $0x30] sm:$0xff] }
 0x3de   : > { %v2957_v18 = vpop.permute.xlu1 %2956  ;;  %v2744_v51 = vadd.f32 %v4562_v45, %v6419_v20 }
 0x3df   : > { %v3023_v62 = vmul.f32 %v2957_v18, %v2799_v17  ;;  %3114 = vrot.lane.b32.xlu0 %v3022_v40, %s4680_s15 }
 0x3e0   : > { %v3063_v15 = vpop.permute.xlu0 %3062 }
 0x3e1   : > { %v3156_v41 = vsub.f32 %v2740_v7, %v3063_v15  ;;  %v3252_v35 = vadd.f32 %v3063_v15, %v2740_v7  ;;  %3116 = vrot.lane.b32.xlu1 %v3023_v62, %s4680_s15  ;;  %v4563_v62 = vld [vmem:[%s7727_s1 + $0x38] sm:$0xff]  ;;  %v7875_v15 = vld [vmem:[#allocation30_spill] sm:$0xff] }
 0x3e2   : > { %v3065_v4 = vpop.permute.xlu1 %3064  ;;  %v2745_v26 = vadd.f32 %v4563_v62, %v7875_v15 }
 0x3e3   : > { %v6635_v55 = vmax.f32 %v3156_v41, 0.0  ;;  %v3284_v27 = vmax.f32 %v3252_v35, 0.0  ;;  %v3157_v21 = vsub.f32 %v2741_v33, %v3065_v4  ;;  %v3253_v49 = vadd.f32 %v3065_v4, %v2741_v33 }
 0x3e4   : > { %v3059_v19 = vpop.permute.xlu0 %3058 }
 0x3e5   : > { %v7770_v16 = vmin.f32 %v6635_v55, 64.0  ;;  %v3316_v63 = vmin.f32 %v3284_v27, 64.0  ;;  %v6646_v0 = vmax.f32 %v3157_v21, 0.0  ;;  %v3285_v24 = vmax.f32 %v3253_v49, 0.0  ;;  %v4564_v27 = vld [vmem:[%s7727_s1 + $0x20] sm:$0xff] }
 0x3e6   : > { %v3154_v52 = vsub.f32 %v2738_v14, %v3059_v19  ;;  %v3250_v47 = vadd.f32 %v3059_v19, %v2738_v14  ;;  %v3061_v10 = vpop.permute.xlu1 %3060  ;;  %v2742_v21 = vadd.f32 %v4564_v27, %v6439_v23  ;;  %v4565_v14 = vld [vmem:[%s7727_s1 + $0x28] sm:$0xff] }
 0x3e7   : > { %v7768_v6 = vmin.f32 %v6646_v0, 64.0  ;;  %v3317_v30 = vmin.f32 %v3285_v24, 64.0  ;;  %v3155_v57 = vsub.f32 %v2739_v31, %v3061_v10  ;;  %v3251_v43 = vadd.f32 %v3061_v10, %v2739_v31  ;;  %3638 = vrot.lane.b32.xlu0 %v3316_v63, %s4678_s13 }
 0x3e8   : > { %v6650_v11 = vmax.f32 %v3154_v52, 0.0  ;;  %v3282_v46 = vmax.f32 %v3250_v47, 0.0  ;;  %v3071_v28 = vpop.permute.xlu0 %3070  ;;  %v6654_v25 = vsub.f32 %v3316_v63, %v7770_v16  ;;  %v2743_v31 = vadd.f32 %v4565_v14, %v7876_v3 }
 0x3e9   : > { %v6660_v22 = vmax.f32 %v3155_v57, 0.0  ;;  %v3283_v40 = vmax.f32 %v3251_v43, 0.0  ;;  %3640 = vrot.lane.b32.xlu1 %v3317_v30, %s4678_s13  ;;  %v6666_v7 = vsub.f32 %v3317_v30, %v7768_v6  ;;  %v3160_v33 = vsub.f32 %v2744_v51, %v3071_v28 }
 0x3ea   : > { %v7767_v17 = vmin.f32 %v6650_v11, 64.0  ;;  %v3314_v18 = vmin.f32 %v3282_v46, 64.0  ;;  %v3073_v9 = vpop.permute.xlu1 %3072  ;;  %v3256_v41 = vadd.f32 %v3071_v28, %v2744_v51  ;;  %vm3380_vm1 = vcmp.ge.f32.partialorder %v6654_v25, 0.001 }
 0x3eb   : > { %v3315_v20 = vmin.f32 %v3283_v40, 64.0  ;;  %v7766_v35 = vmin.f32 %v6660_v22, 64.0  ;;  %v3161_v49 = vsub.f32 %v2745_v26, %v3073_v9  ;;  %v3257_v50 = vadd.f32 %v3073_v9, %v2745_v26 }
 0x3ec   : > { %3634 = vrot.lane.b32.xlu0 %v3314_v18, %s4678_s13  ;;  %v3067_v4 = vpop.permute.xlu0 %3066  ;;  %vm3381_vm2 = vcmp.ge.f32.partialorder %v6666_v7, 0.001  ;;  %v6687_v63 = vsub.f32 %v3314_v18, %v7767_v17  ;;  %v6689_v24 = vmax.f32 %v3160_v33, 0.0  ;;  %v3288_v23 = vmax.f32 %v3256_v41, 0.0 }
 0x3ed   : > { %3636 = vrot.lane.b32.xlu1 %v3315_v20, %s4678_s13  ;;  %v3158_v52 = vsub.f32 %v2742_v21, %v3067_v4  ;;  %v7776_v47 = vmov 0   ;;  %v3254_v30 = vadd.f32 %v3067_v4, %v2742_v21  ;;  %v6701_v43 = vsub.f32 %v3315_v20, %v7766_v35  ;;  %v4566_v21 = vld [vmem:[%s7727_s1 + $0x50] sm:$0xff] }
 0x3ee   : > { %v3069_v19 = vpop.permute.xlu1 %3068  ;;  %v3412_v10 = vsel %vm3380_vm1, 1, %v7776_v47  ;;  %v3413_v57 = vsel %vm3381_vm2, 1, %v7776_v47  ;;  %vm3378_vm3 = vcmp.ge.f32.partialorder %v6687_v63, 0.001  ;;  %v6703_v46 = vmax.f32 %v3161_v49, 0.0  ;;  %v7877_v49 = vld [vmem:[#allocation35_spill] sm:$0xff] }
 0x3ef   : > { %v3289_v28 = vmax.f32 %v3257_v50, 0.0  ;;  %v3159_v45 = vsub.f32 %v2743_v31, %v3069_v19  ;;  %v3255_v51 = vadd.f32 %v3069_v19, %v2743_v31  ;;  %vm3379_vm4 = vcmp.ge.f32.partialorder %v6701_v43, 0.001  ;;  %v7906_v43 = vld [vmem:[#allocation10_spill] sm:$0xff] }
 0x3f0   : > { %3446 = vrot.lane.b32.xlu0 %v3412_v10, %s4679_s19  ;;  %v7765_v40 = vmin.f32 %v6689_v24, 64.0  ;;  %v3410_v18 = vsel %vm3378_vm3, 1, %v7776_v47  ;;  %v3320_v9 = vmin.f32 %v3288_v23, 64.0  ;;  %v6711_v62 = vmax.f32 %v3158_v52, 0.0  ;;  %v3079_v27 = vpop.permute.xlu0 %3078  ;;  %v4567_v23 = vld [vmem:[%s7727_s1 + $0x58] sm:$0xff]  ;;  %v7878_v52 = vld [vmem:[#allocation36_spill] sm:$0xff] }
 0x3f1   : > { %3448 = vrot.lane.b32.xlu1 %v3413_v57, %s4679_s19  ;;  %v3286_v15 = vmax.f32 %v3254_v30, 0.0  ;;  %v3411_v26 = vsel %vm3379_vm4, 1, %v7776_v47  ;;  %v7764_v20 = vmin.f32 %v6703_v46, 64.0  ;;  %v3321_v33 = vmin.f32 %v3289_v28, 64.0 }
 0x3f2   : > { %v6718_v41 = vmax.f32 %v3159_v45, 0.0  ;;  %v3287_v4 = vmax.f32 %v3255_v51, 0.0  ;;  %v2748_v50 = vadd.f32 %v4566_v21, %v7877_v49  ;;  %v7763_v14 = vmin.f32 %v6711_v62, 64.0  ;;  %v3081_v31 = vpop.permute.xlu1 %3080  ;;  %v4569_v49 = vld [vmem:[%s7727_s1 + $0x48] sm:$0xff] }
 0x3f3   : > { %v3318_v3 = vmin.f32 %v3286_v15, 64.0  ;;  %v6729_v19 = vsub.f32 %v3320_v9, %v7765_v40  ;;  %v2749_v10 = vadd.f32 %v4567_v23, %v7878_v52  ;;  %v6739_v28 = vsub.f32 %v3321_v33, %v7764_v20 }
 0x3f4   : > { %3442 = vrot.lane.b32.xlu0 %v3410_v18, %s4679_s19  ;;  %v7762_v30 = vmin.f32 %v6718_v41, 64.0  ;;  %v3319_v57 = vmin.f32 %v3287_v4, 64.0  ;;  %v3164_v45 = vsub.f32 %v2748_v50, %v3079_v27  ;;  %v3260_v51 = vadd.f32 %v3079_v27, %v2748_v50  ;;  %v4568_v4 = vld [vmem:[%s7727_s1 + $0x40] sm:$0xff]  ;;  %v7879_v27 = vld [vmem:[#allocation37_spill] sm:$0xff] }
 0x3f5   : > { %3444 = vrot.lane.b32.xlu1 %v3411_v26, %s4679_s19  ;;  %v3165_v18 = vsub.f32 %v2749_v10, %v3081_v31  ;;  %vm3384_vm5 = vcmp.ge.f32.partialorder %v6729_v19, 0.001  ;;  %v3261_v15 = vadd.f32 %v3081_v31, %v2749_v10  ;;  %v3075_v26 = vpop.permute.xlu0 %3074  ;;  %vm3385_vm6 = vcmp.ge.f32.partialorder %v6739_v28, 0.001  ;;  %v7880_v50 = vld [vmem:[#allocation38_spill] sm:$0xff]  ;;  %v7908_v19 = vld [vmem:[#allocation11_spill] sm:$0xff] }
 0x3f6   : > { %v2746_v21 = vadd.f32 %v4568_v4, %v7879_v27  ;;  %v3077_v31 = vpop.permute.xlu1 %3076  ;;  %v6761_v23 = vmax.f32 %v3164_v45, 0.0  ;;  %v3292_v52 = vmax.f32 %v3260_v51, 0.0  ;;  %v3417_v4 = vsel %vm3385_vm6, 1, %v7776_v47  ;;  %v7909_v28 = vld [vmem:[#allocation13_spill] sm:$0xff] }
 0x3f7   : > { %v6763_v10 = vmax.f32 %v3165_v18, 0.0  ;;  %v3293_v27 = vmax.f32 %v3261_v15, 0.0 }
 0x3f8   : > { %3646 = vrot.lane.b32.xlu0 %v3320_v9, %s4678_s13  ;;  %v6745_v9 = vsub.f32 %v3318_v3, %v7763_v14  ;;  %v3258_v14 = vadd.f32 %v3075_v26, %v2746_v21  ;;  %v7769_v51 = vmin.f32 %v6761_v23, 64.0 }
 0x3f9   : > { %3648 = vrot.lane.b32.xlu1 %v3321_v33, %s4678_s13  ;;  %v6751_v33 = vsub.f32 %v3319_v57, %v7762_v30  ;;  %v3162_v30 = vsub.f32 %v2746_v21, %v3075_v26  ;;  %v3324_v26 = vmin.f32 %v3292_v52, 64.0  ;;  %v3087_v20 = vpop.permute.xlu0 %3086  ;;  %v4571_v52 = vld [vmem:[%s7727_s1 + $0x78] sm:$0xff] }
 0x3fa   : > { %vm3382_vm7 = vcmp.ge.f32.partialorder %v6745_v9, 0.001  ;;  %v3089_v40 = vpop.permute.xlu1 %3088 }
 0x3fb   : > { %vm3383_vm8 = vcmp.ge.f32.partialorder %v6751_v33, 0.001  ;;  %v3414_v18 = vsel %vm3382_vm7, 1, %v7776_v47  ;;  %v6779_v21 = vmax.f32 %v3162_v30, 0.0  ;;  %v7911_v33 = vld [vmem:[#allocation14_spill] sm:$0xff] }
 0x3fc   : > { %3642 = vrot.lane.b32.xlu0 %v3318_v3, %s4678_s13  ;;  %v2747_v3 = vadd.f32 %v4569_v49, %v7880_v50  ;;  %v3290_v50 = vmax.f32 %v3258_v14, 0.0  ;;  %v3415_v15 = vsel %vm3383_vm8, 1, %v7776_v47  ;;  %v4570_v14 = vld [vmem:[%s7727_s1 + $0x70] sm:$0xff] }
 0x3fd   : > { %3644 = vrot.lane.b32.xlu1 %v3319_v57, %s4678_s13  ;;  %v3416_v57 = vsel %vm3384_vm5, 1, %v7776_v47  ;;  %v2752_v30 = vadd.f32 %v4570_v14, %v6508_v36 }
 0x3fe   : > { %v3163_v45 = vsub.f32 %v2747_v3, %v3077_v31  ;;  %v3259_v49 = vadd.f32 %v3077_v31, %v2747_v3  ;;  %v7771_v3 = vmin.f32 %v6763_v10, 64.0  ;;  %v3325_v31 = vmin.f32 %v3293_v27, 64.0  ;;  %v3085_v6 = vpop.permute.xlu1 %3084 }
 0x3ff   : > { %v7775_v27 = vmin.f32 %v6779_v21, 64.0  ;;  %v3168_v17 = vsub.f32 %v2752_v30, %v3087_v20 }
 0x400   : > { %3454 = vrot.lane.b32.xlu0 %v3416_v57, %s4679_s19  ;;  %v6786_v57 = vmax.f32 %v3163_v45, 0.0  ;;  %v3322_v45 = vmin.f32 %v3290_v50, 64.0  ;;  %v6807_v36 = vsub.f32 %v3325_v31, %v7771_v3  ;;  %v3083_v50 = vpop.permute.xlu0 %3082 }
 0x401   : > { %3456 = vrot.lane.b32.xlu1 %v3417_v4, %s4679_s19  ;;  %v3291_v4 = vmax.f32 %v3259_v49, 0.0  ;;  %v6801_v49 = vsub.f32 %v3324_v26, %v7769_v51 }
 0x402   : > { %7881 = vst [vmem:[#allocation30_spill] sm:$0xff] %v6786_v57  ;;  %vm7828_vm10 = vcmp.ge.f32.partialorder %v6807_v36, 0.001 }
 0x403   : > { %v3323_v35 = vmin.f32 %v3291_v4, 64.0  ;;  %v4573_v4 = vld [vmem:[%s7727_s1 + $0x68] sm:$0xff]  ;;  %vm7829_vm9 = vcmp.ge.f32.partialorder %v6801_v49, 0.001 }
 0x404   : > { %3450 = vrot.lane.b32.xlu0 %v3414_v18, %s4679_s19  ;;  %v2753_v18 = vadd.f32 %v4571_v52, %v6512_v8  ;;  %v3264_v8 = vadd.f32 %v3087_v20, %v2752_v30  ;;  %v2751_v16 = vadd.f32 %v4573_v4, %v6519_v44  ;;  %v6823_v20 = vmax.f32 %v3168_v17, 0.0 }
 0x405   : > { %3452 = vrot.lane.b32.xlu1 %v3415_v15, %s4679_s19  ;;  %v7772_v15 = vmin.f32 %v6786_v57, 64.0  ;;  %v3420_v17 = vsel %vm7829_vm9, 1, %v7776_v47 }
 0x406   : > { %v3169_v14 = vsub.f32 %v2753_v18, %v3089_v40  ;;  %v3265_v52 = vadd.f32 %v3089_v40, %v2753_v18  ;;  %v6821_v40 = vsub.f32 %v3322_v45, %v7775_v27  ;;  %7882 = vst [vmem:[#allocation34_spill] sm:$0xff] %v6823_v20  ;;  %v3167_v30 = vsub.f32 %v2751_v16, %v3085_v6 }
 0x407   : > { %v3263_v18 = vadd.f32 %v3085_v6, %v2751_v16 }
 0x408   : > { %3654 = vrot.lane.b32.xlu0 %v3324_v26, %s4678_s13  ;;  %v4572_v26 = vld [vmem:[%s7727_s1 + $0x60] sm:$0xff]  ;;  %v6831_v4 = vmax.f32 %v3169_v14, 0.0  ;;  %v3297_v3 = vmax.f32 %v3265_v52, 0.0  ;;  %vm7824_vm11 = vcmp.ge.f32.partialorder %v6821_v40, 0.001 }
 0x409   : > { %3656 = vrot.lane.b32.xlu1 %v3325_v31, %s4678_s13  ;;  %v2750_v51 = vadd.f32 %v4572_v26, %v6516_v1  ;;  %v6829_v1 = vsub.f32 %v3323_v35, %v7772_v15  ;;  %v3296_v26 = vmax.f32 %v3264_v8, 0.0  ;;  %v3295_v8 = vmax.f32 %v3263_v18, 0.0 }
 0x40a   : > { %7883 = vst [vmem:[#allocation35_spill] sm:$0xff] %v6831_v4  ;;  %v7774_v52 = vmin.f32 %v6831_v4, 64.0 }
 0x40b   : > { %v3166_v31 = vsub.f32 %v2750_v51, %v3083_v50  ;;  %v3262_v44 = vadd.f32 %v3083_v50, %v2750_v51  ;;  %vm7823_vm12 = vcmp.ge.f32.partialorder %v6829_v1, 0.001  ;;  %v6846_v51 = vmax.f32 %v3167_v30, 0.0 }
 0x40c   : > { %3650 = vrot.lane.b32.xlu0 %v3322_v45, %s4678_s13  ;;  %v3421_v45 = vsel %vm7828_vm10, 1, %v7776_v47  ;;  %v3328_v14 = vmin.f32 %v3296_v26, 64.0  ;;  %v3329_v50 = vmin.f32 %v3297_v3, 64.0  ;;  %v3327_v18 = vmin.f32 %v3295_v8, 64.0  ;;  %v3095_v26 = vpop.permute.xlu0 %3094  ;;  %v3097_v3 = vpop.permute.xlu1 %3096 }
 0x40d   : > { %3652 = vrot.lane.b32.xlu1 %v3323_v35, %s4678_s13  ;;  %v7773_v35 = vmin.f32 %v6823_v20, 64.0  ;;  %v6844_v16 = vmax.f32 %v3166_v31, 0.0  ;;  %v3294_v6 = vmax.f32 %v3262_v44, 0.0  ;;  %7885 = vst [vmem:[#allocation37_spill] sm:$0xff] %v6846_v51  ;;  %v7779_v30 = vmin.f32 %v6846_v51, 64.0 }
 0x40f   : > { %7884 = vst [vmem:[#allocation36_spill] sm:$0xff] %v6844_v16  ;;  %v7780_v31 = vmin.f32 %v6844_v16, 64.0  ;;  %v3326_v44 = vmin.f32 %v3294_v6, 64.0  ;;  %v6861_v15 = vsub.f32 %v3328_v14, %v7773_v35  ;;  %v4574_v6 = vld [vmem:[%s7727_s1 + $0x90] sm:$0xff] }
 0x410   : > { %3462 = vrot.lane.b32.xlu0 %v3420_v17, %s4679_s19  ;;  %v3418_v17 = vsel %vm7824_vm11, 1, %v7776_v47  ;;  %v2756_v8 = vadd.f32 %v4574_v6, %v6537_v5  ;;  %v3093_v4 = vpop.permute.xlu1 %3092 }
 0x411   : > { %3464 = vrot.lane.b32.xlu1 %v3421_v45, %s4679_s19  ;;  %v3419_v45 = vsel %vm7823_vm12, 1, %v7776_v47  ;;  %vm7790_vm13 = vcmp.ge.f32.partialorder %v6861_v15, 0.001  ;;  %v3091_v47 = vpop.permute.xlu0 %3090 }
 0x412   : > { %v3268_v5 = vadd.f32 %v3095_v26, %v2756_v8 }
 0x414   : > { %3458 = vrot.lane.b32.xlu0 %v3418_v17, %s4679_s19  ;;  %v6865_v17 = vsub.f32 %v3329_v50, %v7774_v52  ;;  %v6879_v52 = vsub.f32 %v3326_v44, %v7780_v31 }
 0x415   : > { %3460 = vrot.lane.b32.xlu1 %v3419_v45, %s4679_s19  ;;  %v4575_v45 = vld [vmem:[%s7727_s1 + $0x98] sm:$0xff] }
 0x416   : > { %v2757_v35 = vadd.f32 %v4575_v45, %v6542_v60  ;;  %vm7789_vm14 = vcmp.ge.f32.partialorder %v6865_v17, 0.001  ;;  %v4576_v60 = vld [vmem:[%s7727_s1 + $0x80] sm:$0xff]  ;;  %vm7787_vm15 = vcmp.ge.f32.partialorder %v6879_v52, 0.001 }
 0x417   : > { %v2754_v45 = vadd.f32 %v4576_v60, %v6549_v53 }
 0x418   : > { %3662 = vrot.lane.b32.xlu0 %v3328_v14, %s4678_s13  ;;  %v6883_v14 = vsub.f32 %v3327_v18, %v7779_v30  ;;  %v3173_v6 = vsub.f32 %v2757_v35, %v3097_v3  ;;  %v3269_v27 = vadd.f32 %v3097_v3, %v2757_v35  ;;  %v4577_v30 = vld [vmem:[%s7727_s1 + $0x88] sm:$0xff] }
 0x419   : > { %3664 = vrot.lane.b32.xlu1 %v3329_v50, %s4678_s13  ;;  %v3172_v50 = vsub.f32 %v2756_v8, %v3095_v26  ;;  %v2755_v31 = vadd.f32 %v4577_v30, %v6553_v34  ;;  %v7886_v26 = vmov 0   ;;  %v3170_v53 = vsub.f32 %v2754_v45, %v3091_v47 }
 0x41a   : > { %v3424_v35 = vsel %vm7790_vm13, 1, %v7886_v26  ;;  %vm7786_vm0 = vcmp.ge.f32.partialorder %v6883_v14, 0.001  ;;  %v3266_v3 = vadd.f32 %v3091_v47, %v2754_v45  ;;  %v3300_v34 = vmax.f32 %v3268_v5, 0.0 }
 0x41b   : > { %v3171_v8 = vsub.f32 %v2755_v31, %v3093_v4  ;;  %v3267_v60 = vadd.f32 %v3093_v4, %v2755_v31  ;;  %v6905_v51 = vmax.f32 %v3172_v50, 0.0  ;;  %v6907_v30 = vmax.f32 %v3173_v6, 0.0 }
 0x41c   : > { %3658 = vrot.lane.b32.xlu0 %v3326_v44, %s4678_s13  ;;  %v3425_v44 = vsel %vm7789_vm14, 1, %v7886_v26  ;;  %v3422_v16 = vsel %vm7787_vm15, 1, %v7886_v26  ;;  %v3423_v47 = vsel %vm7786_vm0, 1, %v7886_v26  ;;  %v6917_v45 = vmax.f32 %v3170_v53, 0.0 }
 0x41d   : > { %3660 = vrot.lane.b32.xlu1 %v3327_v18, %s4678_s13  ;;  %7887 = vst [vmem:[#allocation38_spill] sm:$0xff] %v6905_v51  ;;  %7888 = vst [vmem:[#allocation41_spill] sm:$0xff] %v6907_v30  ;;  %v3301_v18 = vmax.f32 %v3269_v27, 0.0  ;;  %v3298_v4 = vmax.f32 %v3266_v3, 0.0  ;;  %v6919_v31 = vmax.f32 %v3171_v8, 0.0  ;;  %v3299_v50 = vmax.f32 %v3267_v60, 0.0 }
 0x41e   : > { %7889 = vst [vmem:[#allocation42_spill] sm:$0xff] %v6917_v45  ;;  %v7788_v27 = vmin.f32 %v6905_v51, 64.0  ;;  %v3332_v5 = vmin.f32 %v3300_v34, 64.0  ;;  %v7785_v6 = vmin.f32 %v6907_v30, 64.0 }
 0x41f   : > { %7890 = vst [vmem:[#allocation43_spill] sm:$0xff] %v6919_v31  ;;  %v3330_v20 = vmin.f32 %v3298_v4, 64.0  ;;  %v7791_v53 = vmin.f32 %v6919_v31, 64.0  ;;  %v3331_v57 = vmin.f32 %v3299_v50, 64.0 }
 0x420   : > { %3470 = vrot.lane.b32.xlu0 %v3424_v35, %s4679_s19  ;;  %v3333_v35 = vmin.f32 %v3301_v18, 64.0  ;;  %v6930_v8 = vsub.f32 %v3332_v5, %v7788_v27 }
 0x421   : > { %3472 = vrot.lane.b32.xlu1 %v3425_v44, %s4679_s19  ;;  %v7792_v44 = vmin.f32 %v6917_v45, 64.0 }
 0x422   : > { %v6934_v60 = vsub.f32 %v3333_v35, %v7785_v6  ;;  %vm7799_vm0 = vcmp.ge.f32.partialorder %v6930_v8, 0.001 }
 0x423   : > { %v6947_v50 = vsub.f32 %v3330_v20, %v7792_v44 }
 0x424   : > { %3466 = vrot.lane.b32.xlu0 %v3422_v16, %s4679_s19  ;;  %v4578_v16 = vld [vmem:[%s7727_s1 + $0xb0] sm:$0xff]  ;;  %vm7798_vm15 = vcmp.ge.f32.partialorder %v6934_v60, 0.001 }
 0x425   : > { %3468 = vrot.lane.b32.xlu1 %v3423_v47, %s4679_s19  ;;  %v2760_v34 = vadd.f32 %v4578_v16, %v6570_v48  ;;  %v4579_v47 = vld [vmem:[%s7727_s1 + $0xb8] sm:$0xff]  ;;  %vm7797_vm14 = vcmp.ge.f32.partialorder %v6947_v50, 0.001 }
 0x426   : > { %v2761_v4 = vadd.f32 %v4579_v47, %v6573_v13  ;;  %v4580_v13 = vld [vmem:[%s7727_s1 + $0xa0] sm:$0xff]  ;;  %v3426_v45 = vsel %vm7797_vm14, 1, %v7886_v26 }
 0x427   : > { %v2758_v47 = vadd.f32 %v4580_v13, %v6575_v32 }
 0x428   : > { %3670 = vrot.lane.b32.xlu0 %v3332_v5, %s4678_s13  ;;  %v3103_v3 = vpop.permute.xlu0 %3102  ;;  %v6951_v5 = vsub.f32 %v3331_v57, %v7791_v53 }
 0x429   : > { %3672 = vrot.lane.b32.xlu1 %v3333_v35, %s4678_s13  ;;  %v3176_v35 = vsub.f32 %v2760_v34, %v3103_v3  ;;  %v3272_v6 = vadd.f32 %v3103_v3, %v2760_v34  ;;  %v4581_v3 = vld [vmem:[%s7727_s1 + $0xa8] sm:$0xff] }
 0x42a   : > { %v3105_v18 = vpop.permute.xlu1 %3104  ;;  %vm7796_vm13 = vcmp.ge.f32.partialorder %v6951_v5, 0.001 }
 0x42b   : > { %v3177_v48 = vsub.f32 %v2761_v4, %v3105_v18  ;;  %v3273_v16 = vadd.f32 %v3105_v18, %v2761_v4  ;;  %v3428_v18 = vsel %vm7799_vm0, 1, %v7886_v26  ;;  %v6973_v32 = vmax.f32 %v3176_v35, 0.0 }
 0x42c   : > { %3666 = vrot.lane.b32.xlu0 %v3330_v20, %s4678_s13  ;;  %v3099_v27 = vpop.permute.xlu0 %3098  ;;  %v2759_v20 = vadd.f32 %v4581_v3, %v6577_v39  ;;  %v3304_v4 = vmax.f32 %v3272_v6, 0.0  ;;  %v3427_v35 = vsel %vm7796_vm13, 1, %v7886_v26 }
 0x42d   : > { %3668 = vrot.lane.b32.xlu1 %v3331_v57, %s4678_s13  ;;  %v3429_v57 = vsel %vm7798_vm15, 1, %v7886_v26  ;;  %7891 = vst [vmem:[#allocation44_spill] sm:$0xff] %v6973_v32  ;;  %v3174_v13 = vsub.f32 %v2758_v47, %v3099_v27  ;;  %v3270_v53 = vadd.f32 %v3099_v27, %v2758_v47  ;;  %v6976_v39 = vmax.f32 %v3177_v48, 0.0 }
 0x42e   : > { %v3101_v34 = vpop.permute.xlu1 %3100  ;;  %v3305_v3 = vmax.f32 %v3273_v16, 0.0  ;;  %v7803_v6 = vmin.f32 %v6973_v32, 64.0  ;;  %v3336_v27 = vmin.f32 %v3304_v4, 64.0 }
 0x42f   : > { %7892 = vst [vmem:[#allocation45_spill] sm:$0xff] %v6976_v39  ;;  %v3175_v44 = vsub.f32 %v2759_v20, %v3101_v34  ;;  %v3271_v31 = vadd.f32 %v3101_v34, %v2759_v20  ;;  %v6986_v47 = vmax.f32 %v3174_v13, 0.0  ;;  %v3302_v48 = vmax.f32 %v3270_v53, 0.0 }
 0x430   : > { %3478 = vrot.lane.b32.xlu0 %v3428_v18, %s4679_s19  ;;  %v7802_v16 = vmin.f32 %v6976_v39, 64.0  ;;  %v3337_v20 = vmin.f32 %v3305_v3, 64.0  ;;  %v6997_v4 = vsub.f32 %v3336_v27, %v7803_v6  ;;  %v4584_v6 = vld [vmem:[%s7727_s1 + $0xc0] sm:$0xff] }
 0x431   : > { %3480 = vrot.lane.b32.xlu1 %v3429_v57, %s4679_s19  ;;  %7893 = vst [vmem:[#allocation46_spill] sm:$0xff] %v6986_v47  ;;  %v6990_v34 = vmax.f32 %v3175_v44, 0.0  ;;  %v3303_v18 = vmax.f32 %v3271_v31, 0.0  ;;  %v7801_v57 = vmin.f32 %v6986_v47, 64.0  ;;  %v3334_v30 = vmin.f32 %v3302_v48, 64.0 }
 0x432   : > { %v7003_v44 = vsub.f32 %v3337_v20, %v7802_v16  ;;  %vm7821_vm13 = vcmp.ge.f32.partialorder %v6997_v4, 0.001 }
 0x433   : > { %7894 = vst [vmem:[#allocation47_spill] sm:$0xff] %v6990_v34  ;;  %v7800_v53 = vmin.f32 %v6990_v34, 64.0  ;;  %v7009_v31 = vsub.f32 %v3334_v30, %v7801_v57  ;;  %v3432_v3 = vsel %vm7821_vm13, 1, %v7886_v26  ;;  %v4585_v34 = vld [vmem:[%s7727_s1 + $0xc8] sm:$0xff] }
 0x434   : > { %3474 = vrot.lane.b32.xlu0 %v3426_v45, %s4679_s19  ;;  %v3335_v45 = vmin.f32 %v3303_v18, 64.0  ;;  %vm7813_vm14 = vcmp.ge.f32.partialorder %v7003_v44, 0.001 }
 0x435   : > { %3476 = vrot.lane.b32.xlu1 %v3427_v35, %s4679_s19  ;;  %v3433_v35 = vsel %vm7813_vm14, 1, %v7886_v26  ;;  %vm7812_vm15 = vcmp.ge.f32.partialorder %v7009_v31, 0.001 }
 0x436   : > { %v7015_v13 = vsub.f32 %v3335_v45, %v7800_v53 }
 0x438   : > { %3678 = vrot.lane.b32.xlu0 %v3336_v27, %s4678_s13  ;;  %vm7810_vm0 = vcmp.ge.f32.partialorder %v7015_v13, 0.001  ;;  %v4582_v27 = vld [vmem:[%s7727_s1 + $0xd0] sm:$0xff] }
 0x439   : > { %3680 = vrot.lane.b32.xlu1 %v3337_v20, %s4678_s13  ;;  %v2764_v48 = vadd.f32 %v4582_v27, %v6587_v12  ;;  %v3431_v20 = vsel %vm7810_vm0, 1, %v7886_v26 }
 0x43c   : > { %3674 = vrot.lane.b32.xlu0 %v3334_v30, %s4678_s13  ;;  %v3430_v30 = vsel %vm7812_vm15, 1, %v7886_v26 }
 0x43d   : > { %3676 = vrot.lane.b32.xlu1 %v3335_v45, %s4678_s13  ;;  %v4583_v45 = vld [vmem:[%s7727_s1 + $0xd8] sm:$0xff] }
 0x440   : > { %3486 = vrot.lane.b32.xlu0 %v3432_v3, %s4679_s19  ;;  %v2765_v3 = vadd.f32 %v4583_v45, %v6589_v56  ;;  %v2763_v56 = vadd.f32 %v4585_v34, %v6593_v58 }
 0x441   : > { %3488 = vrot.lane.b32.xlu1 %v3433_v35, %s4679_s19 }
 0x444   : > { %3482 = vrot.lane.b32.xlu0 %v3430_v30, %s4679_s19 }
 0x445   : > { %3484 = vrot.lane.b32.xlu1 %v3431_v20, %s4679_s19  ;;  %v3111_v18 = vpop.permute.xlu0 %3110  ;;  %v2762_v20 = vadd.f32 %v4584_v6, %v6591_v54 }
 0x446   : > { %v3180_v35 = vsub.f32 %v2764_v48, %v3111_v18  ;;  %v3276_v53 = vadd.f32 %v3111_v18, %v2764_v48 }
 0x447   : > { %v3113_v57 = vpop.permute.xlu1 %3112 }
 0x448   : > { %v7043_v16 = vmax.f32 %v3180_v35, 0.0  ;;  %v3308_v12 = vmax.f32 %v3276_v53, 0.0  ;;  %v3181_v30 = vsub.f32 %v2765_v3, %v3113_v57  ;;  %v3277_v27 = vadd.f32 %v3113_v57, %v2765_v3 }
 0x449   : > { %v3107_v45 = vpop.permute.xlu0 %3106 }
 0x44a   : > { %v7809_v48 = vmin.f32 %v7043_v16, 64.0  ;;  %v3340_v18 = vmin.f32 %v3308_v12, 64.0  ;;  %v7054_v35 = vmax.f32 %v3181_v30, 0.0  ;;  %v3309_v53 = vmax.f32 %v3277_v27, 0.0  ;;  %v4586_v30 = vld [vmem:[%s7727_s1 + $0xf0] sm:$0xff] }
 0x44b   : > { %v3178_v57 = vsub.f32 %v2762_v20, %v3107_v45  ;;  %v3274_v3 = vadd.f32 %v3107_v45, %v2762_v20  ;;  %v3109_v47 = vpop.permute.xlu1 %3108  ;;  %v2768_v27 = vadd.f32 %v4586_v30, %v6603_v29 }
 0x44c   : > { %7895 = vst [vmem:[#allocation48_spill] sm:$0xff] %v7054_v35  ;;  %v7811_v39 = vmin.f32 %v7054_v35, 64.0  ;;  %v3341_v32 = vmin.f32 %v3309_v53, 64.0  ;;  %v3179_v54 = vsub.f32 %v2763_v56, %v3109_v47  ;;  %v3275_v6 = vadd.f32 %v3109_v47, %v2763_v56  ;;  %3686 = vrot.lane.b32.xlu0 %v3340_v18, %s4678_s13 }
 0x44d   : > { %v7058_v51 = vmax.f32 %v3178_v57, 0.0  ;;  %v3306_v58 = vmax.f32 %v3274_v3, 0.0  ;;  %v3119_v34 = vpop.permute.xlu0 %3118  ;;  %v7062_v12 = vsub.f32 %v3340_v18, %v7809_v48  ;;  %v4587_v18 = vld [vmem:[%s7727_s1 + $0xf8] sm:$0xff] }
 0x44e   : > { %v7068_v20 = vmax.f32 %v3179_v54, 0.0  ;;  %v3307_v45 = vmax.f32 %v3275_v6, 0.0  ;;  %3688 = vrot.lane.b32.xlu1 %v3341_v32, %s4678_s13  ;;  %v7074_v57 = vsub.f32 %v3341_v32, %v7811_v39  ;;  %v2769_v3 = vadd.f32 %v4587_v18, %v6605_v42  ;;  %v4588_v32 = vld [vmem:[%s7727_s1 + $0xe0] sm:$0xff]  ;;  %v4589_v42 = vld [vmem:[%s7727_s1 + $0xe8] sm:$0xff] }
 0x44f   : > { %7896 = vst [vmem:[#allocation49_spill] sm:$0xff] %v7058_v51  ;;  %v3338_v56 = vmin.f32 %v3306_v58, 64.0  ;;  %v3121_v53 = vpop.permute.xlu1 %3120  ;;  %v3184_v54 = vsub.f32 %v2768_v27, %v3119_v34  ;;  %v3280_v30 = vadd.f32 %v3119_v34, %v2768_v27  ;;  %vm7815_vm0 = vcmp.ge.f32.partialorder %v7062_v12, 0.001 }
 0x450   : > { %7897 = vst [vmem:[#allocation50_spill] sm:$0xff] %v7068_v20  ;;  %v3339_v29 = vmin.f32 %v3307_v45, 64.0  ;;  %v2766_v58 = vadd.f32 %v4588_v32, %v6607_v38  ;;  %v3185_v39 = vsub.f32 %v2769_v3, %v3121_v53  ;;  %v3281_v47 = vadd.f32 %v3121_v53, %v2769_v3 }
 0x451   : > { %3682 = vrot.lane.b32.xlu0 %v3338_v56, %s4678_s13  ;;  %v3115_v48 = vpop.permute.xlu0 %3114  ;;  %vm7820_vm15 = vcmp.ge.f32.partialorder %v7074_v57, 0.001  ;;  %v2767_v34 = vadd.f32 %v4589_v42, %v6609_v2  ;;  %v7898_v45 = vmin.f32 %v7058_v51, 64.0  ;;  %v7097_v6 = vmax.f32 %v3184_v54, 0.0 }
 0x452   : > { %3684 = vrot.lane.b32.xlu1 %v3339_v29, %s4678_s13  ;;  %v3312_v38 = vmax.f32 %v3280_v30, 0.0  ;;  %v3182_v32 = vsub.f32 %v2766_v58, %v3115_v48  ;;  %v3436_v53 = vsel %vm7815_vm0, 1, %v7886_v26  ;;  %v3278_v3 = vadd.f32 %v3115_v48, %v2766_v58 }
 0x453   : > { %v3117_v27 = vpop.permute.xlu1 %3116  ;;  %v7095_v18 = vsub.f32 %v3338_v56, %v7898_v45  ;;  %v3437_v2 = vsel %vm7820_vm15, 1, %v7886_v26  ;;  %v7899_v56 = vmin.f32 %v7068_v20, 64.0  ;;  %v7111_v54 = vmax.f32 %v3185_v39, 0.0 }
 0x454   : > { %v3313_v30 = vmax.f32 %v3281_v47, 0.0  ;;  %v3183_v45 = vsub.f32 %v2767_v34, %v3117_v27  ;;  %v3279_v51 = vadd.f32 %v3117_v27, %v2767_v34  ;;  %v7822_v48 = vmin.f32 %v7097_v6, 64.0 }
 0x455   : > { %3494 = vrot.lane.b32.xlu0 %v3436_v53, %s4679_s19  ;;  %vm7819_vm14 = vcmp.ge.f32.partialorder %v7095_v18, 0.001  ;;  %v7109_v42 = vsub.f32 %v3339_v29, %v7899_v56  ;;  %7900 = vst [vmem:[#allocation51_spill] sm:$0xff] %v7111_v54  ;;  %v3344_v53 = vmin.f32 %v3312_v38, 64.0  ;;  %v7119_v35 = vmax.f32 %v3182_v32, 0.0 }
 0x456   : > { %3496 = vrot.lane.b32.xlu1 %v3437_v2, %s4679_s19  ;;  %v3434_v58 = vsel %vm7819_vm14, 1, %v7886_v26  ;;  %v3310_v29 = vmax.f32 %v3278_v3, 0.0  ;;  %v3345_v27 = vmin.f32 %v3313_v30, 64.0  ;;  %v7128_v2 = vmax.f32 %v3183_v45, 0.0 }
 0x457   : > { %vm7818_vm0 = vcmp.ge.f32.partialorder %v7109_v42, 0.001  ;;  %v3311_v56 = vmax.f32 %v3279_v51, 0.0  ;;  %v7830_v32 = vmin.f32 %v7119_v35, 64.0  ;;  %v7901_v51 = vmin.f32 %v7111_v54, 64.0 }
 0x458   : > { %v3435_v47 = vsel %vm7818_vm0, 1, %v7886_v26  ;;  %v3342_v3 = vmin.f32 %v3310_v29, 64.0  ;;  %v7825_v20 = vmin.f32 %v7128_v2, 64.0 }
 0x459   : > { %3490 = vrot.lane.b32.xlu0 %v3434_v58, %s4679_s19  ;;  %v7122_v39 = vpop.permute.xlu0 %3638  ;;  %v7137_v58 = vsub.f32 %v3344_v53, %v7822_v48  ;;  %v3343_v34 = vmin.f32 %v3311_v56, 64.0  ;;  %v7145_v45 = vsub.f32 %v3345_v27, %v7901_v51 }
 0x45a   : > { %3492 = vrot.lane.b32.xlu1 %v3435_v47, %s4679_s19  ;;  %v7151_v29 = vsub.f32 %v3342_v3, %v7830_v32  ;;  %v7903_v32 = vld [vmem:[#allocation8_spill] sm:$0xff] }
 0x45b   : > { %v7131_v38 = vpop.permute.xlu1 %3640  ;;  %vm7826_vm0 = vcmp.ge.f32.partialorder %v7137_v58, 0.001  ;;  %vm7827_vm14 = vcmp.ge.f32.partialorder %v7145_v45, 0.001 }
 0x45c   : > { %v3440_v51 = vsel %vm7826_vm0, 1, %v7886_v26  ;;  %vm3406_vm15 = vcmp.ge.f32.partialorder %v7151_v29, 0.001 }
 0x45d   : > { %3694 = vrot.lane.b32.xlu0 %v3344_v53, %s4678_s13  ;;  %v7157_v53 = vsub.f32 %v3343_v34, %v7825_v20  ;;  %v3438_v20 = vsel %vm3406_vm15, 1, %v7886_v26 }
 0x45e   : > { %v7140_v30 = vpop.permute.xlu0 %3634  ;;  %3696 = vrot.lane.b32.xlu1 %v3345_v27, %s4678_s13 }
 0x45f   : > { %v7147_v47 = vpop.permute.xlu1 %3636  ;;  %vm3407_vm12 = vcmp.ge.f32.partialorder %v7157_v53, 0.001  ;;  %v7954_v53 = vmin.f32 %v6650_v11, 64.0 }
 0x461   : > { %3690 = vrot.lane.b32.xlu0 %v3342_v3, %s4678_s13  ;;  %v3441_v3 = vsel %vm7827_vm14, 1, %v7886_v26 }
 0x462   : > { %v3447_v56 = vpop.permute.xlu0 %3446  ;;  %3692 = vrot.lane.b32.xlu1 %v3343_v34, %s4678_s13  ;;  %s4682_s13 = smov 60  }
 0x463   : > { %v3449_v27 = vpop.permute.xlu1 %3448  ;;  %vm3508_vm13 = vcmp.ne.s32.totalorder %v3447_v56, 0  ;;  %v3439_v56 = vsel %vm3407_vm12, 1, %v7886_v26 }
 0x464   : > { %vm3509_vm11 = vcmp.ne.s32.totalorder %v3449_v27, 0  ;;  %vm3540_vm0 = vmand %vm3380_vm1, %vm3508_vm13 }
 0x465   : > { %3502 = vrot.lane.b32.xlu0 %v3440_v51, %s4679_s19  ;;  %vm3541_vm14 = vmand %vm3381_vm2, %vm3509_vm11 }
 0x466   : > { %v3443_v48 = vpop.permute.xlu0 %3442  ;;  %3504 = vrot.lane.b32.xlu1 %v3441_v3, %s4679_s19  ;;  %v7902_v3 = vld [vmem:[#allocation6_spill] sm:$0xff]  ;;  %v3573_v54 = vsel %vm3541_vm14, %v7903_v32, -inf }
 0x467   : > { %v3445_v34 = vpop.permute.xlu1 %3444  ;;  %vm3506_vm10 = vcmp.ne.s32.totalorder %v3443_v48, 0  ;;  %v3572_v25 = vsel %vm3540_vm0, %v7902_v3, -inf }
 0x468   : > { %vm3507_vm9 = vcmp.ne.s32.totalorder %v3445_v34, 0  ;;  %vm3538_vm1 = vmand %vm3378_vm3, %vm3506_vm10  ;;  %v7905_v34 = vld [vmem:[#allocation9_spill] sm:$0xff] }
 0x469   : > { %3498 = vrot.lane.b32.xlu0 %v3438_v20, %s4679_s19  ;;  %vm3539_vm2 = vmand %vm3379_vm4, %vm3507_vm9  ;;  %v7904_v20 = vld [vmem:[#allocation7_spill] sm:$0xff] }
 0x46a   : > { %v7182_v51 = vpop.permute.xlu0 %3646  ;;  %3500 = vrot.lane.b32.xlu1 %v3439_v56, %s4679_s19  ;;  %v3570_v48 = vsel %vm3538_vm1, %v7904_v20, -inf  ;;  %v3571_v56 = vsel %vm3539_vm2, %v7905_v34, -inf  ;;  %vm7912_vm1 = vcmp.ge.f32.partialorder %v6807_v36, 0.001  ;;  %v7917_v36 = vld [vmem:[#allocation17_spill] sm:$0xff]  ;;  %s282_s19 = sand.u32 1, %s4652_s22  }
 0x46b   : > { %v7185_v27 = vpop.permute.xlu1 %3648  ;;  %s4141_s28 = sshll.u32 %s282_s19, 8  ;;  %s7679_s17 = scalar_lea.sflag [#allocation4], %s282_s19 }
 0x46c   : > { %s7396_s15 = scalar_lea.vmem [#allocation3], %s4141_s28 }
 0x46d   : > { %3766 = vrot.lane.b32.xlu0 %v3572_v25, %s4682_s13  ;;  %s4038_s16 = sshll.u32 %s7396_s15, 4  ;;  %s7672_s16 = int_to_ptr.vmem [resolvable:$true] %s4038_s16 }
 0x46e   : > { %v7194_v7 = vpop.permute.xlu0 %3642  ;;  %3768 = vrot.lane.b32.xlu1 %v3573_v54, %s4682_s13  ;;  %v7907_v54 = vld [vmem:[#allocation12_spill] sm:$0xff]  ;;  %s4590_s20 = scalar_lea.vmem %s7672_s16, 4096  ;;  %p4597_p1 = scmp.lt.s32.totalorder %s7672_s16, %s4595_s27 }
 0x46f   : > { %v7197_v26 = vpop.permute.xlu1 %3644  ;;  %p4591_p12 = scmp.ne.s32.totalorder %s7672_s16, %s4590_s20  ;;  %p4598_p2 = scmp.lt.s32.totalorder %s4596_s30, %s4590_s20 }
 0x471   : > { %3762 = vrot.lane.b32.xlu0 %v3570_v48, %s4682_s13  ;;  %p4592_p13 = pnand %p4591_p12, %p4760_p4  ;;  %p4599_p3 = por %p4598_p2, %p4597_p1 }
 0x472   : > { %v3455_v63 = vpop.permute.xlu0 %3454  ;;  %3764 = vrot.lane.b32.xlu1 %v3571_v56, %s4682_s13 }
 0x473   : > { %vm3512_vm3 = vcmp.ne.s32.totalorder %v3455_v63, 0  ;;  %v3457_v32 = vpop.permute.xlu1 %3456  ;;  %p4593_p0 = pneg %p4592_p13 }
 0x474   : > { %vm3544_vm4 = vmand %vm3384_vm5, %vm3512_vm3  ;;  %vm3513_vm9 = vcmp.ne.s32.totalorder %v3457_v32, 0 }
 0x475   : > { %v3576_v3 = vsel %vm3544_vm4, %v7906_v43, -inf  ;;  %vm3545_vm10 = vmand %vm3385_vm6, %vm3513_vm9  ;;  %vm7914_vm4 = vcmp.ge.f32.partialorder %v6821_v40, 0.001  ;;  %p4600_p5 = pnand %p4599_p3, %p4593_p0 }
 0x476   : > { %v3577_v25 = vsel %vm3545_vm10, %v7907_v54, -inf  ;;  %3774 = vrot.lane.b32.xlu0 %v3576_v3, %s4682_s13  ;;  %v3451_v20 = vpop.permute.xlu0 %3450 }
 0x477   : > { %vm3510_vm11 = vcmp.ne.s32.totalorder %v3451_v20, 0  ;;  %3776 = vrot.lane.b32.xlu1 %v3577_v25, %s4682_s13  ;;  %v3453_v48 = vpop.permute.xlu1 %3452  ;;  %v7913_v20 = vld [vmem:[#allocation16_spill] sm:$0xff] }
 0x478   : > { %vm3542_vm13 = vmand %vm3382_vm7, %vm3510_vm11  ;;  %vm3511_vm14 = vcmp.ne.s32.totalorder %v3453_v48, 0  ;;  %vm7910_vm7 = vcmp.ge.f32.partialorder %v6801_v49, 0.001  ;;  %v7915_v49 = vld [vmem:[#allocation15_spill] sm:$0xff]  ;;  %vm7916_vm11 = vcmp.ge.f32.partialorder %v6829_v1, 0.001 }
 0x479   : > { %v3574_v34 = vsel %vm3542_vm13, %v7908_v19, -inf  ;;  %vm3543_vm5 = vmand %vm3383_vm8, %vm3511_vm14  ;;  %v7919_v1 = vld [vmem:[#allocation18_spill] sm:$0xff] }
 0x47a   : > { %v3575_v56 = vsel %vm3543_vm5, %v7909_v28, -inf  ;;  %3770 = vrot.lane.b32.xlu0 %v3574_v34, %s4682_s13  ;;  %v7218_v63 = vpop.permute.xlu0 %3654  ;;  %vm7918_vm5 = vcmp.ge.f32.partialorder %v6861_v15, 0.001  ;;  %v7923_v15 = vld [vmem:[#allocation19_spill] sm:$0xff] }
 0x47b   : > { %3772 = vrot.lane.b32.xlu1 %v3575_v56, %s4682_s13  ;;  %v7221_v32 = vpop.permute.xlu1 %3656 }
 0x47e   : > { %v7223_v43 = vpop.permute.xlu0 %3650 }
 0x47f   : > { %v7225_v9 = vpop.permute.xlu1 %3652 }
 0x482   : > { %v3463_v3 = vpop.permute.xlu0 %3462 }
 0x483   : > { %vm3516_vm6 = vcmp.ne.s32.totalorder %v3463_v3, 0  ;;  %v3465_v54 = vpop.permute.xlu1 %3464 }
 0x484   : > { %vm3548_vm8 = vmand %vm7910_vm7, %vm3516_vm6  ;;  %vm3517_vm0 = vcmp.ne.s32.totalorder %v3465_v54, 0 }
 0x485   : > { %v3580_v25 = vsel %vm3548_vm8, %v7911_v33, -inf  ;;  %vm3549_vm2 = vmand %vm7912_vm1, %vm3517_vm0  ;;  %vm7920_vm8 = vcmp.ge.f32.partialorder %v6865_v17, 0.001  ;;  %v7925_v17 = vld [vmem:[#allocation21_spill] sm:$0xff] }
 0x486   : > { %v3581_v48 = vsel %vm3549_vm2, %v7913_v20, -inf  ;;  %3782 = vrot.lane.b32.xlu0 %v3580_v25, %s4682_s13  ;;  %v3459_v19 = vpop.permute.xlu0 %3458  ;;  %vm7922_vm2 = vcmp.ge.f32.partialorder %v6879_v52, 0.001 }
 0x487   : > { %vm3514_vm3 = vcmp.ne.s32.totalorder %v3459_v19, 0  ;;  %3784 = vrot.lane.b32.xlu1 %v3581_v48, %s4682_s13  ;;  %v3461_v34 = vpop.permute.xlu1 %3460  ;;  %v7921_v19 = vld [vmem:[#allocation20_spill] sm:$0xff] }
 0x488   : > { %vm3546_vm9 = vmand %vm7914_vm4, %vm3514_vm3  ;;  %vm3515_vm10 = vcmp.ne.s32.totalorder %v3461_v34, 0 }
 0x489   : > { %v3578_v28 = vsel %vm3546_vm9, %v7915_v49, -inf  ;;  %vm3547_vm13 = vmand %vm7916_vm11, %vm3515_vm10  ;;  %vm7924_vm9 = vcmp.ge.f32.partialorder %v6883_v14, 0.001  ;;  %v7927_v14 = vld [vmem:[#allocation22_spill] sm:$0xff] }
 0x48a   : > { %v3579_v56 = vsel %vm3547_vm13, %v7917_v36, -inf  ;;  %3778 = vrot.lane.b32.xlu0 %v3578_v28, %s4682_s13  ;;  %v7242_v3 = vpop.permute.xlu0 %3662  ;;  %vm7926_vm13 = vcmp.ge.f32.partialorder %v6930_v8, 0.001  ;;  %v7931_v8 = vld [vmem:[#allocation23_spill] sm:$0xff] }
 0x48b   : > { %3780 = vrot.lane.b32.xlu1 %v3579_v56, %s4682_s13  ;;  %v7245_v54 = vpop.permute.xlu1 %3664 }
 0x48e   : > { %v7247_v33 = vpop.permute.xlu0 %3658 }
 0x48f   : > { %v7249_v40 = vpop.permute.xlu1 %3660 }
 0x492   : > { %v3471_v25 = vpop.permute.xlu0 %3470 }
 0x493   : > { %vm3520_vm14 = vcmp.ne.s32.totalorder %v3471_v25, 0  ;;  %v3473_v20 = vpop.permute.xlu1 %3472 }
 0x494   : > { %vm3552_vm6 = vmand %vm7918_vm5, %vm3520_vm14  ;;  %vm3521_vm7 = vcmp.ne.s32.totalorder %v3473_v20, 0 }
 0x495   : > { %v3584_v48 = vsel %vm3552_vm6, %v7919_v1, -inf  ;;  %vm3553_vm0 = vmand %vm7920_vm8, %vm3521_vm7  ;;  %vm7928_vm6 = vcmp.ge.f32.partialorder %v6934_v60, 0.001  ;;  %v7933_v60 = vld [vmem:[#allocation25_spill] sm:$0xff] }
 0x496   : > { %v3585_v34 = vsel %vm3553_vm0, %v7921_v19, -inf  ;;  %3790 = vrot.lane.b32.xlu0 %v3584_v48, %s4682_s13  ;;  %v3467_v49 = vpop.permute.xlu0 %3466  ;;  %vm7930_vm0 = vcmp.ge.f32.partialorder %v6947_v50, 0.001 }
 0x497   : > { %vm3518_vm1 = vcmp.ne.s32.totalorder %v3467_v49, 0  ;;  %3792 = vrot.lane.b32.xlu1 %v3585_v34, %s4682_s13  ;;  %v3469_v28 = vpop.permute.xlu1 %3468  ;;  %v7929_v49 = vld [vmem:[#allocation24_spill] sm:$0xff] }
 0x498   : > { %vm3550_vm3 = vmand %vm7922_vm2, %vm3518_vm1  ;;  %vm3519_vm4 = vcmp.ne.s32.totalorder %v3469_v28, 0 }
 0x499   : > { %v3582_v36 = vsel %vm3550_vm3, %v7923_v15, -inf  ;;  %vm3551_vm10 = vmand %vm7924_vm9, %vm3519_vm4  ;;  %vm7932_vm3 = vcmp.ge.f32.partialorder %v6951_v5, 0.001  ;;  %v7935_v5 = vld [vmem:[#allocation26_spill] sm:$0xff] }
 0x49a   : > { %v3583_v56 = vsel %vm3551_vm10, %v7925_v17, -inf  ;;  %3786 = vrot.lane.b32.xlu0 %v3582_v36, %s4682_s13  ;;  %v7266_v25 = vpop.permute.xlu0 %3670  ;;  %vm7934_vm10 = vcmp.ge.f32.partialorder %v6997_v4, 0.001  ;;  %v7939_v4 = vld [vmem:[#allocation27_spill] sm:$0xff] }
 0x49b   : > { %3788 = vrot.lane.b32.xlu1 %v3583_v56, %s4682_s13  ;;  %v7269_v20 = vpop.permute.xlu1 %3672 }
 0x49e   : > { %v7271_v1 = vpop.permute.xlu0 %3666 }
 0x49f   : > { %v7273_v52 = vpop.permute.xlu1 %3668 }
 0x4a2   : > { %v3479_v48 = vpop.permute.xlu0 %3478 }
 0x4a3   : > { %vm3524_vm11 = vcmp.ne.s32.totalorder %v3479_v48, 0  ;;  %v3481_v19 = vpop.permute.xlu1 %3480 }
 0x4a4   : > { %vm3556_vm14 = vmand %vm7926_vm13, %vm3524_vm11  ;;  %vm3525_vm5 = vcmp.ne.s32.totalorder %v3481_v19, 0 }
 0x4a5   : > { %v3588_v34 = vsel %vm3556_vm14, %v7927_v14, -inf  ;;  %vm3557_vm7 = vmand %vm7928_vm6, %vm3525_vm5  ;;  %vm7936_vm14 = vcmp.ge.f32.partialorder %v7003_v44, 0.001  ;;  %v7941_v44 = vld [vmem:[#allocation29_spill] sm:$0xff] }
 0x4a6   : > { %v3589_v28 = vsel %vm3557_vm7, %v7929_v49, -inf  ;;  %3798 = vrot.lane.b32.xlu0 %v3588_v34, %s4682_s13  ;;  %v3475_v15 = vpop.permute.xlu0 %3474  ;;  %vm7938_vm7 = vcmp.ge.f32.partialorder %v7009_v31, 0.001 }
 0x4a7   : > { %vm3522_vm8 = vcmp.ne.s32.totalorder %v3475_v15, 0  ;;  %3800 = vrot.lane.b32.xlu1 %v3589_v28, %s4682_s13  ;;  %v3477_v36 = vpop.permute.xlu1 %3476  ;;  %v7937_v15 = vld [vmem:[#allocation28_spill] sm:$0xff] }
 0x4a8   : > { %vm3554_vm1 = vmand %vm7930_vm0, %vm3522_vm8  ;;  %vm3523_vm2 = vcmp.ne.s32.totalorder %v3477_v36, 0 }
 0x4a9   : > { %v3586_v17 = vsel %vm3554_vm1, %v7931_v8, -inf  ;;  %vm3555_vm4 = vmand %vm7932_vm3, %vm3523_vm2  ;;  %vm7940_vm1 = vcmp.ge.f32.partialorder %v7015_v13, 0.001  ;;  %v7943_v13 = vld [vmem:[#allocation31_spill] sm:$0xff] }
 0x4aa   : > { %v3587_v56 = vsel %vm3555_vm4, %v7933_v60, -inf  ;;  %3794 = vrot.lane.b32.xlu0 %v3586_v17, %s4682_s13  ;;  %v7290_v48 = vpop.permute.xlu0 %3678  ;;  %vm7942_vm4 = vcmp.ge.f32.partialorder %v7062_v12, 0.001  ;;  %v7947_v12 = vld [vmem:[#allocation32_spill] sm:$0xff] }
 0x4ab   : > { %3796 = vrot.lane.b32.xlu1 %v3587_v56, %s4682_s13  ;;  %v7293_v19 = vpop.permute.xlu1 %3680 }
 0x4ae   : > { %v7295_v14 = vpop.permute.xlu0 %3674 }
 0x4af   : > { %v7297_v50 = vpop.permute.xlu1 %3676 }
 0x4b2   : > { %v3487_v34 = vpop.permute.xlu0 %3486 }
 0x4b3   : > { %vm3528_vm9 = vcmp.ne.s32.totalorder %v3487_v34, 0  ;;  %v3489_v49 = vpop.permute.xlu1 %3488 }
 0x4b4   : > { %vm3560_vm11 = vmand %vm7934_vm10, %vm3528_vm9  ;;  %vm3529_vm13 = vcmp.ne.s32.totalorder %v3489_v49, 0 }
 0x4b5   : > { %v3592_v28 = vsel %vm3560_vm11, %v7935_v5, -inf  ;;  %vm3561_vm5 = vmand %vm7936_vm14, %vm3529_vm13  ;;  %vm7944_vm11 = vcmp.ge.f32.partialorder %v7074_v57, 0.001 }
 0x4b6   : > { %v3593_v36 = vsel %vm3561_vm5, %v7937_v15, -inf  ;;  %3806 = vrot.lane.b32.xlu0 %v3592_v28, %s4682_s13  ;;  %v3483_v8 = vpop.permute.xlu0 %3482  ;;  %vm7946_vm5 = vcmp.ge.f32.partialorder %v7095_v18, 0.001 }
 0x4b7   : > { %vm3526_vm6 = vcmp.ne.s32.totalorder %v3483_v8, 0  ;;  %3808 = vrot.lane.b32.xlu1 %v3593_v36, %s4682_s13  ;;  %v3485_v17 = vpop.permute.xlu1 %3484  ;;  %v7945_v8 = vld [vmem:[#allocation33_spill] sm:$0xff] }
 0x4b8   : > { %vm3558_vm8 = vmand %vm7938_vm7, %vm3526_vm6  ;;  %vm3527_vm0 = vcmp.ne.s32.totalorder %v3485_v17, 0 }
 0x4b9   : > { %v3590_v60 = vsel %vm3558_vm8, %v7939_v4, -inf  ;;  %vm3559_vm2 = vmand %vm7940_vm1, %vm3527_vm0  ;;  %vm7948_vm8 = vcmp.ge.f32.partialorder %v7109_v42, 0.001  ;;  %vm3858_vm1 = vcmask 244736  }
 0x4ba   : > { %v3591_v56 = vsel %vm3559_vm2, %v7941_v44, -inf  ;;  %3802 = vrot.lane.b32.xlu0 %v3590_v60, %s4682_s13  ;;  %vm3891_vm2 = vcmask 367616  }
 0x4bb   : > { %3804 = vrot.lane.b32.xlu1 %v3591_v56, %s4682_s13 }
 0x4be   : > { %v7315_v34 = vpop.permute.xlu0 %3686 }
 0x4c0   : > { %v7317_v49 = vpop.permute.xlu1 %3688 }
 0x4c3   : > { %v7319_v5 = vpop.permute.xlu0 %3682 }
 0x4c4   : > { %v7321_v31 = vpop.permute.xlu1 %3684 }
 0x4c7   : > { %v3495_v28 = vpop.permute.xlu0 %3494 }
 0x4c8   : > { %vm3532_vm3 = vcmp.ne.s32.totalorder %v3495_v28, 0  ;;  %v3497_v15 = vpop.permute.xlu1 %3496 }
 0x4c9   : > { %vm3564_vm9 = vmand %vm7942_vm4, %vm3532_vm3  ;;  %vm3533_vm10 = vcmp.ne.s32.totalorder %v3497_v15, 0 }
 0x4ca   : > { %v3596_v36 = vsel %vm3564_vm9, %v7943_v13, -inf  ;;  %vm3565_vm13 = vmand %vm7944_vm11, %vm3533_vm10 }
 0x4cb   : > { %v3597_v17 = vsel %vm3565_vm13, %v7945_v8, -inf  ;;  %3814 = vrot.lane.b32.xlu0 %v3596_v36, %s4682_s13  ;;  %v3491_v4 = vpop.permute.xlu0 %3490  ;;  %vm3924_vm13 = vcmask 490496  }
 0x4cc   : > { %vm3530_vm14 = vcmp.ne.s32.totalorder %v3491_v4, 0  ;;  %3816 = vrot.lane.b32.xlu1 %v3597_v17, %s4682_s13  ;;  %v3493_v60 = vpop.permute.xlu1 %3492  ;;  %v7950_v4 = vmin.f32 %v6646_v0, 64.0  ;;  %v7961_v0 = vmin.f32 %v6689_v24, 64.0 }
 0x4cd   : > { %vm3562_vm6 = vmand %vm7946_vm5, %vm3530_vm14  ;;  %vm3531_vm7 = vcmp.ne.s32.totalorder %v3493_v60, 0  ;;  %vm3957_vm5 = vcmask 613376  }
 0x4ce   : > { %v3594_v44 = vsel %vm3562_vm6, %v7947_v12, -inf  ;;  %vm3563_vm0 = vmand %vm7948_vm8, %vm3531_vm7  ;;  %v3862_v60 = vsel %vm3858_vm1, %v7950_v4, %v7131_v38  ;;  %vm7951_vm6 = vcmp.ge.f32.partialorder %v7137_v58, 0.001 }
 0x4cf   : > { %v3595_v57 = vsel %vm3563_vm0, %v6437_v59, -inf  ;;  %3810 = vrot.lane.b32.xlu0 %v3594_v44, %s4682_s13  ;;  %v7338_v56 = vpop.permute.xlu0 %3694  ;;  %v7949_v59 = vmin.f32 %v6635_v55, 64.0 }
 0x4d0   : > { %3812 = vrot.lane.b32.xlu1 %v3595_v57, %s4682_s13  ;;  %v7341_v28 = vpop.permute.xlu1 %3696  ;;  %v3859_v57 = vsel %vm3858_vm1, %v7954_v53, %v7140_v30 }
 0x4d1   : > { %v3861_v8 = vsel %vm3858_vm1, %v7949_v59, %v7122_v39 }
 0x4d2   : > { %v3894_v12 = vsel %vm3891_vm2, %v3861_v8, %v7122_v39  ;;  %v7960_v8 = vld [vmem:[#allocation40_spill] sm:$0xff] }
 0x4d3   : > { %v7343_v15 = vpop.permute.xlu0 %3690 }
 0x4d4   : > { %v7345_v18 = vpop.permute.xlu1 %3692 }
 0x4d7   : > { %v3503_v13 = vpop.permute.xlu0 %3502 }
 0x4d8   : > { %v3505_v36 = vpop.permute.xlu1 %3504  ;;  %vm3536_vm3 = vcmp.ne.s32.totalorder %v3503_v13, 0  ;;  %v7958_v13 = vmin.f32 %v6660_v22, 64.0  ;;  %v3892_v22 = vsel %vm3891_vm2, %v3859_v57, %v7140_v30  ;;  %v3865_v30 = vsel %vm3858_vm1, %v7961_v0, %v7182_v51 }
 0x4d9   : > { %vm3537_vm9 = vcmp.ne.s32.totalorder %v3505_v36, 0  ;;  %vm7367_vm7 = vmand %vm7951_vm6, %vm3536_vm3  ;;  %v3898_v24 = vsel %vm3891_vm2, %v3865_v30, %v7182_v51  ;;  %v7967_v30 = vmin.f32 %v6779_v21, 64.0 }
 0x4db   : > { %v3499_v42 = vpop.permute.xlu0 %3498 }
 0x4dc   : > { %vm3534_vm4 = vcmp.ne.s32.totalorder %v3499_v42, 0  ;;  %v3501_v17 = vpop.permute.xlu1 %3500  ;;  %v7959_v42 = vld [vmem:[#allocation39_spill] sm:$0xff] }
 0x4dd   : > { %vm3566_vm10 = vmand %vm3406_vm15, %vm3534_vm4  ;;  %vm3535_vm11 = vcmp.ne.s32.totalorder %v3501_v17, 0 }
 0x4de   : > { %v3598_v55 = vsel %vm3566_vm10, %v6479_v37, -inf  ;;  %vm3567_vm14 = vmand %vm3407_vm12, %vm3535_vm11  ;;  %v3895_v37 = vsel %vm3891_vm2, %v3862_v60, %v7131_v38  ;;  %vm7955_vm12 = vcmp.ge.f32.partialorder %v7145_v45, 0.001  ;;  %v3860_v38 = vsel %vm3858_vm1, %v7958_v13, %v7147_v47 }
 0x4df   : > { %v3599_v29 = vsel %vm3567_vm14, %v6489_v61, -inf  ;;  %3818 = vrot.lane.b32.xlu0 %v3598_v55, %s4682_s13  ;;  %v3767_v44 = vpop.permute.xlu0 %3766  ;;  %vm7381_vm15 = vmand %vm7955_vm12, %vm3537_vm9  ;;  %v3600_v45 = vsel %vm7367_vm7, %v7959_v42, -inf  ;;  %v3893_v60 = vsel %vm3891_vm2, %v3860_v38, %v7147_v47  ;;  %v7964_v38 = vmin.f32 %v6718_v41, 64.0 }
 0x4e0   : > { %v3927_v58 = vsel %vm3924_vm13, %v3894_v12, %v3767_v44  ;;  %3820 = vrot.lane.b32.xlu1 %v3599_v29, %s4682_s13  ;;  %v3769_v61 = vpop.permute.xlu1 %3768  ;;  %v3601_v17 = vsel %vm7381_vm15, %v7960_v8, -inf }
 0x4e1   : > { %v3960_v11 = vsel %vm3957_vm5, %v3927_v58, 0.0  ;;  %v3928_v36 = vsel %vm3924_vm13, %v3895_v37, %v3769_v61  ;;  %v7962_v37 = vmin.f32 %v6703_v46, 64.0  ;;  %v7963_v58 = vmin.f32 %v6711_v62, 64.0 }
 0x4e2   : > { %3992 = vst [vmem:[%s7396_s15 + $0x10] sm:$0xff] %v3960_v11  ;;  %v3961_v59 = vsel %vm3957_vm5, %v3928_v36, 0.0  ;;  %v3864_v11 = vsel %vm3858_vm1, %v7964_v38, %v7197_v26 }
 0x4e3   : > { %3993 = vst [vmem:[%s7396_s15 + $0x18] sm:$0xff] %v3961_v59  ;;  %3822 = vrot.lane.b32.xlu0 %v3600_v45, %s4682_s13  ;;  %v3763_v4 = vpop.permute.xlu0 %3762  ;;  %v3866_v47 = vsel %vm3858_vm1, %v7962_v37, %v7185_v27  ;;  %v3863_v61 = vsel %vm3858_vm1, %v7963_v58, %v7194_v7  ;;  %v3897_v45 = vsel %vm3891_vm2, %v3864_v11, %v7197_v26  ;;  %v7966_v26 = vmin.f32 %v6763_v10, 64.0  ;;  %v7968_v10 = vld [vmem:[#allocation30_spill] sm:$0xff] }
 0x4e4   : > { %v3925_v55 = vsel %vm3924_vm13, %v3892_v22, %v3763_v4  ;;  %3824 = vrot.lane.b32.xlu1 %v3601_v17, %s4682_s13  ;;  %v3765_v12 = vpop.permute.xlu1 %3764  ;;  %v3899_v39 = vsel %vm3891_vm2, %v3866_v47, %v7185_v27  ;;  %v3896_v62 = vsel %vm3891_vm2, %v3863_v61, %v7194_v7  ;;  %v7965_v7 = vmin.f32 %v6761_v23, 64.0 }
 0x4e5   : > { %v3958_v29 = vsel %vm3957_vm5, %v3925_v55, 0.0  ;;  %v3926_v44 = vsel %vm3924_vm13, %v3893_v60, %v3765_v12  ;;  %v3870_v60 = vsel %vm3858_vm1, %v7966_v26, %v7221_v32  ;;  %v7969_v37 = vmin.f32 %v7968_v10, 64.0 }
 0x4e6   : > { %3990 = vst [vmem:[%s7396_s15] sm:$0xff] %v3958_v29  ;;  %v3959_v53 = vsel %vm3957_vm5, %v3926_v44, 0.0  ;;  %v3869_v4 = vsel %vm3858_vm1, %v7965_v7, %v7218_v63  ;;  %v3903_v0 = vsel %vm3891_vm2, %v3870_v60, %v7221_v32  ;;  %v3867_v29 = vsel %vm3858_vm1, %v7967_v30, %v7223_v43 }
 0x4e7   : > { %3991 = vst [vmem:[%s7396_s15 + $0x8] sm:$0xff] %v3959_v53  ;;  %v3902_v55 = vsel %vm3891_vm2, %v3869_v4, %v7218_v63  ;;  %v3868_v47 = vsel %vm3858_vm1, %v7969_v37, %v7225_v9  ;;  %v3900_v21 = vsel %vm3891_vm2, %v3867_v29, %v7223_v43  ;;  %v7970_v43 = vld [vmem:[#allocation34_spill] sm:$0xff] }
 0x4e8   : > { %v3775_v57 = vpop.permute.xlu0 %3774  ;;  %v7971_v38 = vmin.f32 %v7970_v43, 64.0 }
 0x4e9   : > { %v3931_v46 = vsel %vm3924_vm13, %v3898_v24, %v3775_v57  ;;  %v3777_v13 = vpop.permute.xlu1 %3776  ;;  %v3901_v57 = vsel %vm3891_vm2, %v3868_v47, %v7225_v9  ;;  %v7972_v9 = vld [vmem:[#allocation35_spill] sm:$0xff] }
 0x4ea   : > { %v3964_v51 = vsel %vm3957_vm5, %v3931_v46, 0.0  ;;  %v3932_v36 = vsel %vm3924_vm13, %v3899_v39, %v3777_v13  ;;  %v3873_v11 = vsel %vm3858_vm1, %v7971_v38, %v7242_v3 }
 0x4eb   : > { %3996 = vst [vmem:[%s7396_s15 + $0x30] sm:$0xff] %v3964_v51  ;;  %v3965_v27 = vsel %vm3957_vm5, %v3932_v36, 0.0  ;;  %v7973_v51 = vmin.f32 %v7972_v9, 64.0 }
 0x4ec   : > { %3997 = vst [vmem:[%s7396_s15 + $0x38] sm:$0xff] %v3965_v27  ;;  %v3771_v42 = vpop.permute.xlu0 %3770  ;;  %v3906_v27 = vsel %vm3891_vm2, %v3873_v11, %v7242_v3 }
 0x4ed   : > { %v3929_v41 = vsel %vm3924_vm13, %v3896_v62, %v3771_v42  ;;  %v3773_v59 = vpop.permute.xlu1 %3772  ;;  %v3874_v36 = vsel %vm3858_vm1, %v7973_v51, %v7245_v54 }
 0x4ee   : > { %v3962_v22 = vsel %vm3957_vm5, %v3929_v41, 0.0  ;;  %v3930_v8 = vsel %vm3924_vm13, %v3897_v45, %v3773_v59  ;;  %v3907_v42 = vsel %vm3891_vm2, %v3874_v36, %v7245_v54  ;;  %v7974_v45 = vld [vmem:[#allocation36_spill] sm:$0xff] }
 0x4ef   : > { %3994 = vst [vmem:[%s7396_s15 + $0x20] sm:$0xff] %v3962_v22  ;;  %v3963_v17 = vsel %vm3957_vm5, %v3930_v8, 0.0  ;;  %v7975_v41 = vmin.f32 %v7974_v45, 64.0 }
 0x4f0   : > { %3995 = vst [vmem:[%s7396_s15 + $0x28] sm:$0xff] %v3963_v17  ;;  %v7976_v17 = vld [vmem:[#allocation37_spill] sm:$0xff] }
 0x4f1   : > { %v3871_v59 = vsel %vm3858_vm1, %v7975_v41, %v7247_v33  ;;  %v7977_v7 = vmin.f32 %v7976_v17, 64.0 }
 0x4f2   : > { %v3904_v60 = vsel %vm3891_vm2, %v3871_v59, %v7247_v33  ;;  %v7978_v33 = vld [vmem:[#allocation38_spill] sm:$0xff] }
 0x4f3   : > { %v3872_v4 = vsel %vm3858_vm1, %v7977_v7, %v7249_v40  ;;  %v7979_v10 = vmin.f32 %v7978_v33, 64.0 }
 0x4f5   : > { %v3877_v37 = vsel %vm3858_vm1, %v7979_v10, %v7266_v25 }
 0x4f8   : > { %v3783_v12 = vpop.permute.xlu0 %3782 }
 0x4f9   : > { %v3935_v23 = vsel %vm3924_vm13, %v3902_v55, %v3783_v12  ;;  %v3785_v44 = vpop.permute.xlu1 %3784  ;;  %v3905_v12 = vsel %vm3891_vm2, %v3872_v4, %v7249_v40  ;;  %v7980_v40 = vld [vmem:[#allocation41_spill] sm:$0xff] }
 0x4fa   : > { %v3968_v63 = vsel %vm3957_vm5, %v3935_v23, 0.0  ;;  %v3936_v53 = vsel %vm3924_vm13, %v3903_v0, %v3785_v44  ;;  %v7981_v47 = vmin.f32 %v7980_v40, 64.0 }
 0x4fb   : > { %4000 = vst [vmem:[%s7396_s15 + $0x50] sm:$0xff] %v3968_v63  ;;  %v3969_v32 = vsel %vm3957_vm5, %v3936_v53, 0.0  ;;  %v3910_v53 = vsel %vm3891_vm2, %v3877_v37, %v7266_v25 }
 0x4fc   : > { %4001 = vst [vmem:[%s7396_s15 + $0x58] sm:$0xff] %v3969_v32  ;;  %v3779_v24 = vpop.permute.xlu0 %3778  ;;  %v3878_v63 = vsel %vm3858_vm1, %v7981_v47, %v7269_v20 }
 0x4fd   : > { %v3933_v39 = vsel %vm3924_vm13, %v3900_v21, %v3779_v24  ;;  %v3781_v58 = vpop.permute.xlu1 %3780  ;;  %v3911_v21 = vsel %vm3891_vm2, %v3878_v63, %v7269_v20  ;;  %v7982_v24 = vld [vmem:[#allocation42_spill] sm:$0xff] }
 0x4fe   : > { %v3966_v61 = vsel %vm3957_vm5, %v3933_v39, 0.0  ;;  %v3934_v46 = vsel %vm3924_vm13, %v3901_v57, %v3781_v58  ;;  %v7983_v57 = vmin.f32 %v7982_v24, 64.0 }
 0x4ff   : > { %3998 = vst [vmem:[%s7396_s15 + $0x40] sm:$0xff] %v3966_v61  ;;  %v3967_v13 = vsel %vm3957_vm5, %v3934_v46, 0.0  ;;  %v7984_v46 = vld [vmem:[#allocation43_spill] sm:$0xff] }
 0x500   : > { %3999 = vst [vmem:[%s7396_s15 + $0x48] sm:$0xff] %v3967_v13  ;;  %v3875_v39 = vsel %vm3858_vm1, %v7983_v57, %v7271_v1  ;;  %v7985_v13 = vmin.f32 %v7984_v46, 64.0 }
 0x501   : > { %v3908_v11 = vsel %vm3891_vm2, %v3875_v39, %v7271_v1  ;;  %v7986_v1 = vld [vmem:[#allocation44_spill] sm:$0xff] }
 0x502   : > { %v3876_v43 = vsel %vm3858_vm1, %v7985_v13, %v7273_v52  ;;  %v7987_v41 = vmin.f32 %v7986_v1, 64.0 }
 0x503   : > { %v3909_v51 = vsel %vm3891_vm2, %v3876_v43, %v7273_v52  ;;  %v7988_v52 = vld [vmem:[#allocation45_spill] sm:$0xff]  ;;  %v7999_v43 = vld [vmem:[#allocation50_spill] sm:$0xff] }
 0x504   : > { %v3881_v59 = vsel %vm3858_vm1, %v7987_v41, %v7290_v48 }
 0x505   : > { %v3914_v17 = vsel %vm3891_vm2, %v3881_v59, %v7290_v48 }
 0x508   : > { %v3791_v62 = vpop.permute.xlu0 %3790 }
 0x509   : > { %v3939_v22 = vsel %vm3924_vm13, %v3906_v27, %v3791_v62  ;;  %v3793_v8 = vpop.permute.xlu1 %3792 }
 0x50a   : > { %v3972_v3 = vsel %vm3957_vm5, %v3939_v22, 0.0  ;;  %v3940_v26 = vsel %vm3924_vm13, %v3907_v42, %v3793_v8  ;;  %v7989_v22 = vmin.f32 %v7988_v52, 64.0 }
 0x50b   : > { %4004 = vst [vmem:[%s7396_s15 + $0x70] sm:$0xff] %v3972_v3  ;;  %v3973_v54 = vsel %vm3957_vm5, %v3940_v26, 0.0  ;;  %v7990_v3 = vld [vmem:[#allocation46_spill] sm:$0xff] }
 0x50c   : > { %4005 = vst [vmem:[%s7396_s15 + $0x78] sm:$0xff] %v3973_v54  ;;  %v3787_v55 = vpop.permute.xlu0 %3786  ;;  %v3882_v8 = vsel %vm3858_vm1, %v7989_v22, %v7293_v19  ;;  %v7991_v26 = vmin.f32 %v7990_v3, 64.0  ;;  %v8003_v22 = vmin.f32 %v7097_v6, 64.0 }
 0x50d   : > { %v3937_v0 = vsel %vm3924_vm13, %v3904_v60, %v3787_v55  ;;  %v3789_v30 = vpop.permute.xlu1 %3788  ;;  %v3915_v4 = vsel %vm3891_vm2, %v3882_v8, %v7293_v19 }
 0x50e   : > { %v3970_v29 = vsel %vm3957_vm5, %v3937_v0, 0.0  ;;  %v3938_v23 = vsel %vm3924_vm13, %v3905_v12, %v3789_v30  ;;  %v3879_v54 = vsel %vm3858_vm1, %v7991_v26, %v7295_v14  ;;  %v7992_v12 = vld [vmem:[#allocation47_spill] sm:$0xff]  ;;  %v3889_v8 = vsel %vm3858_vm1, %v8003_v22, %v7338_v56 }
 0x50f   : > { %4002 = vst [vmem:[%s7396_s15 + $0x60] sm:$0xff] %v3970_v29  ;;  %v3971_v44 = vsel %vm3957_vm5, %v3938_v23, 0.0  ;;  %v7993_v0 = vmin.f32 %v7992_v12, 64.0  ;;  %v3912_v23 = vsel %vm3891_vm2, %v3879_v54, %v7295_v14  ;;  %v7994_v14 = vmin.f32 %v7043_v16, 64.0 }
 0x510   : > { %4003 = vst [vmem:[%s7396_s15 + $0x68] sm:$0xff] %v3971_v44 }
 0x511   : > { %v3880_v30 = vsel %vm3858_vm1, %v7993_v0, %v7297_v50 }
 0x512   : > { %v3913_v33 = vsel %vm3891_vm2, %v3880_v30, %v7297_v50  ;;  %v7995_v50 = vld [vmem:[#allocation48_spill] sm:$0xff] }
 0x518   : > { %v3799_v32 = vpop.permute.xlu0 %3798 }
 0x519   : > { %v3943_v58 = vsel %vm3924_vm13, %v3910_v53, %v3799_v32  ;;  %v3801_v61 = vpop.permute.xlu1 %3800  ;;  %v3885_v53 = vsel %vm3858_vm1, %v7994_v14, %v7315_v34  ;;  %v7996_v32 = vmin.f32 %v7995_v50, 64.0 }
 0x51a   : > { %v3976_v25 = vsel %vm3957_vm5, %v3943_v58, 0.0  ;;  %v3944_v38 = vsel %vm3924_vm13, %v3911_v21, %v3801_v61  ;;  %v3918_v24 = vsel %vm3891_vm2, %v3885_v53, %v7315_v34  ;;  %v7997_v58 = vld [vmem:[#allocation49_spill] sm:$0xff] }
 0x51b   : > { %4008 = vst [vmem:[%s7396_s15 + $0x90] sm:$0xff] %v3976_v25  ;;  %v3977_v20 = vsel %vm3957_vm5, %v3944_v38, 0.0  ;;  %v3886_v21 = vsel %vm3858_vm1, %v7996_v32, %v7317_v49  ;;  %v7998_v61 = vmin.f32 %v7997_v58, 64.0  ;;  %v8000_v25 = vmin.f32 %v7999_v43, 64.0 }
 0x51c   : > { %4009 = vst [vmem:[%s7396_s15 + $0x98] sm:$0xff] %v3977_v20  ;;  %v3795_v9 = vpop.permute.xlu0 %3794  ;;  %v3919_v39 = vsel %vm3891_vm2, %v3886_v21, %v7317_v49 }
 0x51d   : > { %v3941_v36 = vsel %vm3924_vm13, %v3908_v11, %v3795_v9  ;;  %v3797_v27 = vpop.permute.xlu1 %3796  ;;  %v3883_v46 = vsel %vm3858_vm1, %v7998_v61, %v7319_v5  ;;  %v3884_v38 = vsel %vm3858_vm1, %v8000_v25, %v7321_v31 }
 0x51e   : > { %v3974_v62 = vsel %vm3957_vm5, %v3941_v36, 0.0  ;;  %v3942_v42 = vsel %vm3924_vm13, %v3909_v51, %v3797_v27  ;;  %v3916_v11 = vsel %vm3891_vm2, %v3883_v46, %v7319_v5  ;;  %v3917_v51 = vsel %vm3891_vm2, %v3884_v38, %v7321_v31 }
 0x51f   : > { %4006 = vst [vmem:[%s7396_s15 + $0x80] sm:$0xff] %v3974_v62  ;;  %v3975_v45 = vsel %vm3957_vm5, %v3942_v42, 0.0  ;;  %v8001_v5 = vmin.f32 %v7119_v35, 64.0  ;;  %v8002_v31 = vmin.f32 %v7128_v2, 64.0  ;;  %v8004_v2 = vld [vmem:[#allocation51_spill] sm:$0xff] }
 0x520   : > { %4007 = vst [vmem:[%s7396_s15 + $0x88] sm:$0xff] %v3975_v45 }
 0x521   : > { %v3887_v1 = vsel %vm3858_vm1, %v8001_v5, %v7343_v15  ;;  %v3888_v41 = vsel %vm3858_vm1, %v8002_v31, %v7345_v18 }
 0x522   : > { %v3920_v59 = vsel %vm3891_vm2, %v3887_v1, %v7343_v15  ;;  %v3921_v35 = vsel %vm3891_vm2, %v3888_v41, %v7345_v18  ;;  %v3922_v18 = vsel %vm3891_vm2, %v3889_v8, %v7338_v56 }
 0x528   : > { %v3807_v7 = vpop.permute.xlu0 %3806 }
 0x529   : > { %v3947_v60 = vsel %vm3924_vm13, %v3914_v17, %v3807_v7  ;;  %v3809_v55 = vpop.permute.xlu1 %3808 }
 0x52a   : > { %v3980_v48 = vsel %vm3957_vm5, %v3947_v60, 0.0  ;;  %v3948_v29 = vsel %vm3924_vm13, %v3915_v4, %v3809_v55  ;;  %v8005_v4 = vmin.f32 %v8004_v2, 64.0 }
 0x52b   : > { %4012 = vst [vmem:[%s7396_s15 + $0xb0] sm:$0xff] %v3980_v48  ;;  %v3981_v19 = vsel %vm3957_vm5, %v3948_v29, 0.0 }
 0x52c   : > { %4013 = vst [vmem:[%s7396_s15 + $0xb8] sm:$0xff] %v3981_v19  ;;  %v3803_v44 = vpop.permute.xlu0 %3802  ;;  %v3890_v3 = vsel %vm3858_vm1, %v8005_v4, %v7341_v28 }
 0x52d   : > { %v3945_v10 = vsel %vm3924_vm13, %v3912_v23, %v3803_v44  ;;  %v3805_v37 = vpop.permute.xlu1 %3804  ;;  %v3923_v60 = vsel %vm3891_vm2, %v3890_v3, %v7341_v28 }
 0x52e   : > { %v3978_v40 = vsel %vm3957_vm5, %v3945_v10, 0.0  ;;  %v3946_v47 = vsel %vm3924_vm13, %v3913_v33, %v3805_v37 }
 0x52f   : > { %4010 = vst [vmem:[%s7396_s15 + $0xa0] sm:$0xff] %v3978_v40  ;;  %v3979_v63 = vsel %vm3957_vm5, %v3946_v47, 0.0 }
 0x530   : > { %4011 = vst [vmem:[%s7396_s15 + $0xa8] sm:$0xff] %v3979_v63 }
 0x53d   : > { %v3815_v57 = vpop.permute.xlu0 %3814 }
 0x53e   : > { %v3951_v16 = vsel %vm3924_vm13, %v3918_v24, %v3815_v57  ;;  %v3817_v13 = vpop.permute.xlu1 %3816 }
 0x53f   : > { %v3984_v34 = vsel %vm3957_vm5, %v3951_v16, 0.0  ;;  %v3952_v20 = vsel %vm3924_vm13, %v3919_v39, %v3817_v13 }
 0x540   : > { %4016 = vst [vmem:[%s7396_s15 + $0xd0] sm:$0xff] %v3984_v34  ;;  %v3985_v49 = vsel %vm3957_vm5, %v3952_v20, 0.0 }
 0x541   : > { %4017 = vst [vmem:[%s7396_s15 + $0xd8] sm:$0xff] %v3985_v49  ;;  %v3811_v9 = vpop.permute.xlu0 %3810 }
 0x542   : > { %v3949_v36 = vsel %vm3924_vm13, %v3916_v11, %v3811_v9  ;;  %v3813_v27 = vpop.permute.xlu1 %3812 }
 0x543   : > { %v3982_v62 = vsel %vm3957_vm5, %v3949_v36, 0.0  ;;  %v3950_v42 = vsel %vm3924_vm13, %v3917_v51, %v3813_v27 }
 0x544   : > { %4014 = vst [vmem:[%s7396_s15 + $0xc0] sm:$0xff] %v3982_v62  ;;  %v3983_v45 = vsel %vm3957_vm5, %v3950_v42, 0.0 }
 0x545   : > { %4015 = vst [vmem:[%s7396_s15 + $0xc8] sm:$0xff] %v3983_v45 }
 0x551   : > { %v3819_v52 = vpop.permute.xlu0 %3818 }
 0x552   : > { %v3953_v17 = vsel %vm3924_vm13, %v3920_v59, %v3819_v52  ;;  %v3821_v7 = vpop.permute.xlu1 %3820 }
 0x553   : > { %v3986_v26 = vsel %vm3957_vm5, %v3953_v17, 0.0  ;;  %v3954_v15 = vsel %vm3924_vm13, %v3921_v35, %v3821_v7 }
 0x554   : > { %4018 = vst [vmem:[%s7396_s15 + $0xe0] sm:$0xff] %v3986_v26  ;;  %v3987_v6 = vsel %vm3957_vm5, %v3954_v15, 0.0 }
 0x555   : > { %4019 = vst [vmem:[%s7396_s15 + $0xe8] sm:$0xff] %v3987_v6  ;;  %v3823_v54 = vpop.permute.xlu0 %3822 }
 0x556   : > { %v3955_v55 = vsel %vm3924_vm13, %v3922_v18, %v3823_v54  ;;  %v3825_v12 = vpop.permute.xlu1 %3824 }
 0x557   : > { %v3988_v0 = vsel %vm3957_vm5, %v3955_v55, 0.0  ;;  %v3956_v30 = vsel %vm3924_vm13, %v3923_v60, %v3825_v12 }
 0x558   : > { %4020 = vst [vmem:[%s7396_s15 + $0xf0] sm:$0xff] %v3988_v0  ;;  %v3989_v56 = vsel %vm3957_vm5, %v3956_v30, 0.0 }
 0x559   : > { %4021 = vst [vmem:[%s7396_s15 + $0xf8] sm:$0xff] %v3989_v56 }
 0x55a   : > { %4603 = shalt.err (!%p4600_p5)
}
 0x55b   : > { %s4604_s13 = scalar_lea.hbm %s7668_s14, 4096  ;;  %s4608_s15 = scalar_lea.hbm %s7732_s6, 8192 }
 0x55c   : > { %p4605_p6 = scmp.ne.s32.totalorder %s7668_s14, %s4604_s13  ;;  %p4609_p10 = scmp.lt.u32.totalorder %s7668_s14, %s7732_s6 }
 0x55d   : > { %p4610_p11 = scmp.lt.u32.totalorder %s4608_s15, %s4604_s13  ;;  %p4612_p13 = scmp.lt.u32.totalorder %s4604_s13, %s7668_s14 }
 0x55e   : > { %p4606_p7 = pnand %p4605_p6, %p4760_p4 }
 0x55f   : > { %p4611_p12 = por %p4610_p11, %p4609_p10 }
 0x560   : > { %p4607_p9 = pneg %p4606_p7 }
 0x561   : > { %p4613_p0 = por %p4612_p13, %p4611_p12 }
 0x563   : > { %p4614_p1 = pnand %p4613_p0, %p4607_p9 }
 0x565   : > { %4617 = shalt.err (!%p4614_p1)
}
 0x566   : > { %s4684_s24 = smov 128  }
 0x567   : > { %4397 = dma.vmem_to_hbm [thread:$0]  (%p4760_p4), %s7672_s16, 4096, %s7668_s14, %s7679_s17, %s4684_s24, %s4684_s24, %s4675_s11  }
 0x568 PF: > { %p4403_p2 = scmp.ge.s32.totalorder %s4668_s26, 2  ;;  %s4053_s20 = sand.u32 1, %s4648_s21  }
 0x569   : > { %s4054_s18 = scalar_lea.sflag [#allocation4], %s4053_s20 }
 0x56a   : > { %p4400_p3 = pnand %p4403_p2, %p4767_p8 }
 0x56c   : > { %4643 = dma.done.wait (!%p4400_p3), %s4054_s18, 4096  }
 0x56d   : > { %4645 = vsyncadd (!%p4400_p3), %s4054_s18, 4294963200  ;;  %s19_s26 = sadd.s32 1, %s4668_s26   ;;  %s8006_s21 = smov %s4652_s22 }
 0x56e   : > { %p16_p5 = scmp.ge.s32.totalorder %s19_s26, 4   ;;  %s8007_s22 = smov %s4656_s23 }
 0x56f   : > { %s8008_s23 = smov %s4773_s10  ;;  %s8009_s24 = smov %s4664_s25 }
 0x570   : > { %s8010_s25 = smov %s8012_s29  ;;  %18 = sbr.rel (!%p16_p5) target bundleno = 4 (0x4), region = 82 }
 0x577   :  { %4059 = vsyncpa [#allocation4], 1 }
 0x578   :  { %4061 = vsyncpa [#allocation4 + $0x1], 1 }

</bundles_post_ra>
